<compile_context>
chip_gen: v5e
topology: v5e:2x2
jax: 0.10.0
libtpu: 0.0.40
codegen_flags: <defaults>
</compile_context>

<pallas_src>
import numpy as np

import jax
import jax.numpy as jnp
from jax import lax
from jax.experimental import pallas as pl
from jax.experimental.pallas import tpu as pltpu

LERP_ALPHA = 0.2    # torch.lerp weight
LEAKY_SLOPE = 0.2   # nn.LeakyReLU negative slope (coincidentally also 0.2)
EPS = 1e-5          # nn.InstanceNorm2d default eps


# ----------------------------------------------------------------------------
# Fused kernel: B samples per grid step, everything in (C, H*W) layout
# ----------------------------------------------------------------------------
def _fused_generator_kernel(
        z_ref, n0_ref, n1_ref, n2_ref,
        mw1, mb1, mw2, mb2, mw3, mb3,
        style_w, style_b,
        const_ref,
        ws0, at0, cb0, nw0,
        ws1, at1, cb1, nw1,
        ws2, at2, cb2, nw2,
        m816t, wi1, bi1, wi2, bi2,
        out_ref):
    f32 = jnp.float32
    B = out_ref.shape[0]                 # samples handled per grid step
    hidden = nw0.shape[0]                # hidden_chan
    seg = style_w.shape[0] // 6          # 8-aligned style segment stride

    def block_pre(x_in, ws_ref, at_ref, cb_ref, nw_ref, noise_row):
        """conv3x3 (with folded upsample) + InjectNoise + LeakyReLU + InstanceNorm.

        x_in: (Cin, HWin).  ws_ref: (9*Cout, Cin) stacked per-tap channel
        weights.  at_ref[t]: (HWin, HWout) = (Shift_t @ Upsample)^T.
        """
        cout = nw_ref.shape[0]
        # one stacked channel matmul for all 9 taps (channel-first ordering)
        y_ch = jnp.dot(ws_ref[...], x_in, preferred_element_type=f32)      # (9*Cout, HWin)
        # 9 accumulated spatial matmuls (lane-dense outputs)
        acc = jnp.dot(y_ch[0:cout, :], at_ref[0], preferred_element_type=f32)
        for t in range(1, 9):
            acc = acc + jnp.dot(y_ch[t * cout:(t + 1) * cout, :], at_ref[t],
                                preferred_element_type=f32)
        y = acc + cb_ref[...] + nw_ref[...] * noise_row                    # bias + InjectNoise
        y = jnp.where(y >= 0.0, y, LEAKY_SLOPE * y)                        # LeakyReLU(0.2)
        mu = jnp.mean(y, axis=-1, keepdims=True)                           # InstanceNorm2d
        var = jnp.mean((y - mu) ** 2, axis=-1, keepdims=True)              # (biased var)
        return (y - mu) * lax.rsqrt(var + EPS)

    # block0 before AdaIN is batch-independent: the reference starting constant
    # has batch 1 and its injected noise map is a single shared (1,1,4,4) draw.
    y0n = block_pre(const_ref[...], ws0, at0, cb0, nw0, n0_ref[...])       # (hidden, 16)

    # TODO(synk): samples within a step are unrolled (amortizes grid overhead,
    # gives ILP); their tiny matmuls are not fused into one bigger MXU op.
    for b in range(B):
        # ---- mapping network (column form): z -> w ----
        h = jnp.dot(mw1[...], z_ref[b], preferred_element_type=f32) + mb1[...]
        h = jnp.maximum(h, 0.0)
        h = jnp.dot(mw2[...], h, preferred_element_type=f32) + mb2[...]
        h = jnp.maximum(h, 0.0)
        w = jnp.dot(mw3[...], h, preferred_element_type=f32) + mb3[...]    # (w_dim, 1)

        # all six AdaIN affine columns in one matmul, 8-aligned row segments
        styles = jnp.dot(style_w[...], w, preferred_element_type=f32) + style_b[...]

        def sty(j):
            return styles[j * seg: j * seg + hidden, :]                    # (hidden, 1)

        x0 = sty(0) * y0n + sty(1)                                         # AdaIN block0
        y1n = block_pre(x0, ws1, at1, cb1, nw1, n1_ref[b])                 # (hidden, 64)
        x1 = sty(2) * y1n + sty(3)                                         # x_small
        up2 = jnp.dot(x1, m816t[...], preferred_element_type=f32)          # (hidden, 256)
        y2n = block_pre(x1, ws2, at2, cb2, nw2, n2_ref[b])                 # (hidden, 256)
        x2 = sty(4) * y2n + sty(5)                                         # x_big

        # to_image 1x1 convs; x_small_upsample == to_img1(upsample(x_small))
        # (valid: bilinear rows sum to 1, so the bias folds through exactly).
        img_big = jnp.dot(wi2[...], x2, preferred_element_type=f32) + bi2[...]       # (out, 256)
        img_small_up = jnp.dot(wi1[...], up2, preferred_element_type=f32) + bi1[...]

        # torch.lerp(x_small_upsample, x_big_image, 0.2)
        out_ref[b] = img_small_up + LERP_ALPHA * (img_big - img_small_up)


# ----------------------------------------------------------------------------
# pallas_call wrapper
# ----------------------------------------------------------------------------
_PARAM_ORDER = (
    "map_w1", "map_b1", "map_w2", "map_b2", "map_w3", "map_b3",
    "style_w", "style_b",
    "const",
    "ws0", "at0", "cb0", "nw0",
    "ws1", "at1", "cb1", "nw1",
    "ws2", "at2", "cb2", "nw2",
    "m816t", "wi1", "bi1", "wi2", "bi2",
)


def _shared_spec(arr):
    nd = arr.ndim
    return pl.BlockSpec(tuple(arr.shape), lambda i: (0,) * nd)


def micro_stylegan_forward(noise_z, noise0, noise1, noise2, params,
                           samples_per_step=None):
    """noise_z: (N, z_dim); noise0: (1, 16) shared block0 noise;
    noise1: (N, 64); noise2: (N, 256).  Returns (N, out_chan, 256)."""
    n, z_dim = noise_z.shape
    out_chan = params["wi2"].shape[0]
    hw_out = params["m816t"].shape[1]                       # 256 (16x16)

    if samples_per_step is None:
        # keep >=2 grid steps (v7x dual TensorCore), batch more for big N
        samples_per_step = 1 if n <= 2 else min(8, -(-n // 2))
    b = int(samples_per_step)
    n_pad = -(-n // b) * b

    z3 = noise_z.reshape(n, z_dim, 1)                       # per-sample columns
    n1 = noise1.reshape(n, 1, noise1.shape[-1])             # lane-dense rows
    n2 = noise2.reshape(n, 1, noise2.shape[-1])
    if n_pad != n:
        pad = [(0, n_pad - n), (0, 0), (0, 0)]
        z3, n1, n2 = jnp.pad(z3, pad), jnp.pad(n1, pad), jnp.pad(n2, pad)

    ordered = [params[k] for k in _PARAM_ORDER]

    def per_step(arr):
        return pl.BlockSpec((b,) + tuple(arr.shape[1:]), lambda i: (i, 0, 0))

    in_specs = ([per_step(z3), _shared_spec(noise0), per_step(n1), per_step(n2)]
                + [_shared_spec(a) for a in ordered])

    out = pl.pallas_call(
        _fused_generator_kernel,
        out_shape=jax.ShapeDtypeStruct((n_pad, out_chan, hw_out), jnp.float32),
        grid=(n_pad // b,),
        in_specs=in_specs,
        out_specs=pl.BlockSpec((b, out_chan, hw_out), lambda i: (i, 0, 0)),
        compiler_params=pltpu.CompilerParams(
            dimension_semantics=("parallel",)),
    )(z3, noise0, n1, n2, *ordered)
    return out[:n]
    # TODO(synk): return_intermediate path (also returning x_small_upsample /
    # x_big_image) is not wired out; only the default forward output is produced.


# ----------------------------------------------------------------------------
# Init-time constants: bilinear matrices, conv shift matrices, packed params
# ----------------------------------------------------------------------------
def _bilinear_1d(in_size, out_size):
    """1-D bilinear interpolation matrix, PyTorch align_corners=False semantics."""
    scale = in_size / out_size
    src = scale * (np.arange(out_size, dtype=np.float64) + 0.5) - 0.5
    src = np.maximum(src, 0.0)
    i0 = np.minimum(np.floor(src), in_size - 1).astype(np.int64)
    i1 = np.minimum(i0 + 1, in_size - 1)
    frac = src - i0
    a = np.zeros((out_size, in_size), np.float64)
    a[np.arange(out_size), i0] += 1.0 - frac
    a[np.arange(out_size), i1] += frac
    return a


def _bilinear_flat(in_size, out_size):
    a = _bilinear_1d(in_size, out_size)
    return np.kron(a, a)                                    # (out^2, in^2)


def _shift_stack(s):
    """9 spatial-shift matrices (tap t = kh*3+kw) for a 3x3 conv, padding=1."""
    hw = s * s
    t = np.zeros((9, hw, hw), np.float64)
    for dh in range(3):
        for dw in range(3):
            k = dh * 3 + dw
            for h in range(s):
                hh = h + dh - 1
                if not (0 <= hh < s):
                    continue
                for w_out in range(s):
                    ww = w_out + dw - 1
                    if 0 <= ww < s:
                        t[k, h * s + w_out, hh * s + ww] = 1.0
    return t


def init_params(key, z_dim, map_hidden_dim, w_dim, in_chan, out_chan,
                kernel_size, hidden_chan):
    """Deterministic synthetic parameters (shapes follow the PyTorch module)."""
    assert kernel_size == 3, "shift-matrix conv is specialized to 3x3, padding=1"
    keys = iter(jax.random.split(key, 64))

    def nrm(shape, s=0.1):
        return np.asarray(s * jax.random.normal(next(keys), shape), dtype=np.float32)

    p = {}
    # mapping MLP, column form (PyTorch (out,in) Linear weights, (out,1) biases)
    p["map_w1"] = nrm((map_hidden_dim, z_dim)); p["map_b1"] = nrm((map_hidden_dim, 1))
    p["map_w2"] = nrm((map_hidden_dim, map_hidden_dim)); p["map_b2"] = nrm((map_hidden_dim, 1))
    p["map_w3"] = nrm((w_dim, map_hidden_dim)); p["map_b3"] = nrm((w_dim, 1))

    # starting constant: torch.randn(1, in_chan, 4, 4) -> (in_chan, 16) = (C, HW)
    const_nchw = np.asarray(jax.random.normal(next(keys), (1, in_chan, 4, 4)),
                            dtype=np.float32)
    p["const"] = const_nchw.reshape(in_chan, 16)

    # packed AdaIN style weights: row segments [sc0, sh0, sc1, sh1, sc2, sh2],
    # each padded to an 8-aligned sublane slot; output comes out column-shaped.
    seg = ((hidden_chan + 7) // 8) * 8
    style_w = np.zeros((6 * seg, w_dim), np.float32)
    style_b = np.zeros((6 * seg, 1), np.float32)

    def make_block(idx, cin, cout):
        wc = nrm((cout, cin, 3, 3))                                  # PyTorch conv layout
        # stacked per-tap channel weights: (9*Cout, Cin), tap-major
        p[f"ws{idx}"] = np.transpose(wc, (2, 3, 0, 1)).reshape(9 * cout, cin)
        p[f"cb{idx}"] = nrm((cout, 1))
        p[f"nw{idx}"] = nrm((cout, 1), 1.0)                          # InjectNoise weight
        r0, r1 = 2 * idx * seg, (2 * idx + 1) * seg
        style_w[r0:r0 + cout, :] = nrm((cout, w_dim)); style_b[r0:r0 + cout, :] = nrm((cout, 1))
        style_w[r1:r1 + cout, :] = nrm((cout, w_dim)); style_b[r1:r1 + cout, :] = nrm((cout, 1))

    make_block(0, in_chan, hidden_chan)
    make_block(1, hidden_chan, hidden_chan)
    make_block(2, hidden_chan, hidden_chan)
    p["style_w"] = style_w
    p["style_b"] = style_b

    # to_image 1x1 convs, (out_chan, hidden) for the (C, HW) layout
    p["wi1"] = nrm((out_chan, hidden_chan)); p["bi1"] = nrm((out_chan, 1))
    p["wi2"] = nrm((out_chan, hidden_chan)); p["bi2"] = nrm((out_chan, 1))

    # geometry: bilinear upsample matrices + 3x3 shift matrices, pre-folded and
    # TRANSPOSED so each tap is x @ (Shift_t @ Up)^T with lane-dense output.
    m48 = _bilinear_flat(4, 8)                                       # (64, 16)
    m816 = _bilinear_flat(8, 16)                                     # (256, 64)
    p["at0"] = np.ascontiguousarray(np.transpose(_shift_stack(4), (0, 2, 1)))          # (9,16,16)
    p["at1"] = np.ascontiguousarray(np.transpose(_shift_stack(8) @ m48, (0, 2, 1)))    # (9,16,64)
    p["at2"] = np.ascontiguousarray(np.transpose(_shift_stack(16) @ m816, (0, 2, 1)))  # (9,64,256)
    p["m816t"] = np.ascontiguousarray(m816.T)                                          # (64,256)

    return {k: jnp.asarray(v, jnp.float32) for k, v in p.items()}


def make_inject_noise(key, n):
    """Per-forward InjectNoise maps: (1,16) shared block0 map, (N,64), (N,256)."""
    # TODO(synk): the reference draws these with torch.randn inside forward; we
    # draw them host-side with jax.random (different RNG stream, same semantics).
    k0, k1, k2 = jax.random.split(key, 3)
    # block0 operates on the batch-1 starting constant in the reference, so its
    # injected noise map is a single (1, 1, 4, 4) draw shared by all samples.
    n0 = jax.random.normal(k0, (1, 16), jnp.float32)
    n1 = jax.random.normal(k1, (n, 64), jnp.float32)
    n2 = jax.random.normal(k2, (n, 256), jnp.float32)
    return n0, n1, n2


# ----------------------------------------------------------------------------
if __name__ == "__main__":
    Z_DIM, MAP_HIDDEN, W_DIM = 8, 32, 16
    IN_CHAN, OUT_CHAN, KSIZE, HIDDEN = 16, 3, 3, 16
    N = 2

    key = jax.random.PRNGKey(0)
    pkey, zkey, ikey = jax.random.split(key, 3)

    params = init_params(pkey, Z_DIM, MAP_HIDDEN, W_DIM, IN_CHAN, OUT_CHAN, KSIZE, HIDDEN)
    z = jax.random.normal(zkey, (N, Z_DIM), dtype=jnp.float32)
    n0, n1, n2 = make_inject_noise(ikey, N)

    fwd = jax.jit(micro_stylegan_forward)
    out = jax.block_until_ready(fwd(z, n0, n1, n2, params))          # (N, OUT_CHAN, 256)

    # (N, C, H*W) -> PyTorch NCHW is a pure reshape (spatial is row-major h*16+w)
    out_nchw = out.reshape(N, OUT_CHAN, 16, 16)
    assert out_nchw.shape == (N, OUT_CHAN, 16, 16), out_nchw.shape
    assert bool(jnp.all(jnp.isfinite(out_nchw)))
    print("KERNEL_OK")
</pallas_src>

<mosaic_0001>
module attributes {stable_mosaic.version = 11 : i64} {
  func.func @_fused_generator_kernel(%arg0: i32, %arg1: memref<1x8x1xf32, #tpu.memory_space<vmem>>, %arg2: memref<1x16xf32, #tpu.memory_space<vmem>>, %arg3: memref<1x1x64xf32, #tpu.memory_space<vmem>>, %arg4: memref<1x1x256xf32, #tpu.memory_space<vmem>>, %arg5: memref<32x8xf32, #tpu.memory_space<vmem>>, %arg6: memref<32x1xf32, #tpu.memory_space<vmem>>, %arg7: memref<32x32xf32, #tpu.memory_space<vmem>>, %arg8: memref<32x1xf32, #tpu.memory_space<vmem>>, %arg9: memref<16x32xf32, #tpu.memory_space<vmem>>, %arg10: memref<16x1xf32, #tpu.memory_space<vmem>>, %arg11: memref<96x16xf32, #tpu.memory_space<vmem>>, %arg12: memref<96x1xf32, #tpu.memory_space<vmem>>, %arg13: memref<16x16xf32, #tpu.memory_space<vmem>>, %arg14: memref<144x16xf32, #tpu.memory_space<vmem>>, %arg15: memref<9x16x16xf32, #tpu.memory_space<vmem>>, %arg16: memref<16x1xf32, #tpu.memory_space<vmem>>, %arg17: memref<16x1xf32, #tpu.memory_space<vmem>>, %arg18: memref<144x16xf32, #tpu.memory_space<vmem>>, %arg19: memref<9x16x64xf32, #tpu.memory_space<vmem>>, %arg20: memref<16x1xf32, #tpu.memory_space<vmem>>, %arg21: memref<16x1xf32, #tpu.memory_space<vmem>>, %arg22: memref<144x16xf32, #tpu.memory_space<vmem>>, %arg23: memref<9x64x256xf32, #tpu.memory_space<vmem>>, %arg24: memref<16x1xf32, #tpu.memory_space<vmem>>, %arg25: memref<16x1xf32, #tpu.memory_space<vmem>>, %arg26: memref<64x256xf32, #tpu.memory_space<vmem>>, %arg27: memref<3x16xf32, #tpu.memory_space<vmem>>, %arg28: memref<3x1xf32, #tpu.memory_space<vmem>>, %arg29: memref<3x16xf32, #tpu.memory_space<vmem>>, %arg30: memref<3x1xf32, #tpu.memory_space<vmem>>, %arg31: memref<1x3x256xf32, #tpu.memory_space<vmem>>) attributes {dimension_semantics = [#tpu.dimension_semantics<parallel>], iteration_bounds = array<i64: 2>, scalar_prefetch = 0 : i64, scratch_operands = 0 : i64, tpu.core_type = #tpu.core_type<tc>, window_params = [{transform_indices = @transform_0, window_bounds = array<i64: 1, 8, 1>}, {pipeline_mode = #tpu.pipeline_mode<synchronous>, transform_indices = @transform_1, window_bounds = array<i64: 1, 16>}, {transform_indices = @transform_2, window_bounds = array<i64: 1, 1, 64>}, {transform_indices = @transform_3, window_bounds = array<i64: 1, 1, 256>}, {pipeline_mode = #tpu.pipeline_mode<synchronous>, transform_indices = @transform_4, window_bounds = array<i64: 32, 8>}, {pipeline_mode = #tpu.pipeline_mode<synchronous>, transform_indices = @transform_5, window_bounds = array<i64: 32, 1>}, {pipeline_mode = #tpu.pipeline_mode<synchronous>, transform_indices = @transform_6, window_bounds = array<i64: 32, 32>}, {pipeline_mode = #tpu.pipeline_mode<synchronous>, transform_indices = @transform_7, window_bounds = array<i64: 32, 1>}, {pipeline_mode = #tpu.pipeline_mode<synchronous>, transform_indices = @transform_8, window_bounds = array<i64: 16, 32>}, {pipeline_mode = #tpu.pipeline_mode<synchronous>, transform_indices = @transform_9, window_bounds = array<i64: 16, 1>}, {pipeline_mode = #tpu.pipeline_mode<synchronous>, transform_indices = @transform_10, window_bounds = array<i64: 96, 16>}, {pipeline_mode = #tpu.pipeline_mode<synchronous>, transform_indices = @transform_11, window_bounds = array<i64: 96, 1>}, {pipeline_mode = #tpu.pipeline_mode<synchronous>, transform_indices = @transform_12, window_bounds = array<i64: 16, 16>}, {pipeline_mode = #tpu.pipeline_mode<synchronous>, transform_indices = @transform_13, window_bounds = array<i64: 144, 16>}, {pipeline_mode = #tpu.pipeline_mode<synchronous>, transform_indices = @transform_14, window_bounds = array<i64: 9, 16, 16>}, {pipeline_mode = #tpu.pipeline_mode<synchronous>, transform_indices = @transform_15, window_bounds = array<i64: 16, 1>}, {pipeline_mode = #tpu.pipeline_mode<synchronous>, transform_indices = @transform_16, window_bounds = array<i64: 16, 1>}, {pipeline_mode = #tpu.pipeline_mode<synchronous>, transform_indices = @transform_17, window_bounds = array<i64: 144, 16>}, {pipeline_mode = #tpu.pipeline_mode<synchronous>, transform_indices = @transform_18, window_bounds = array<i64: 9, 16, 64>}, {pipeline_mode = #tpu.pipeline_mode<synchronous>, transform_indices = @transform_19, window_bounds = array<i64: 16, 1>}, {pipeline_mode = #tpu.pipeline_mode<synchronous>, transform_indices = @transform_20, window_bounds = array<i64: 16, 1>}, {pipeline_mode = #tpu.pipeline_mode<synchronous>, transform_indices = @transform_21, window_bounds = array<i64: 144, 16>}, {pipeline_mode = #tpu.pipeline_mode<synchronous>, transform_indices = @transform_22, window_bounds = array<i64: 9, 64, 256>}, {pipeline_mode = #tpu.pipeline_mode<synchronous>, transform_indices = @transform_23, window_bounds = array<i64: 16, 1>}, {pipeline_mode = #tpu.pipeline_mode<synchronous>, transform_indices = @transform_24, window_bounds = array<i64: 16, 1>}, {pipeline_mode = #tpu.pipeline_mode<synchronous>, transform_indices = @transform_25, window_bounds = array<i64: 64, 256>}, {pipeline_mode = #tpu.pipeline_mode<synchronous>, transform_indices = @transform_26, window_bounds = array<i64: 3, 16>}, {pipeline_mode = #tpu.pipeline_mode<synchronous>, transform_indices = @transform_27, window_bounds = array<i64: 3, 1>}, {pipeline_mode = #tpu.pipeline_mode<synchronous>, transform_indices = @transform_28, window_bounds = array<i64: 3, 16>}, {pipeline_mode = #tpu.pipeline_mode<synchronous>, transform_indices = @transform_29, window_bounds = array<i64: 3, 1>}, {transform_indices = @transform_30, window_bounds = array<i64: 1, 3, 256>}]} {
    %c0 = arith.constant 0 : index
    %c0_0 = arith.constant 0 : index
    %0 = vector.load %arg13[%c0, %c0_0] : memref<16x16xf32, #tpu.memory_space<vmem>>, vector<16x16xf32>
    %c0_1 = arith.constant 0 : index
    %c0_2 = arith.constant 0 : index
    %1 = vector.load %arg2[%c0_1, %c0_2] : memref<1x16xf32, #tpu.memory_space<vmem>>, vector<1x16xf32>
    %c0_3 = arith.constant 0 : index
    %c0_4 = arith.constant 0 : index
    %2 = vector.load %arg14[%c0_3, %c0_4] : memref<144x16xf32, #tpu.memory_space<vmem>>, vector<144x16xf32>
    %cst = arith.constant dense<0.000000e+00> : vector<144x16xf32>
    %3 = tpu.matmul %2, %0, %cst {dimension_numbers = #tpu.dot_dimension_numbers<[1], [0], [0], [1], [0, 0, 1, 1], [], []>} : vector<144x16xf32>, vector<16x16xf32>, vector<144x16xf32> -> vector<144x16xf32>
    %4 = vector.extract_strided_slice %3 {offsets = [0, 0], sizes = [16, 16], strides = [1, 1]} : vector<144x16xf32> to vector<16x16xf32>
    %c0_5 = arith.constant 0 : index
    %c0_6 = arith.constant 0 : index
    %c0_7 = arith.constant 0 : index
    %5 = vector.load %arg15[%c0_5, %c0_6, %c0_7] : memref<9x16x16xf32, #tpu.memory_space<vmem>>, vector<1x16x16xf32>
    %6 = vector.shape_cast %5 : vector<1x16x16xf32> to vector<16x16xf32>
    %cst_8 = arith.constant dense<0.000000e+00> : vector<16x16xf32>
    %7 = tpu.matmul %4, %6, %cst_8 {dimension_numbers = #tpu.dot_dimension_numbers<[1], [0], [0], [1], [0, 0, 1, 1], [], []>} : vector<16x16xf32>, vector<16x16xf32>, vector<16x16xf32> -> vector<16x16xf32>
    %8 = vector.extract_strided_slice %3 {offsets = [16, 0], sizes = [16, 16], strides = [1, 1]} : vector<144x16xf32> to vector<16x16xf32>
    %c1 = arith.constant 1 : index
    %c0_9 = arith.constant 0 : index
    %c0_10 = arith.constant 0 : index
    %9 = vector.load %arg15[%c1, %c0_9, %c0_10] : memref<9x16x16xf32, #tpu.memory_space<vmem>>, vector<1x16x16xf32>
    %10 = vector.shape_cast %9 : vector<1x16x16xf32> to vector<16x16xf32>
    %cst_11 = arith.constant dense<0.000000e+00> : vector<16x16xf32>
    %11 = tpu.matmul %8, %10, %cst_11 {dimension_numbers = #tpu.dot_dimension_numbers<[1], [0], [0], [1], [0, 0, 1, 1], [], []>} : vector<16x16xf32>, vector<16x16xf32>, vector<16x16xf32> -> vector<16x16xf32>
    %12 = arith.addf %7, %11 : vector<16x16xf32>
    %13 = vector.extract_strided_slice %3 {offsets = [32, 0], sizes = [16, 16], strides = [1, 1]} : vector<144x16xf32> to vector<16x16xf32>
    %c2 = arith.constant 2 : index
    %c0_12 = arith.constant 0 : index
    %c0_13 = arith.constant 0 : index
    %14 = vector.load %arg15[%c2, %c0_12, %c0_13] : memref<9x16x16xf32, #tpu.memory_space<vmem>>, vector<1x16x16xf32>
    %15 = vector.shape_cast %14 : vector<1x16x16xf32> to vector<16x16xf32>
    %cst_14 = arith.constant dense<0.000000e+00> : vector<16x16xf32>
    %16 = tpu.matmul %13, %15, %cst_14 {dimension_numbers = #tpu.dot_dimension_numbers<[1], [0], [0], [1], [0, 0, 1, 1], [], []>} : vector<16x16xf32>, vector<16x16xf32>, vector<16x16xf32> -> vector<16x16xf32>
    %17 = arith.addf %12, %16 : vector<16x16xf32>
    %18 = vector.extract_strided_slice %3 {offsets = [48, 0], sizes = [16, 16], strides = [1, 1]} : vector<144x16xf32> to vector<16x16xf32>
    %c3 = arith.constant 3 : index
    %c0_15 = arith.constant 0 : index
    %c0_16 = arith.constant 0 : index
    %19 = vector.load %arg15[%c3, %c0_15, %c0_16] : memref<9x16x16xf32, #tpu.memory_space<vmem>>, vector<1x16x16xf32>
    %20 = vector.shape_cast %19 : vector<1x16x16xf32> to vector<16x16xf32>
    %cst_17 = arith.constant dense<0.000000e+00> : vector<16x16xf32>
    %21 = tpu.matmul %18, %20, %cst_17 {dimension_numbers = #tpu.dot_dimension_numbers<[1], [0], [0], [1], [0, 0, 1, 1], [], []>} : vector<16x16xf32>, vector<16x16xf32>, vector<16x16xf32> -> vector<16x16xf32>
    %22 = arith.addf %17, %21 : vector<16x16xf32>
    %23 = vector.extract_strided_slice %3 {offsets = [64, 0], sizes = [16, 16], strides = [1, 1]} : vector<144x16xf32> to vector<16x16xf32>
    %c4 = arith.constant 4 : index
    %c0_18 = arith.constant 0 : index
    %c0_19 = arith.constant 0 : index
    %24 = vector.load %arg15[%c4, %c0_18, %c0_19] : memref<9x16x16xf32, #tpu.memory_space<vmem>>, vector<1x16x16xf32>
    %25 = vector.shape_cast %24 : vector<1x16x16xf32> to vector<16x16xf32>
    %cst_20 = arith.constant dense<0.000000e+00> : vector<16x16xf32>
    %26 = tpu.matmul %23, %25, %cst_20 {dimension_numbers = #tpu.dot_dimension_numbers<[1], [0], [0], [1], [0, 0, 1, 1], [], []>} : vector<16x16xf32>, vector<16x16xf32>, vector<16x16xf32> -> vector<16x16xf32>
    %27 = arith.addf %22, %26 : vector<16x16xf32>
    %28 = vector.extract_strided_slice %3 {offsets = [80, 0], sizes = [16, 16], strides = [1, 1]} : vector<144x16xf32> to vector<16x16xf32>
    %c5 = arith.constant 5 : index
    %c0_21 = arith.constant 0 : index
    %c0_22 = arith.constant 0 : index
    %29 = vector.load %arg15[%c5, %c0_21, %c0_22] : memref<9x16x16xf32, #tpu.memory_space<vmem>>, vector<1x16x16xf32>
    %30 = vector.shape_cast %29 : vector<1x16x16xf32> to vector<16x16xf32>
    %cst_23 = arith.constant dense<0.000000e+00> : vector<16x16xf32>
    %31 = tpu.matmul %28, %30, %cst_23 {dimension_numbers = #tpu.dot_dimension_numbers<[1], [0], [0], [1], [0, 0, 1, 1], [], []>} : vector<16x16xf32>, vector<16x16xf32>, vector<16x16xf32> -> vector<16x16xf32>
    %32 = arith.addf %27, %31 : vector<16x16xf32>
    %33 = vector.extract_strided_slice %3 {offsets = [96, 0], sizes = [16, 16], strides = [1, 1]} : vector<144x16xf32> to vector<16x16xf32>
    %c6 = arith.constant 6 : index
    %c0_24 = arith.constant 0 : index
    %c0_25 = arith.constant 0 : index
    %34 = vector.load %arg15[%c6, %c0_24, %c0_25] : memref<9x16x16xf32, #tpu.memory_space<vmem>>, vector<1x16x16xf32>
    %35 = vector.shape_cast %34 : vector<1x16x16xf32> to vector<16x16xf32>
    %cst_26 = arith.constant dense<0.000000e+00> : vector<16x16xf32>
    %36 = tpu.matmul %33, %35, %cst_26 {dimension_numbers = #tpu.dot_dimension_numbers<[1], [0], [0], [1], [0, 0, 1, 1], [], []>} : vector<16x16xf32>, vector<16x16xf32>, vector<16x16xf32> -> vector<16x16xf32>
    %37 = arith.addf %32, %36 : vector<16x16xf32>
    %38 = vector.extract_strided_slice %3 {offsets = [112, 0], sizes = [16, 16], strides = [1, 1]} : vector<144x16xf32> to vector<16x16xf32>
    %c7 = arith.constant 7 : index
    %c0_27 = arith.constant 0 : index
    %c0_28 = arith.constant 0 : index
    %39 = vector.load %arg15[%c7, %c0_27, %c0_28] : memref<9x16x16xf32, #tpu.memory_space<vmem>>, vector<1x16x16xf32>
    %40 = vector.shape_cast %39 : vector<1x16x16xf32> to vector<16x16xf32>
    %cst_29 = arith.constant dense<0.000000e+00> : vector<16x16xf32>
    %41 = tpu.matmul %38, %40, %cst_29 {dimension_numbers = #tpu.dot_dimension_numbers<[1], [0], [0], [1], [0, 0, 1, 1], [], []>} : vector<16x16xf32>, vector<16x16xf32>, vector<16x16xf32> -> vector<16x16xf32>
    %42 = arith.addf %37, %41 : vector<16x16xf32>
    %43 = vector.extract_strided_slice %3 {offsets = [128, 0], sizes = [16, 16], strides = [1, 1]} : vector<144x16xf32> to vector<16x16xf32>
    %c8 = arith.constant 8 : index
    %c0_30 = arith.constant 0 : index
    %c0_31 = arith.constant 0 : index
    %44 = vector.load %arg15[%c8, %c0_30, %c0_31] : memref<9x16x16xf32, #tpu.memory_space<vmem>>, vector<1x16x16xf32>
    %45 = vector.shape_cast %44 : vector<1x16x16xf32> to vector<16x16xf32>
    %cst_32 = arith.constant dense<0.000000e+00> : vector<16x16xf32>
    %46 = tpu.matmul %43, %45, %cst_32 {dimension_numbers = #tpu.dot_dimension_numbers<[1], [0], [0], [1], [0, 0, 1, 1], [], []>} : vector<16x16xf32>, vector<16x16xf32>, vector<16x16xf32> -> vector<16x16xf32>
    %47 = arith.addf %42, %46 : vector<16x16xf32>
    %c0_33 = arith.constant 0 : index
    %c0_34 = arith.constant 0 : index
    %48 = vector.load %arg16[%c0_33, %c0_34] : memref<16x1xf32, #tpu.memory_space<vmem>>, vector<16x1xf32>
    %49 = vector.broadcast %48 : vector<16x1xf32> to vector<16x16xf32>
    %50 = arith.addf %47, %49 : vector<16x16xf32>
    %c0_35 = arith.constant 0 : index
    %c0_36 = arith.constant 0 : index
    %51 = vector.load %arg17[%c0_35, %c0_36] : memref<16x1xf32, #tpu.memory_space<vmem>>, vector<16x1xf32>
    %52 = vector.broadcast %51 : vector<16x1xf32> to vector<16x16xf32>
    %53 = vector.broadcast %1 : vector<1x16xf32> to vector<16x16xf32>
    %54 = arith.mulf %52, %53 : vector<16x16xf32>
    %55 = arith.addf %50, %54 : vector<16x16xf32>
    %cst_37 = arith.constant 0.000000e+00 : f32
    %56 = vector.broadcast %cst_37 : f32 to vector<16x16xf32>
    %57 = arith.cmpf oge, %55, %56 : vector<16x16xf32>
    %cst_38 = arith.constant 2.000000e-01 : f32
    %58 = vector.broadcast %cst_38 : f32 to vector<16x16xf32>
    %59 = arith.mulf %58, %55 : vector<16x16xf32>
    %60 = arith.select %57, %55, %59 : vector<16x16xi1>, vector<16x16xf32>
    %cst_39 = arith.constant dense<0.000000e+00> : vector<16xf32>
    %61 = vector.multi_reduction <add>, %60, %cst_39 [1] : vector<16x16xf32> to vector<16xf32>
    %62 = vector.shape_cast %61 : vector<16xf32> to vector<16x1xf32>
    %cst_40 = arith.constant 1.600000e+01 : f32
    %63 = vector.broadcast %cst_40 : f32 to vector<16x1xf32>
    %64 = arith.divf %62, %63 : vector<16x1xf32>
    %65 = vector.broadcast %64 : vector<16x1xf32> to vector<16x16xf32>
    %66 = arith.subf %60, %65 : vector<16x16xf32>
    %67 = arith.mulf %66, %66 : vector<16x16xf32>
    %cst_41 = arith.constant dense<0.000000e+00> : vector<16xf32>
    %68 = vector.multi_reduction <add>, %67, %cst_41 [1] : vector<16x16xf32> to vector<16xf32>
    %69 = vector.shape_cast %68 : vector<16xf32> to vector<16x1xf32>
    %cst_42 = arith.constant 1.600000e+01 : f32
    %70 = vector.broadcast %cst_42 : f32 to vector<16x1xf32>
    %71 = arith.divf %69, %70 : vector<16x1xf32>
    %72 = vector.broadcast %64 : vector<16x1xf32> to vector<16x16xf32>
    %73 = arith.subf %60, %72 : vector<16x16xf32>
    %cst_43 = arith.constant 9.99999974E-6 : f32
    %74 = vector.broadcast %cst_43 : f32 to vector<16x1xf32>
    %75 = arith.addf %71, %74 : vector<16x1xf32>
    %76 = math.rsqrt %75 : vector<16x1xf32>
    %77 = vector.broadcast %76 : vector<16x1xf32> to vector<16x16xf32>
    %78 = arith.mulf %73, %77 : vector<16x16xf32>
    %c0_44 = arith.constant 0 : index
    %c0_45 = arith.constant 0 : index
    %79 = vector.load %arg5[%c0_44, %c0_45] : memref<32x8xf32, #tpu.memory_space<vmem>>, vector<32x8xf32>
    %c0_46 = arith.constant 0 : index
    %c0_47 = arith.constant 0 : index
    %c0_48 = arith.constant 0 : index
    %80 = vector.load %arg1[%c0_46, %c0_47, %c0_48] : memref<1x8x1xf32, #tpu.memory_space<vmem>>, vector<1x8x1xf32>
    %81 = vector.shape_cast %80 : vector<1x8x1xf32> to vector<8x1xf32>
    %cst_49 = arith.constant dense<0.000000e+00> : vector<32x1xf32>
    %82 = tpu.matmul %79, %81, %cst_49 {dimension_numbers = #tpu.dot_dimension_numbers<[1], [0], [0], [1], [0, 0, 1, 1], [], []>} : vector<32x8xf32>, vector<8x1xf32>, vector<32x1xf32> -> vector<32x1xf32>
    %c0_50 = arith.constant 0 : index
    %c0_51 = arith.constant 0 : index
    %83 = vector.load %arg6[%c0_50, %c0_51] : memref<32x1xf32, #tpu.memory_space<vmem>>, vector<32x1xf32>
    %84 = arith.addf %82, %83 : vector<32x1xf32>
    %cst_52 = arith.constant 0.000000e+00 : f32
    %85 = vector.broadcast %cst_52 : f32 to vector<32x1xf32>
    %86 = arith.maximumf %84, %85 : vector<32x1xf32>
    %c0_53 = arith.constant 0 : index
    %c0_54 = arith.constant 0 : index
    %87 = vector.load %arg7[%c0_53, %c0_54] : memref<32x32xf32, #tpu.memory_space<vmem>>, vector<32x32xf32>
    %cst_55 = arith.constant dense<0.000000e+00> : vector<32x1xf32>
    %88 = tpu.matmul %87, %86, %cst_55 {dimension_numbers = #tpu.dot_dimension_numbers<[1], [0], [0], [1], [0, 0, 1, 1], [], []>} : vector<32x32xf32>, vector<32x1xf32>, vector<32x1xf32> -> vector<32x1xf32>
    %c0_56 = arith.constant 0 : index
    %c0_57 = arith.constant 0 : index
    %89 = vector.load %arg8[%c0_56, %c0_57] : memref<32x1xf32, #tpu.memory_space<vmem>>, vector<32x1xf32>
    %90 = arith.addf %88, %89 : vector<32x1xf32>
    %cst_58 = arith.constant 0.000000e+00 : f32
    %91 = vector.broadcast %cst_58 : f32 to vector<32x1xf32>
    %92 = arith.maximumf %90, %91 : vector<32x1xf32>
    %c0_59 = arith.constant 0 : index
    %c0_60 = arith.constant 0 : index
    %93 = vector.load %arg9[%c0_59, %c0_60] : memref<16x32xf32, #tpu.memory_space<vmem>>, vector<16x32xf32>
    %cst_61 = arith.constant dense<0.000000e+00> : vector<16x1xf32>
    %94 = tpu.matmul %93, %92, %cst_61 {dimension_numbers = #tpu.dot_dimension_numbers<[1], [0], [0], [1], [0, 0, 1, 1], [], []>} : vector<16x32xf32>, vector<32x1xf32>, vector<16x1xf32> -> vector<16x1xf32>
    %c0_62 = arith.constant 0 : index
    %c0_63 = arith.constant 0 : index
    %95 = vector.load %arg10[%c0_62, %c0_63] : memref<16x1xf32, #tpu.memory_space<vmem>>, vector<16x1xf32>
    %96 = arith.addf %94, %95 : vector<16x1xf32>
    %c0_64 = arith.constant 0 : index
    %c0_65 = arith.constant 0 : index
    %97 = vector.load %arg11[%c0_64, %c0_65] : memref<96x16xf32, #tpu.memory_space<vmem>>, vector<96x16xf32>
    %cst_66 = arith.constant dense<0.000000e+00> : vector<96x1xf32>
    %98 = tpu.matmul %97, %96, %cst_66 {dimension_numbers = #tpu.dot_dimension_numbers<[1], [0], [0], [1], [0, 0, 1, 1], [], []>} : vector<96x16xf32>, vector<16x1xf32>, vector<96x1xf32> -> vector<96x1xf32>
    %c0_67 = arith.constant 0 : index
    %c0_68 = arith.constant 0 : index
    %99 = vector.load %arg12[%c0_67, %c0_68] : memref<96x1xf32, #tpu.memory_space<vmem>>, vector<96x1xf32>
    %100 = arith.addf %98, %99 : vector<96x1xf32>
    %101 = vector.extract_strided_slice %100 {offsets = [0, 0], sizes = [16, 1], strides = [1, 1]} : vector<96x1xf32> to vector<16x1xf32>
    %102 = vector.broadcast %101 : vector<16x1xf32> to vector<16x16xf32>
    %103 = arith.mulf %102, %78 : vector<16x16xf32>
    %104 = vector.extract_strided_slice %100 {offsets = [16, 0], sizes = [16, 1], strides = [1, 1]} : vector<96x1xf32> to vector<16x1xf32>
    %105 = vector.broadcast %104 : vector<16x1xf32> to vector<16x16xf32>
    %106 = arith.addf %103, %105 : vector<16x16xf32>
    %c0_69 = arith.constant 0 : index
    %c0_70 = arith.constant 0 : index
    %c0_71 = arith.constant 0 : index
    %107 = vector.load %arg3[%c0_69, %c0_70, %c0_71] : memref<1x1x64xf32, #tpu.memory_space<vmem>>, vector<1x1x64xf32>
    %108 = vector.shape_cast %107 : vector<1x1x64xf32> to vector<1x64xf32>
    %c0_72 = arith.constant 0 : index
    %c0_73 = arith.constant 0 : index
    %109 = vector.load %arg18[%c0_72, %c0_73] : memref<144x16xf32, #tpu.memory_space<vmem>>, vector<144x16xf32>
    %cst_74 = arith.constant dense<0.000000e+00> : vector<144x16xf32>
    %110 = tpu.matmul %109, %106, %cst_74 {dimension_numbers = #tpu.dot_dimension_numbers<[1], [0], [0], [1], [0, 0, 1, 1], [], []>} : vector<144x16xf32>, vector<16x16xf32>, vector<144x16xf32> -> vector<144x16xf32>
    %111 = vector.extract_strided_slice %110 {offsets = [0, 0], sizes = [16, 16], strides = [1, 1]} : vector<144x16xf32> to vector<16x16xf32>
    %c0_75 = arith.constant 0 : index
    %c0_76 = arith.constant 0 : index
    %c0_77 = arith.constant 0 : index
    %112 = vector.load %arg19[%c0_75, %c0_76, %c0_77] : memref<9x16x64xf32, #tpu.memory_space<vmem>>, vector<1x16x64xf32>
    %113 = vector.shape_cast %112 : vector<1x16x64xf32> to vector<16x64xf32>
    %cst_78 = arith.constant dense<0.000000e+00> : vector<16x64xf32>
    %114 = tpu.matmul %111, %113, %cst_78 {dimension_numbers = #tpu.dot_dimension_numbers<[1], [0], [0], [1], [0, 0, 1, 1], [], []>} : vector<16x16xf32>, vector<16x64xf32>, vector<16x64xf32> -> vector<16x64xf32>
    %115 = vector.extract_strided_slice %110 {offsets = [16, 0], sizes = [16, 16], strides = [1, 1]} : vector<144x16xf32> to vector<16x16xf32>
    %c1_79 = arith.constant 1 : index
    %c0_80 = arith.constant 0 : index
    %c0_81 = arith.constant 0 : index
    %116 = vector.load %arg19[%c1_79, %c0_80, %c0_81] : memref<9x16x64xf32, #tpu.memory_space<vmem>>, vector<1x16x64xf32>
    %117 = vector.shape_cast %116 : vector<1x16x64xf32> to vector<16x64xf32>
    %cst_82 = arith.constant dense<0.000000e+00> : vector<16x64xf32>
    %118 = tpu.matmul %115, %117, %cst_82 {dimension_numbers = #tpu.dot_dimension_numbers<[1], [0], [0], [1], [0, 0, 1, 1], [], []>} : vector<16x16xf32>, vector<16x64xf32>, vector<16x64xf32> -> vector<16x64xf32>
    %119 = arith.addf %114, %118 : vector<16x64xf32>
    %120 = vector.extract_strided_slice %110 {offsets = [32, 0], sizes = [16, 16], strides = [1, 1]} : vector<144x16xf32> to vector<16x16xf32>
    %c2_83 = arith.constant 2 : index
    %c0_84 = arith.constant 0 : index
    %c0_85 = arith.constant 0 : index
    %121 = vector.load %arg19[%c2_83, %c0_84, %c0_85] : memref<9x16x64xf32, #tpu.memory_space<vmem>>, vector<1x16x64xf32>
    %122 = vector.shape_cast %121 : vector<1x16x64xf32> to vector<16x64xf32>
    %cst_86 = arith.constant dense<0.000000e+00> : vector<16x64xf32>
    %123 = tpu.matmul %120, %122, %cst_86 {dimension_numbers = #tpu.dot_dimension_numbers<[1], [0], [0], [1], [0, 0, 1, 1], [], []>} : vector<16x16xf32>, vector<16x64xf32>, vector<16x64xf32> -> vector<16x64xf32>
    %124 = arith.addf %119, %123 : vector<16x64xf32>
    %125 = vector.extract_strided_slice %110 {offsets = [48, 0], sizes = [16, 16], strides = [1, 1]} : vector<144x16xf32> to vector<16x16xf32>
    %c3_87 = arith.constant 3 : index
    %c0_88 = arith.constant 0 : index
    %c0_89 = arith.constant 0 : index
    %126 = vector.load %arg19[%c3_87, %c0_88, %c0_89] : memref<9x16x64xf32, #tpu.memory_space<vmem>>, vector<1x16x64xf32>
    %127 = vector.shape_cast %126 : vector<1x16x64xf32> to vector<16x64xf32>
    %cst_90 = arith.constant dense<0.000000e+00> : vector<16x64xf32>
    %128 = tpu.matmul %125, %127, %cst_90 {dimension_numbers = #tpu.dot_dimension_numbers<[1], [0], [0], [1], [0, 0, 1, 1], [], []>} : vector<16x16xf32>, vector<16x64xf32>, vector<16x64xf32> -> vector<16x64xf32>
    %129 = arith.addf %124, %128 : vector<16x64xf32>
    %130 = vector.extract_strided_slice %110 {offsets = [64, 0], sizes = [16, 16], strides = [1, 1]} : vector<144x16xf32> to vector<16x16xf32>
    %c4_91 = arith.constant 4 : index
    %c0_92 = arith.constant 0 : index
    %c0_93 = arith.constant 0 : index
    %131 = vector.load %arg19[%c4_91, %c0_92, %c0_93] : memref<9x16x64xf32, #tpu.memory_space<vmem>>, vector<1x16x64xf32>
    %132 = vector.shape_cast %131 : vector<1x16x64xf32> to vector<16x64xf32>
    %cst_94 = arith.constant dense<0.000000e+00> : vector<16x64xf32>
    %133 = tpu.matmul %130, %132, %cst_94 {dimension_numbers = #tpu.dot_dimension_numbers<[1], [0], [0], [1], [0, 0, 1, 1], [], []>} : vector<16x16xf32>, vector<16x64xf32>, vector<16x64xf32> -> vector<16x64xf32>
    %134 = arith.addf %129, %133 : vector<16x64xf32>
    %135 = vector.extract_strided_slice %110 {offsets = [80, 0], sizes = [16, 16], strides = [1, 1]} : vector<144x16xf32> to vector<16x16xf32>
    %c5_95 = arith.constant 5 : index
    %c0_96 = arith.constant 0 : index
    %c0_97 = arith.constant 0 : index
    %136 = vector.load %arg19[%c5_95, %c0_96, %c0_97] : memref<9x16x64xf32, #tpu.memory_space<vmem>>, vector<1x16x64xf32>
    %137 = vector.shape_cast %136 : vector<1x16x64xf32> to vector<16x64xf32>
    %cst_98 = arith.constant dense<0.000000e+00> : vector<16x64xf32>
    %138 = tpu.matmul %135, %137, %cst_98 {dimension_numbers = #tpu.dot_dimension_numbers<[1], [0], [0], [1], [0, 0, 1, 1], [], []>} : vector<16x16xf32>, vector<16x64xf32>, vector<16x64xf32> -> vector<16x64xf32>
    %139 = arith.addf %134, %138 : vector<16x64xf32>
    %140 = vector.extract_strided_slice %110 {offsets = [96, 0], sizes = [16, 16], strides = [1, 1]} : vector<144x16xf32> to vector<16x16xf32>
    %c6_99 = arith.constant 6 : index
    %c0_100 = arith.constant 0 : index
    %c0_101 = arith.constant 0 : index
    %141 = vector.load %arg19[%c6_99, %c0_100, %c0_101] : memref<9x16x64xf32, #tpu.memory_space<vmem>>, vector<1x16x64xf32>
    %142 = vector.shape_cast %141 : vector<1x16x64xf32> to vector<16x64xf32>
    %cst_102 = arith.constant dense<0.000000e+00> : vector<16x64xf32>
    %143 = tpu.matmul %140, %142, %cst_102 {dimension_numbers = #tpu.dot_dimension_numbers<[1], [0], [0], [1], [0, 0, 1, 1], [], []>} : vector<16x16xf32>, vector<16x64xf32>, vector<16x64xf32> -> vector<16x64xf32>
    %144 = arith.addf %139, %143 : vector<16x64xf32>
    %145 = vector.extract_strided_slice %110 {offsets = [112, 0], sizes = [16, 16], strides = [1, 1]} : vector<144x16xf32> to vector<16x16xf32>
    %c7_103 = arith.constant 7 : index
    %c0_104 = arith.constant 0 : index
    %c0_105 = arith.constant 0 : index
    %146 = vector.load %arg19[%c7_103, %c0_104, %c0_105] : memref<9x16x64xf32, #tpu.memory_space<vmem>>, vector<1x16x64xf32>
    %147 = vector.shape_cast %146 : vector<1x16x64xf32> to vector<16x64xf32>
    %cst_106 = arith.constant dense<0.000000e+00> : vector<16x64xf32>
    %148 = tpu.matmul %145, %147, %cst_106 {dimension_numbers = #tpu.dot_dimension_numbers<[1], [0], [0], [1], [0, 0, 1, 1], [], []>} : vector<16x16xf32>, vector<16x64xf32>, vector<16x64xf32> -> vector<16x64xf32>
    %149 = arith.addf %144, %148 : vector<16x64xf32>
    %150 = vector.extract_strided_slice %110 {offsets = [128, 0], sizes = [16, 16], strides = [1, 1]} : vector<144x16xf32> to vector<16x16xf32>
    %c8_107 = arith.constant 8 : index
    %c0_108 = arith.constant 0 : index
    %c0_109 = arith.constant 0 : index
    %151 = vector.load %arg19[%c8_107, %c0_108, %c0_109] : memref<9x16x64xf32, #tpu.memory_space<vmem>>, vector<1x16x64xf32>
    %152 = vector.shape_cast %151 : vector<1x16x64xf32> to vector<16x64xf32>
    %cst_110 = arith.constant dense<0.000000e+00> : vector<16x64xf32>
    %153 = tpu.matmul %150, %152, %cst_110 {dimension_numbers = #tpu.dot_dimension_numbers<[1], [0], [0], [1], [0, 0, 1, 1], [], []>} : vector<16x16xf32>, vector<16x64xf32>, vector<16x64xf32> -> vector<16x64xf32>
    %154 = arith.addf %149, %153 : vector<16x64xf32>
    %c0_111 = arith.constant 0 : index
    %c0_112 = arith.constant 0 : index
    %155 = vector.load %arg20[%c0_111, %c0_112] : memref<16x1xf32, #tpu.memory_space<vmem>>, vector<16x1xf32>
    %156 = vector.broadcast %155 : vector<16x1xf32> to vector<16x64xf32>
    %157 = arith.addf %154, %156 : vector<16x64xf32>
    %c0_113 = arith.constant 0 : index
    %c0_114 = arith.constant 0 : index
    %158 = vector.load %arg21[%c0_113, %c0_114] : memref<16x1xf32, #tpu.memory_space<vmem>>, vector<16x1xf32>
    %159 = vector.broadcast %158 : vector<16x1xf32> to vector<16x64xf32>
    %160 = vector.broadcast %108 : vector<1x64xf32> to vector<16x64xf32>
    %161 = arith.mulf %159, %160 : vector<16x64xf32>
    %162 = arith.addf %157, %161 : vector<16x64xf32>
    %cst_115 = arith.constant 0.000000e+00 : f32
    %163 = vector.broadcast %cst_115 : f32 to vector<16x64xf32>
    %164 = arith.cmpf oge, %162, %163 : vector<16x64xf32>
    %cst_116 = arith.constant 2.000000e-01 : f32
    %165 = vector.broadcast %cst_116 : f32 to vector<16x64xf32>
    %166 = arith.mulf %165, %162 : vector<16x64xf32>
    %167 = arith.select %164, %162, %166 : vector<16x64xi1>, vector<16x64xf32>
    %cst_117 = arith.constant dense<0.000000e+00> : vector<16xf32>
    %168 = vector.multi_reduction <add>, %167, %cst_117 [1] : vector<16x64xf32> to vector<16xf32>
    %169 = vector.shape_cast %168 : vector<16xf32> to vector<16x1xf32>
    %cst_118 = arith.constant 6.400000e+01 : f32
    %170 = vector.broadcast %cst_118 : f32 to vector<16x1xf32>
    %171 = arith.divf %169, %170 : vector<16x1xf32>
    %172 = vector.broadcast %171 : vector<16x1xf32> to vector<16x64xf32>
    %173 = arith.subf %167, %172 : vector<16x64xf32>
    %174 = arith.mulf %173, %173 : vector<16x64xf32>
    %cst_119 = arith.constant dense<0.000000e+00> : vector<16xf32>
    %175 = vector.multi_reduction <add>, %174, %cst_119 [1] : vector<16x64xf32> to vector<16xf32>
    %176 = vector.shape_cast %175 : vector<16xf32> to vector<16x1xf32>
    %cst_120 = arith.constant 6.400000e+01 : f32
    %177 = vector.broadcast %cst_120 : f32 to vector<16x1xf32>
    %178 = arith.divf %176, %177 : vector<16x1xf32>
    %179 = vector.broadcast %171 : vector<16x1xf32> to vector<16x64xf32>
    %180 = arith.subf %167, %179 : vector<16x64xf32>
    %cst_121 = arith.constant 9.99999974E-6 : f32
    %181 = vector.broadcast %cst_121 : f32 to vector<16x1xf32>
    %182 = arith.addf %178, %181 : vector<16x1xf32>
    %183 = math.rsqrt %182 : vector<16x1xf32>
    %184 = vector.broadcast %183 : vector<16x1xf32> to vector<16x64xf32>
    %185 = arith.mulf %180, %184 : vector<16x64xf32>
    %186 = vector.extract_strided_slice %100 {offsets = [32, 0], sizes = [16, 1], strides = [1, 1]} : vector<96x1xf32> to vector<16x1xf32>
    %187 = vector.broadcast %186 : vector<16x1xf32> to vector<16x64xf32>
    %188 = arith.mulf %187, %185 : vector<16x64xf32>
    %189 = vector.extract_strided_slice %100 {offsets = [48, 0], sizes = [16, 1], strides = [1, 1]} : vector<96x1xf32> to vector<16x1xf32>
    %190 = vector.broadcast %189 : vector<16x1xf32> to vector<16x64xf32>
    %191 = arith.addf %188, %190 : vector<16x64xf32>
    %c0_122 = arith.constant 0 : index
    %c0_123 = arith.constant 0 : index
    %192 = vector.load %arg26[%c0_122, %c0_123] : memref<64x256xf32, #tpu.memory_space<vmem>>, vector<64x256xf32>
    %cst_124 = arith.constant dense<0.000000e+00> : vector<16x256xf32>
    %193 = tpu.matmul %191, %192, %cst_124 {dimension_numbers = #tpu.dot_dimension_numbers<[1], [0], [0], [1], [0, 0, 1, 1], [], []>} : vector<16x64xf32>, vector<64x256xf32>, vector<16x256xf32> -> vector<16x256xf32>
    %c0_125 = arith.constant 0 : index
    %c0_126 = arith.constant 0 : index
    %c0_127 = arith.constant 0 : index
    %194 = vector.load %arg4[%c0_125, %c0_126, %c0_127] : memref<1x1x256xf32, #tpu.memory_space<vmem>>, vector<1x1x256xf32>
    %195 = vector.shape_cast %194 : vector<1x1x256xf32> to vector<1x256xf32>
    %c0_128 = arith.constant 0 : index
    %c0_129 = arith.constant 0 : index
    %196 = vector.load %arg22[%c0_128, %c0_129] : memref<144x16xf32, #tpu.memory_space<vmem>>, vector<144x16xf32>
    %cst_130 = arith.constant dense<0.000000e+00> : vector<144x64xf32>
    %197 = tpu.matmul %196, %191, %cst_130 {dimension_numbers = #tpu.dot_dimension_numbers<[1], [0], [0], [1], [0, 0, 1, 1], [], []>} : vector<144x16xf32>, vector<16x64xf32>, vector<144x64xf32> -> vector<144x64xf32>
    %198 = vector.extract_strided_slice %197 {offsets = [0, 0], sizes = [16, 64], strides = [1, 1]} : vector<144x64xf32> to vector<16x64xf32>
    %c0_131 = arith.constant 0 : index
    %c0_132 = arith.constant 0 : index
    %c0_133 = arith.constant 0 : index
    %199 = vector.load %arg23[%c0_131, %c0_132, %c0_133] : memref<9x64x256xf32, #tpu.memory_space<vmem>>, vector<1x64x256xf32>
    %200 = vector.shape_cast %199 : vector<1x64x256xf32> to vector<64x256xf32>
    %cst_134 = arith.constant dense<0.000000e+00> : vector<16x256xf32>
    %201 = tpu.matmul %198, %200, %cst_134 {dimension_numbers = #tpu.dot_dimension_numbers<[1], [0], [0], [1], [0, 0, 1, 1], [], []>} : vector<16x64xf32>, vector<64x256xf32>, vector<16x256xf32> -> vector<16x256xf32>
    %202 = vector.extract_strided_slice %197 {offsets = [16, 0], sizes = [16, 64], strides = [1, 1]} : vector<144x64xf32> to vector<16x64xf32>
    %c1_135 = arith.constant 1 : index
    %c0_136 = arith.constant 0 : index
    %c0_137 = arith.constant 0 : index
    %203 = vector.load %arg23[%c1_135, %c0_136, %c0_137] : memref<9x64x256xf32, #tpu.memory_space<vmem>>, vector<1x64x256xf32>
    %204 = vector.shape_cast %203 : vector<1x64x256xf32> to vector<64x256xf32>
    %cst_138 = arith.constant dense<0.000000e+00> : vector<16x256xf32>
    %205 = tpu.matmul %202, %204, %cst_138 {dimension_numbers = #tpu.dot_dimension_numbers<[1], [0], [0], [1], [0, 0, 1, 1], [], []>} : vector<16x64xf32>, vector<64x256xf32>, vector<16x256xf32> -> vector<16x256xf32>
    %206 = arith.addf %201, %205 : vector<16x256xf32>
    %207 = vector.extract_strided_slice %197 {offsets = [32, 0], sizes = [16, 64], strides = [1, 1]} : vector<144x64xf32> to vector<16x64xf32>
    %c2_139 = arith.constant 2 : index
    %c0_140 = arith.constant 0 : index
    %c0_141 = arith.constant 0 : index
    %208 = vector.load %arg23[%c2_139, %c0_140, %c0_141] : memref<9x64x256xf32, #tpu.memory_space<vmem>>, vector<1x64x256xf32>
    %209 = vector.shape_cast %208 : vector<1x64x256xf32> to vector<64x256xf32>
    %cst_142 = arith.constant dense<0.000000e+00> : vector<16x256xf32>
    %210 = tpu.matmul %207, %209, %cst_142 {dimension_numbers = #tpu.dot_dimension_numbers<[1], [0], [0], [1], [0, 0, 1, 1], [], []>} : vector<16x64xf32>, vector<64x256xf32>, vector<16x256xf32> -> vector<16x256xf32>
    %211 = arith.addf %206, %210 : vector<16x256xf32>
    %212 = vector.extract_strided_slice %197 {offsets = [48, 0], sizes = [16, 64], strides = [1, 1]} : vector<144x64xf32> to vector<16x64xf32>
    %c3_143 = arith.constant 3 : index
    %c0_144 = arith.constant 0 : index
    %c0_145 = arith.constant 0 : index
    %213 = vector.load %arg23[%c3_143, %c0_144, %c0_145] : memref<9x64x256xf32, #tpu.memory_space<vmem>>, vector<1x64x256xf32>
    %214 = vector.shape_cast %213 : vector<1x64x256xf32> to vector<64x256xf32>
    %cst_146 = arith.constant dense<0.000000e+00> : vector<16x256xf32>
    %215 = tpu.matmul %212, %214, %cst_146 {dimension_numbers = #tpu.dot_dimension_numbers<[1], [0], [0], [1], [0, 0, 1, 1], [], []>} : vector<16x64xf32>, vector<64x256xf32>, vector<16x256xf32> -> vector<16x256xf32>
    %216 = arith.addf %211, %215 : vector<16x256xf32>
    %217 = vector.extract_strided_slice %197 {offsets = [64, 0], sizes = [16, 64], strides = [1, 1]} : vector<144x64xf32> to vector<16x64xf32>
    %c4_147 = arith.constant 4 : index
    %c0_148 = arith.constant 0 : index
    %c0_149 = arith.constant 0 : index
    %218 = vector.load %arg23[%c4_147, %c0_148, %c0_149] : memref<9x64x256xf32, #tpu.memory_space<vmem>>, vector<1x64x256xf32>
    %219 = vector.shape_cast %218 : vector<1x64x256xf32> to vector<64x256xf32>
    %cst_150 = arith.constant dense<0.000000e+00> : vector<16x256xf32>
    %220 = tpu.matmul %217, %219, %cst_150 {dimension_numbers = #tpu.dot_dimension_numbers<[1], [0], [0], [1], [0, 0, 1, 1], [], []>} : vector<16x64xf32>, vector<64x256xf32>, vector<16x256xf32> -> vector<16x256xf32>
    %221 = arith.addf %216, %220 : vector<16x256xf32>
    %222 = vector.extract_strided_slice %197 {offsets = [80, 0], sizes = [16, 64], strides = [1, 1]} : vector<144x64xf32> to vector<16x64xf32>
    %c5_151 = arith.constant 5 : index
    %c0_152 = arith.constant 0 : index
    %c0_153 = arith.constant 0 : index
    %223 = vector.load %arg23[%c5_151, %c0_152, %c0_153] : memref<9x64x256xf32, #tpu.memory_space<vmem>>, vector<1x64x256xf32>
    %224 = vector.shape_cast %223 : vector<1x64x256xf32> to vector<64x256xf32>
    %cst_154 = arith.constant dense<0.000000e+00> : vector<16x256xf32>
    %225 = tpu.matmul %222, %224, %cst_154 {dimension_numbers = #tpu.dot_dimension_numbers<[1], [0], [0], [1], [0, 0, 1, 1], [], []>} : vector<16x64xf32>, vector<64x256xf32>, vector<16x256xf32> -> vector<16x256xf32>
    %226 = arith.addf %221, %225 : vector<16x256xf32>
    %227 = vector.extract_strided_slice %197 {offsets = [96, 0], sizes = [16, 64], strides = [1, 1]} : vector<144x64xf32> to vector<16x64xf32>
    %c6_155 = arith.constant 6 : index
    %c0_156 = arith.constant 0 : index
    %c0_157 = arith.constant 0 : index
    %228 = vector.load %arg23[%c6_155, %c0_156, %c0_157] : memref<9x64x256xf32, #tpu.memory_space<vmem>>, vector<1x64x256xf32>
    %229 = vector.shape_cast %228 : vector<1x64x256xf32> to vector<64x256xf32>
    %cst_158 = arith.constant dense<0.000000e+00> : vector<16x256xf32>
    %230 = tpu.matmul %227, %229, %cst_158 {dimension_numbers = #tpu.dot_dimension_numbers<[1], [0], [0], [1], [0, 0, 1, 1], [], []>} : vector<16x64xf32>, vector<64x256xf32>, vector<16x256xf32> -> vector<16x256xf32>
    %231 = arith.addf %226, %230 : vector<16x256xf32>
    %232 = vector.extract_strided_slice %197 {offsets = [112, 0], sizes = [16, 64], strides = [1, 1]} : vector<144x64xf32> to vector<16x64xf32>
    %c7_159 = arith.constant 7 : index
    %c0_160 = arith.constant 0 : index
    %c0_161 = arith.constant 0 : index
    %233 = vector.load %arg23[%c7_159, %c0_160, %c0_161] : memref<9x64x256xf32, #tpu.memory_space<vmem>>, vector<1x64x256xf32>
    %234 = vector.shape_cast %233 : vector<1x64x256xf32> to vector<64x256xf32>
    %cst_162 = arith.constant dense<0.000000e+00> : vector<16x256xf32>
    %235 = tpu.matmul %232, %234, %cst_162 {dimension_numbers = #tpu.dot_dimension_numbers<[1], [0], [0], [1], [0, 0, 1, 1], [], []>} : vector<16x64xf32>, vector<64x256xf32>, vector<16x256xf32> -> vector<16x256xf32>
    %236 = arith.addf %231, %235 : vector<16x256xf32>
    %237 = vector.extract_strided_slice %197 {offsets = [128, 0], sizes = [16, 64], strides = [1, 1]} : vector<144x64xf32> to vector<16x64xf32>
    %c8_163 = arith.constant 8 : index
    %c0_164 = arith.constant 0 : index
    %c0_165 = arith.constant 0 : index
    %238 = vector.load %arg23[%c8_163, %c0_164, %c0_165] : memref<9x64x256xf32, #tpu.memory_space<vmem>>, vector<1x64x256xf32>
    %239 = vector.shape_cast %238 : vector<1x64x256xf32> to vector<64x256xf32>
    %cst_166 = arith.constant dense<0.000000e+00> : vector<16x256xf32>
    %240 = tpu.matmul %237, %239, %cst_166 {dimension_numbers = #tpu.dot_dimension_numbers<[1], [0], [0], [1], [0, 0, 1, 1], [], []>} : vector<16x64xf32>, vector<64x256xf32>, vector<16x256xf32> -> vector<16x256xf32>
    %241 = arith.addf %236, %240 : vector<16x256xf32>
    %c0_167 = arith.constant 0 : index
    %c0_168 = arith.constant 0 : index
    %242 = vector.load %arg24[%c0_167, %c0_168] : memref<16x1xf32, #tpu.memory_space<vmem>>, vector<16x1xf32>
    %243 = vector.broadcast %242 : vector<16x1xf32> to vector<16x256xf32>
    %244 = arith.addf %241, %243 : vector<16x256xf32>
    %c0_169 = arith.constant 0 : index
    %c0_170 = arith.constant 0 : index
    %245 = vector.load %arg25[%c0_169, %c0_170] : memref<16x1xf32, #tpu.memory_space<vmem>>, vector<16x1xf32>
    %246 = vector.broadcast %245 : vector<16x1xf32> to vector<16x256xf32>
    %247 = vector.broadcast %195 : vector<1x256xf32> to vector<16x256xf32>
    %248 = arith.mulf %246, %247 : vector<16x256xf32>
    %249 = arith.addf %244, %248 : vector<16x256xf32>
    %cst_171 = arith.constant 0.000000e+00 : f32
    %250 = vector.broadcast %cst_171 : f32 to vector<16x256xf32>
    %251 = arith.cmpf oge, %249, %250 : vector<16x256xf32>
    %cst_172 = arith.constant 2.000000e-01 : f32
    %252 = vector.broadcast %cst_172 : f32 to vector<16x256xf32>
    %253 = arith.mulf %252, %249 : vector<16x256xf32>
    %254 = arith.select %251, %249, %253 : vector<16x256xi1>, vector<16x256xf32>
    %cst_173 = arith.constant dense<0.000000e+00> : vector<16xf32>
    %255 = vector.multi_reduction <add>, %254, %cst_173 [1] : vector<16x256xf32> to vector<16xf32>
    %256 = vector.shape_cast %255 : vector<16xf32> to vector<16x1xf32>
    %cst_174 = arith.constant 2.560000e+02 : f32
    %257 = vector.broadcast %cst_174 : f32 to vector<16x1xf32>
    %258 = arith.divf %256, %257 : vector<16x1xf32>
    %259 = vector.broadcast %258 : vector<16x1xf32> to vector<16x256xf32>
    %260 = arith.subf %254, %259 : vector<16x256xf32>
    %261 = arith.mulf %260, %260 : vector<16x256xf32>
    %cst_175 = arith.constant dense<0.000000e+00> : vector<16xf32>
    %262 = vector.multi_reduction <add>, %261, %cst_175 [1] : vector<16x256xf32> to vector<16xf32>
    %263 = vector.shape_cast %262 : vector<16xf32> to vector<16x1xf32>
    %cst_176 = arith.constant 2.560000e+02 : f32
    %264 = vector.broadcast %cst_176 : f32 to vector<16x1xf32>
    %265 = arith.divf %263, %264 : vector<16x1xf32>
    %266 = vector.broadcast %258 : vector<16x1xf32> to vector<16x256xf32>
    %267 = arith.subf %254, %266 : vector<16x256xf32>
    %cst_177 = arith.constant 9.99999974E-6 : f32
    %268 = vector.broadcast %cst_177 : f32 to vector<16x1xf32>
    %269 = arith.addf %265, %268 : vector<16x1xf32>
    %270 = math.rsqrt %269 : vector<16x1xf32>
    %271 = vector.broadcast %270 : vector<16x1xf32> to vector<16x256xf32>
    %272 = arith.mulf %267, %271 : vector<16x256xf32>
    %273 = vector.extract_strided_slice %100 {offsets = [64, 0], sizes = [16, 1], strides = [1, 1]} : vector<96x1xf32> to vector<16x1xf32>
    %274 = vector.broadcast %273 : vector<16x1xf32> to vector<16x256xf32>
    %275 = arith.mulf %274, %272 : vector<16x256xf32>
    %276 = vector.extract_strided_slice %100 {offsets = [80, 0], sizes = [16, 1], strides = [1, 1]} : vector<96x1xf32> to vector<16x1xf32>
    %277 = vector.broadcast %276 : vector<16x1xf32> to vector<16x256xf32>
    %278 = arith.addf %275, %277 : vector<16x256xf32>
    %c0_178 = arith.constant 0 : index
    %c0_179 = arith.constant 0 : index
    %279 = vector.load %arg29[%c0_178, %c0_179] : memref<3x16xf32, #tpu.memory_space<vmem>>, vector<3x16xf32>
    %cst_180 = arith.constant dense<0.000000e+00> : vector<3x256xf32>
    %280 = tpu.matmul %279, %278, %cst_180 {dimension_numbers = #tpu.dot_dimension_numbers<[1], [0], [0], [1], [0, 0, 1, 1], [], []>} : vector<3x16xf32>, vector<16x256xf32>, vector<3x256xf32> -> vector<3x256xf32>
    %c0_181 = arith.constant 0 : index
    %c0_182 = arith.constant 0 : index
    %281 = vector.load %arg30[%c0_181, %c0_182] : memref<3x1xf32, #tpu.memory_space<vmem>>, vector<3x1xf32>
    %282 = vector.broadcast %281 : vector<3x1xf32> to vector<3x256xf32>
    %283 = arith.addf %280, %282 : vector<3x256xf32>
    %c0_183 = arith.constant 0 : index
    %c0_184 = arith.constant 0 : index
    %284 = vector.load %arg27[%c0_183, %c0_184] : memref<3x16xf32, #tpu.memory_space<vmem>>, vector<3x16xf32>
    %cst_185 = arith.constant dense<0.000000e+00> : vector<3x256xf32>
    %285 = tpu.matmul %284, %193, %cst_185 {dimension_numbers = #tpu.dot_dimension_numbers<[1], [0], [0], [1], [0, 0, 1, 1], [], []>} : vector<3x16xf32>, vector<16x256xf32>, vector<3x256xf32> -> vector<3x256xf32>
    %c0_186 = arith.constant 0 : index
    %c0_187 = arith.constant 0 : index
    %286 = vector.load %arg28[%c0_186, %c0_187] : memref<3x1xf32, #tpu.memory_space<vmem>>, vector<3x1xf32>
    %287 = vector.broadcast %286 : vector<3x1xf32> to vector<3x256xf32>
    %288 = arith.addf %285, %287 : vector<3x256xf32>
    %289 = arith.subf %283, %288 : vector<3x256xf32>
    %cst_188 = arith.constant 2.000000e-01 : f32
    %290 = vector.broadcast %cst_188 : f32 to vector<3x256xf32>
    %291 = arith.mulf %290, %289 : vector<3x256xf32>
    %292 = arith.addf %288, %291 : vector<3x256xf32>
    %c0_189 = arith.constant 0 : index
    %c0_190 = arith.constant 0 : index
    %c0_191 = arith.constant 0 : index
    %293 = vector.load %arg31[%c0_189, %c0_190, %c0_191] : memref<1x3x256xf32, #tpu.memory_space<vmem>>, vector<1x3x256xf32>
    %294 = vector.shape_cast %293 : vector<1x3x256xf32> to vector<3x256xf32>
    %295 = vector.shape_cast %292 : vector<3x256xf32> to vector<1x3x256xf32>
    tpu.vector_store %arg31[%c0_189, %c0_190, %c0_191], %295 {strides = array<i32>} : memref<1x3x256xf32, #tpu.memory_space<vmem>>, vector<1x3x256xf32>,
    return
  }
  func.func @transform_0(%arg0: i32) -> (i32, i32, i32) {
    %c0_i32 = arith.constant 0 : i32
    %c0_i32_0 = arith.constant 0 : i32
    %c0_i32_1 = arith.constant 0 : i32
    return %arg0, %c0_i32, %c0_i32_0 : i32, i32, i32
  }
  func.func @transform_1(%arg0: i32) -> (i32, i32) {
    %c0_i32 = arith.constant 0 : i32
    %c0_i32_0 = arith.constant 0 : i32
    %c0_i32_1 = arith.constant 0 : i32
    return %c0_i32, %c0_i32_0 : i32, i32
  }
  func.func @transform_2(%arg0: i32) -> (i32, i32, i32) {
    %c0_i32 = arith.constant 0 : i32
    %c0_i32_0 = arith.constant 0 : i32
    %c0_i32_1 = arith.constant 0 : i32
    return %arg0, %c0_i32, %c0_i32_0 : i32, i32, i32
  }
  func.func @transform_3(%arg0: i32) -> (i32, i32, i32) {
    %c0_i32 = arith.constant 0 : i32
    %c0_i32_0 = arith.constant 0 : i32
    %c0_i32_1 = arith.constant 0 : i32
    return %arg0, %c0_i32, %c0_i32_0 : i32, i32, i32
  }
  func.func @transform_4(%arg0: i32) -> (i32, i32) {
    %c0_i32 = arith.constant 0 : i32
    %c0_i32_0 = arith.constant 0 : i32
    %c0_i32_1 = arith.constant 0 : i32
    return %c0_i32, %c0_i32_0 : i32, i32
  }
  func.func @transform_5(%arg0: i32) -> (i32, i32) {
    %c0_i32 = arith.constant 0 : i32
    %c0_i32_0 = arith.constant 0 : i32
    %c0_i32_1 = arith.constant 0 : i32
    return %c0_i32, %c0_i32_0 : i32, i32
  }
  func.func @transform_6(%arg0: i32) -> (i32, i32) {
    %c0_i32 = arith.constant 0 : i32
    %c0_i32_0 = arith.constant 0 : i32
    %c0_i32_1 = arith.constant 0 : i32
    return %c0_i32, %c0_i32_0 : i32, i32
  }
  func.func @transform_7(%arg0: i32) -> (i32, i32) {
    %c0_i32 = arith.constant 0 : i32
    %c0_i32_0 = arith.constant 0 : i32
    %c0_i32_1 = arith.constant 0 : i32
    return %c0_i32, %c0_i32_0 : i32, i32
  }
  func.func @transform_8(%arg0: i32) -> (i32, i32) {
    %c0_i32 = arith.constant 0 : i32
    %c0_i32_0 = arith.constant 0 : i32
    %c0_i32_1 = arith.constant 0 : i32
    return %c0_i32, %c0_i32_0 : i32, i32
  }
  func.func @transform_9(%arg0: i32) -> (i32, i32) {
    %c0_i32 = arith.constant 0 : i32
    %c0_i32_0 = arith.constant 0 : i32
    %c0_i32_1 = arith.constant 0 : i32
    return %c0_i32, %c0_i32_0 : i32, i32
  }
  func.func @transform_10(%arg0: i32) -> (i32, i32) {
    %c0_i32 = arith.constant 0 : i32
    %c0_i32_0 = arith.constant 0 : i32
    %c0_i32_1 = arith.constant 0 : i32
    return %c0_i32, %c0_i32_0 : i32, i32
  }
  func.func @transform_11(%arg0: i32) -> (i32, i32) {
    %c0_i32 = arith.constant 0 : i32
    %c0_i32_0 = arith.constant 0 : i32
    %c0_i32_1 = arith.constant 0 : i32
    return %c0_i32, %c0_i32_0 : i32, i32
  }
  func.func @transform_12(%arg0: i32) -> (i32, i32) {
    %c0_i32 = arith.constant 0 : i32
    %c0_i32_0 = arith.constant 0 : i32
    %c0_i32_1 = arith.constant 0 : i32
    return %c0_i32, %c0_i32_0 : i32, i32
  }
  func.func @transform_13(%arg0: i32) -> (i32, i32) {
    %c0_i32 = arith.constant 0 : i32
    %c0_i32_0 = arith.constant 0 : i32
    %c0_i32_1 = arith.constant 0 : i32
    return %c0_i32, %c0_i32_0 : i32, i32
  }
  func.func @transform_14(%arg0: i32) -> (i32, i32, i32) {
    %c0_i32 = arith.constant 0 : i32
    %c0_i32_0 = arith.constant 0 : i32
    %c0_i32_1 = arith.constant 0 : i32
    %c0_i32_2 = arith.constant 0 : i32
    return %c0_i32, %c0_i32_0, %c0_i32_1 : i32, i32, i32
  }
  func.func @transform_15(%arg0: i32) -> (i32, i32) {
    %c0_i32 = arith.constant 0 : i32
    %c0_i32_0 = arith.constant 0 : i32
    %c0_i32_1 = arith.constant 0 : i32
    return %c0_i32, %c0_i32_0 : i32, i32
  }
  func.func @transform_16(%arg0: i32) -> (i32, i32) {
    %c0_i32 = arith.constant 0 : i32
    %c0_i32_0 = arith.constant 0 : i32
    %c0_i32_1 = arith.constant 0 : i32
    return %c0_i32, %c0_i32_0 : i32, i32
  }
  func.func @transform_17(%arg0: i32) -> (i32, i32) {
    %c0_i32 = arith.constant 0 : i32
    %c0_i32_0 = arith.constant 0 : i32
    %c0_i32_1 = arith.constant 0 : i32
    return %c0_i32, %c0_i32_0 : i32, i32
  }
  func.func @transform_18(%arg0: i32) -> (i32, i32, i32) {
    %c0_i32 = arith.constant 0 : i32
    %c0_i32_0 = arith.constant 0 : i32
    %c0_i32_1 = arith.constant 0 : i32
    %c0_i32_2 = arith.constant 0 : i32
    return %c0_i32, %c0_i32_0, %c0_i32_1 : i32, i32, i32
  }
  func.func @transform_19(%arg0: i32) -> (i32, i32) {
    %c0_i32 = arith.constant 0 : i32
    %c0_i32_0 = arith.constant 0 : i32
    %c0_i32_1 = arith.constant 0 : i32
    return %c0_i32, %c0_i32_0 : i32, i32
  }
  func.func @transform_20(%arg0: i32) -> (i32, i32) {
    %c0_i32 = arith.constant 0 : i32
    %c0_i32_0 = arith.constant 0 : i32
    %c0_i32_1 = arith.constant 0 : i32
    return %c0_i32, %c0_i32_0 : i32, i32
  }
  func.func @transform_21(%arg0: i32) -> (i32, i32) {
    %c0_i32 = arith.constant 0 : i32
    %c0_i32_0 = arith.constant 0 : i32
    %c0_i32_1 = arith.constant 0 : i32
    return %c0_i32, %c0_i32_0 : i32, i32
  }
  func.func @transform_22(%arg0: i32) -> (i32, i32, i32) {
    %c0_i32 = arith.constant 0 : i32
    %c0_i32_0 = arith.constant 0 : i32
    %c0_i32_1 = arith.constant 0 : i32
    %c0_i32_2 = arith.constant 0 : i32
    return %c0_i32, %c0_i32_0, %c0_i32_1 : i32, i32, i32
  }
  func.func @transform_23(%arg0: i32) -> (i32, i32) {
    %c0_i32 = arith.constant 0 : i32
    %c0_i32_0 = arith.constant 0 : i32
    %c0_i32_1 = arith.constant 0 : i32
    return %c0_i32, %c0_i32_0 : i32, i32
  }
  func.func @transform_24(%arg0: i32) -> (i32, i32) {
    %c0_i32 = arith.constant 0 : i32
    %c0_i32_0 = arith.constant 0 : i32
    %c0_i32_1 = arith.constant 0 : i32
    return %c0_i32, %c0_i32_0 : i32, i32
  }
  func.func @transform_25(%arg0: i32) -> (i32, i32) {
    %c0_i32 = arith.constant 0 : i32
    %c0_i32_0 = arith.constant 0 : i32
    %c0_i32_1 = arith.constant 0 : i32
    return %c0_i32, %c0_i32_0 : i32, i32
  }
  func.func @transform_26(%arg0: i32) -> (i32, i32) {
    %c0_i32 = arith.constant 0 : i32
    %c0_i32_0 = arith.constant 0 : i32
    %c0_i32_1 = arith.constant 0 : i32
    return %c0_i32, %c0_i32_0 : i32, i32
  }
  func.func @transform_27(%arg0: i32) -> (i32, i32) {
    %c0_i32 = arith.constant 0 : i32
    %c0_i32_0 = arith.constant 0 : i32
    %c0_i32_1 = arith.constant 0 : i32
    return %c0_i32, %c0_i32_0 : i32, i32
  }
  func.func @transform_28(%arg0: i32) -> (i32, i32) {
    %c0_i32 = arith.constant 0 : i32
    %c0_i32_0 = arith.constant 0 : i32
    %c0_i32_1 = arith.constant 0 : i32
    return %c0_i32, %c0_i32_0 : i32, i32
  }
  func.func @transform_29(%arg0: i32) -> (i32, i32) {
    %c0_i32 = arith.constant 0 : i32
    %c0_i32_0 = arith.constant 0 : i32
    %c0_i32_1 = arith.constant 0 : i32
    return %c0_i32, %c0_i32_0 : i32, i32
  }
  func.func @transform_30(%arg0: i32) -> (i32, i32, i32) {
    %c0_i32 = arith.constant 0 : i32
    %c0_i32_0 = arith.constant 0 : i32
    %c0_i32_1 = arith.constant 0 : i32
    return %arg0, %c0_i32, %c0_i32_0 : i32, i32, i32
  }
}

</mosaic_0001>

<bundles_post_ra>
// kernel: micro_stylegan_forward.1
= control target key start
LH: loop header
LB: loop body
LE: loop exit
PB: predicated region body
PF: predicated region fallthrough
CT: control target
= control target key end

     0   :  { %s3906_s6 = smov 1   ;;  %s3907_s10 = smov 2   ;;  %s4547_s0 = inlined_call_operand.smem [shape: u32[31], index: -1, kind: input, shape index: {}] }
   0x1   :  { %s3951_s5 = sld [smem:[%s4547_s0]]   ;;  %s3908_s14 = smov 3  }
   0x2   :  { %s3956_s9 = sld [smem:[%s4547_s0 + %s3906_s6]]   ;;  %s3909_s18 = smov 4  }
   0x3   :  { %s3961_s13 = sld [smem:[%s4547_s0 + %s3907_s10]]   ;;  %s3910_s22 = smov 5  }
   0x4   :  { %s3966_s17 = sld [smem:[%s4547_s0 + %s3908_s14]]   ;;  %s3911_s26 = smov 6  }
   0x5   :  { %s3971_s21 = sld [smem:[%s4547_s0 + %s3909_s18]]   ;;  %s3912_s30 = smov 7  }
   0x6   :  { %s3976_s25 = sld [smem:[%s4547_s0 + %s3910_s22]]   ;;  %s3913_s4 = smov 8  }
   0x7   :  { %s3981_s29 = sld [smem:[%s4547_s0 + %s3911_s26]]   ;;  %s3914_s10 = smov 9  }
   0x8   :  { %s3986_s3 = sld [smem:[%s4547_s0 + %s3912_s30]]   ;;  %s3915_s15 = smov 10  }
   0x9   :  { %s3991_s8 = sld [smem:[%s4547_s0 + %s3913_s4]]   ;;  %s3916_s20 = smov 11  }
   0xa   :  { %4563 = sst [smem:[#allocation5_spill]] %s3966_s17  ;;  %s3917_s26 = smov 12  }
   0xb   :  { %s3996_s14 = sld [smem:[%s4547_s0 + %s3914_s10]]   ;;  %s3918_s1 = smov 13  }
   0xc   :  { %s4001_s19 = sld [smem:[%s4547_s0 + %s3915_s15]]   ;;  %s3919_s7 = smov 14  }
   0xd   :  { %s4006_s24 = sld [smem:[%s4547_s0 + %s3916_s20]]   ;;  %s3920_s15 = smov 15  }
   0xe   :  { %4564 = sst [smem:[#allocation6_spill]] %s3986_s3  ;;  %s3921_s22 = smov 16  }
   0xf   :  { %4565 = sst [smem:[#allocation7_spill]] %s3991_s8  ;;  %s3922_s28 = smov 17  }
  0x10   :  { %s4011_s30 = sld [smem:[%s4547_s0 + %s3917_s26]]  }
  0x11   :  { %4566 = sst [smem:[#allocation8_spill]] %s3996_s14 }
  0x12   :  { %4567 = sst [smem:[#allocation9_spill]] %s4001_s19 }
  0x13   :  { %4568 = sst [smem:[#allocation10_spill]] %s4006_s24 }
  0x14   :  { %s4016_s6 = sld [smem:[%s4547_s0 + %s3918_s1]]  }
  0x15   :  { %s4021_s12 = sld [smem:[%s4547_s0 + %s3919_s7]]   ;;  %s3923_s7 = smov 18  }
  0x16   :  { %s4026_s20 = sld [smem:[%s4547_s0 + %s3920_s15]]   ;;  %s3924_s15 = smov 19  }
  0x17   :  { %s4031_s27 = sld [smem:[%s4547_s0 + %s3921_s22]]   ;;  %s3925_s22 = smov 20  }
  0x18   :  { %s4036_s4 = sld [smem:[%s4547_s0 + %s3922_s28]]   ;;  %s3926_s28 = smov 21  }
  0x19   :  { %s4041_s17 = sld [smem:[%s4547_s0 + %s3923_s7]]   ;;  %s3927_s7 = smov 22  }
  0x1a   :  { %s4046_s24 = sld [smem:[%s4547_s0 + %s3924_s15]]   ;;  %s3928_s15 = smov 23  }
  0x1b   :  { %s4051_s19 = sld [smem:[%s4547_s0 + %s3925_s22]]   ;;  %s3929_s22 = smov 24  }
  0x1c   :  { %s4066_s14 = sld [smem:[%s4547_s0 + %s3928_s15]]   ;;  %s3932_s15 = smov 27  }
  0x1d   :  { %s4071_s8 = sld [smem:[%s4547_s0 + %s3929_s22]]   ;;  %s3933_s22 = smov 28  }
  0x1e   :  { %4569 = sst [smem:[#allocation11_spill]] %s4036_s4 }
  0x1f   :  { %4570 = sst [smem:[#allocation12_spill]] %s4041_s17 }
  0x20   :  { %s4056_s4 = sld [smem:[%s4547_s0 + %s3926_s28]]   ;;  %s3930_s28 = smov 25  }
  0x21   :  { %4571 = sst [smem:[#allocation13_spill]] %s4051_s19 }
  0x22   :  { %s4061_s17 = sld [smem:[%s4547_s0 + %s3927_s7]]   ;;  %s3931_s7 = smov 26  }
  0x23   :  { %4573 = sst [smem:[#allocation15_spill]] %s4066_s14 }
  0x24   :  { %4574 = sst [smem:[#allocation16_spill]] %s4071_s8 }
  0x25   :  { %s4081_s19 = sld [smem:[%s4547_s0 + %s3931_s7]]   ;;  %s3935_s7 = smov 30  }
  0x26   :  { %4572 = sst [smem:[#allocation14_spill]] %s4056_s4 }
  0x27   :  { %s4076_s4 = sld [smem:[%s4547_s0 + %s3930_s28]]   ;;  %s3934_s28 = smov 29  }
  0x28   :  { %s4086_s14 = sld [smem:[%s4547_s0 + %s3932_s15]]  }
  0x29   :  { %s4091_s8 = sld [smem:[%s4547_s0 + %s3933_s22]]  }
  0x2b   :  { %4576 = sst [smem:[#allocation18_spill]] %s4081_s19 }
  0x2c   :  { %s4101_s19 = sld [smem:[%s4547_s0 + %s3935_s7]]  }
  0x2d   :  { %4575 = sst [smem:[#allocation17_spill]] %s4076_s4 }
  0x2e   :  { %s4096_s4 = sld [smem:[%s4547_s0 + %s3934_s28]]  }
  0x2f   :  { %66 = vsyncpa [#allocation3], 0  ;;  %s4103_s15 = smov 0  }
  0x30 LB: > { %s4577_s3 = sld [smem:[#allocation6_spill]]  ;;  %s816_s16 = sshll.u32 %s4061_s17, 4  ;;  %s3904_s15 = sphi %s4103_s15, %s72_s15   ;;  %s817_s16 = int_to_ptr.hbm [resolvable:$true] %s816_s16 }
  0x31   : > { %s4110_s18 = sadd.s32 4294967295, %s3904_s15   ;;  %p3584_p0 = scmp.ge.s32.totalorder %s3904_s15, 1 }
  0x32   : > { %p748_p1 = scmp.lt.s32.totalorder %s3904_s15, 3  ;;  %p3794_p2 = scmp.eq.s32.totalorder %s4110_s18, 0 }
  0x33   : > { %s3936_s22 = smov [#allocation2]   ;;  %s3864_s28 = sshra.s32 %s817_s16, 4  ;;  %s3865_s28 = int_to_ptr.hbm [resolvable:$true] %s3864_s28 }
  0x34   : > { %p4115_p3 = pnand %p3584_p0, %p748_p1  ;;  %s818_s23 = sshll.u32 %s3936_s22, 4  ;;  %s819_s23 = int_to_ptr.vmem [resolvable:$true] %s818_s23 }
  0x35   : > { %s3866_s1 = scalar_lea.hbm %s3865_s28, 1152  ;;  %s3871_s2 = scalar_lea.hbm %s4061_s17, 1152 }
  0x36   : > { %p3790_p4 = pneg %p4115_p3  ;;  %p3867_p6 = scmp.ne.s32.totalorder %s3865_s28, %s3866_s1 }
  0x37   : > { %p3872_p10 = scmp.lt.s32.totalorder %s3865_s28, %s4061_s17  ;;  %p3873_p11 = scmp.lt.s32.totalorder %s3871_s2, %s3866_s1 }
  0x38   : > { %p4123_p5 = pnand %p3794_p2, %p3790_p4 }
  0x39   : > { %p3874_p12 = por %p3873_p11, %p3872_p10 }
  0x3a   : > { %p3868_p7 = pneg %p4123_p5 }
  0x3c   : > { %p3869_p8 = pnand %p3868_p7, %p3867_p6 }
  0x3e   : > { %p3870_p9 = pneg %p3869_p8 }
  0x40   : > { %p3875_p13 = pnand %p3874_p12, %p3870_p9 }
  0x42   : > { %3878 = shalt.err (!%p3875_p13)
}
  0x43   : > { %s3937_s7 = smov 256   ;;  %s3938_s10 = smov 16  }
  0x44   : > { %3793 = dma.hbm_to_vmem [thread:$0]  (!%p4123_p5), %s817_s16, 18432, %s819_s23, [#allocation3], %s3937_s7, %s3937_s7, %s3938_s10  }
  0x45   : > { %875 = sbr.rel (%p4115_p3) target bundleno = 2553 (0x9f9), region = 140 }
  0x4a   : > { %3899 = dma.done.wait (%p3794_p2), [#allocation3], 18432  }
  0x4b   : > { %3901 = vsyncadd (%p3794_p2), [#allocation3], 4294948864  ;;  %v977_v0 = vld [vmem:[%s4011_s30 + $0x8] sm:$0xff]  ;;  %v976_v1 = vld [vmem:[%s4011_s30] sm:$0xff]  ;;  %vm997_vm0 = vcmask 130048   ;;  %p960_p0 = scmp.lt.s32.totalorder %s4110_s18, 1 }
  0x4c   : > { %1066 = vmatpush.msra.mxu0 %v977_v0  ;;  %v979_v2 = vld [vmem:[%s4016_s6] sm:$0xff]  ;;  %v980_v3 = vld [vmem:[%s4016_s6 + $0x8] sm:$0xff]  ;;  %v981_v4 = vld [vmem:[%s4016_s6 + $0x10] sm:$0xff]  ;;  %v3939_v54 = vmov 0   ;;  %vm1523_vm1 = vcmask 64512   ;;  %vm1577_vm2 = vcmask 261120  }
  0x4d   : > { %v982_v5 = vld [vmem:[%s4016_s6 + $0x18] sm:$0xff]  ;;  %v983_v6 = vld [vmem:[%s4016_s6 + $0x20] sm:$0xff]  ;;  %v984_v7 = vld [vmem:[%s4016_s6 + $0x28] sm:$0xff]  ;;  %s4595_s18 = smov (!%p960_p0, %s4110_s18), 1  ;;  %3842 = vset.pattern.permute.xlu1 %v3939_v54  ;;  %3841 = vset.pattern.permute.xlu0 %v3939_v54  ;;  %s4580_s0 = sld [smem:[#allocation13_spill]]  ;;  %vm2277_vm13 = vcmask 523264  }
  0x4e   : > { %1067 = vmatpush.msra.mxu0 %v976_v1  ;;  %v985_v8 = vld [vmem:[%s4016_s6 + $0x30] sm:$0xff]  ;;  %v986_v9 = vld [vmem:[%s4016_s6 + $0x38] sm:$0xff]  ;;  %v987_v10 = vld [vmem:[%s4016_s6 + $0x40] sm:$0xff]  ;;  %s4559_s11 = sshll.u32 %s4595_s18, 3  ;;  %3843 = vset.pattern.permute.xlu2 %v3939_v54  ;;  %s966_s22 = scalar_lea.vmem %s3961_s13, %s4595_s18 }
  0x4f   : > { %3593 = vmatmul.msk.f32.vlgmr.msra.gmra.mxu0 %vm997_vm0, %v979_v2  ;;  %v988_v11 = vld [vmem:[%s4016_s6 + $0x48] sm:$0xff]  ;;  %v989_v12 = vld [vmem:[%s4016_s6 + $0x50] sm:$0xff]  ;;  %v990_v13 = vld [vmem:[%s4016_s6 + $0x58] sm:$0xff]  ;;  %s963_s16 = scalar_lea.vmem %s3951_s5, %s4559_s11  ;;  %s4581_s23 = sld [smem:[#allocation7_spill]] }
  0x50   : > { %v1124_v14 = vld [vmem:[%s4021_s12 + $0x8] sm:$0xff]  ;;  %v1123_v15 = vld [vmem:[%s4021_s12] sm:$0xff]  ;;  %v3612_v18 = vld [vmem:[%s4021_s12 + $0x18] sm:$0xff]  ;;  %s4582_s26 = sld [smem:[#allocation8_spill]] }
  0x51   : > { %1177 = vmatpush.msra.mxu2 %v1124_v14  ;;  %v991_v16 = vld [vmem:[%s4016_s6 + $0x60] sm:$0xff]  ;;  %v992_v17 = vld [vmem:[%s4016_s6 + $0x68] sm:$0xff]  ;;  %1148 = vmatpush.msra.mxu1 %v3612_v18  ;;  %v3611_v19 = vld [vmem:[%s4021_s12 + $0x10] sm:$0xff]  ;;  %s4583_s28 = sld [smem:[#allocation9_spill]] }
  0x52   : > { %v993_v20 = vld [vmem:[%s4016_s6 + $0x70] sm:$0xff]  ;;  %v994_v21 = vld [vmem:[%s4016_s6 + $0x78] sm:$0xff]  ;;  %v3618_v22 = vld [vmem:[%s4021_s12 + $0x28] sm:$0xff]  ;;  %s4584_s1 = sld [smem:[#allocation10_spill]] }
  0x53   : > { %1178 = vmatpush.msra.mxu2 %v1123_v15  ;;  %1149 = vmatpush.msra.mxu1 %v3611_v19  ;;  %v3617_v23 = vld [vmem:[%s4021_s12 + $0x20] sm:$0xff]  ;;  %v996_v27 = vld [vmem:[%s4016_s6 + $0x88] sm:$0xff]  ;;  %v3622_v28 = vld [vmem:[%s4021_s12 + $0x38] sm:$0xff]  ;;  %s4585_s2 = sld [smem:[#allocation11_spill]] }
  0x54   : > { %3784 = vmatpush.msra.mxu3 %v3618_v22  ;;  %v995_v25 = vld [vmem:[%s4016_s6 + $0x80] sm:$0xff]  ;;  %v3621_v29 = vld [vmem:[%s4021_s12 + $0x30] sm:$0xff]  ;;  %v3626_v32 = vld [vmem:[%s4021_s12 + $0x48] sm:$0xff]  ;;  %s4586_s7 = sld [smem:[#allocation12_spill]] }
  0x55   : > { %1209 = vmatpush.msrb.mxu2 %v3618_v22  ;;  %1243 = vmatpush.msrb.mxu1 %v3622_v28  ;;  %v3625_v33 = vld [vmem:[%s4021_s12 + $0x40] sm:$0xff]  ;;  %v3630_v36 = vld [vmem:[%s4021_s12 + $0x58] sm:$0xff]  ;;  %v3629_v37 = vld [vmem:[%s4021_s12 + $0x50] sm:$0xff]  ;;  %s4587_s10 = sld [smem:[#allocation15_spill]] }
  0x56   : > { %3785 = vmatpush.msra.mxu3 %v3617_v23  ;;  %v3634_v40 = vld [vmem:[%s4021_s12 + $0x68] sm:$0xff]  ;;  %v3633_v41 = vld [vmem:[%s4021_s12 + $0x60] sm:$0xff]  ;;  %v3638_v44 = vld [vmem:[%s4021_s12 + $0x78] sm:$0xff]  ;;  %s4590_s11 = sld [smem:[#allocation14_spill]] }
  0x57   : > { %3594 = vmatmul.msk.f32.gmra.mxu0 %vm997_vm0, %v980_v3  ;;  %1210 = vmatpush.msrb.mxu2 %v3617_v23  ;;  %v3637_v45 = vld [vmem:[%s4021_s12 + $0x70] sm:$0xff]  ;;  %v1518_v46 = vld [vmem:[%s963_s16] sm:$0xff]  ;;  %v3642_v49 = vld [vmem:[%s4021_s12 + $0x88] sm:$0xff]  ;;  %s4588_s16 = sld [smem:[#allocation16_spill]] }
  0x58   : > { %1244 = vmatpush.msrb.mxu1 %v3621_v29  ;;  %1311 = vmatpush.msrb.mxu3 %v3630_v36  ;;  %v3641_v50 = vld [vmem:[%s4021_s12 + $0x80] sm:$0xff]  ;;  %v1425_v56 = vld [vmem:[%s4026_s20 + $0x8] sm:$0xff]  ;;  %v1516_v62 = vld [vmem:[%s3971_s21 + $0x10] sm:$0xff] }
  0x59   : > { %v1424_v53 = vld [vmem:[%s4026_s20] sm:$0xff]  ;;  %1433 = vperm.xlu0 %3841, %v1425_v56   ;;  %v1515_v59 = vld [vmem:[%s3971_s21 + $0x8] sm:$0xff]  ;;  %v1517_v0 = vld [vmem:[%s3971_s21 + $0x18] sm:$0xff] }
  0x5a   : > { %1312 = vmatpush.msrb.mxu3 %v3629_v37  ;;  %1428 = vperm.xlu1 %3842, %v1424_v53   ;;  %v1514_v55 = vld [vmem:[%s3971_s21] sm:$0xff]  ;;  %v1439_v60 = vld [vmem:[%s4031_s27 + $0x8] sm:$0xff]  ;;  %v1521_v29 = vld [vmem:[%s3976_s25 + $0x10] sm:$0xff] }
  0x5b   : > { %v1438_v58 = vld [vmem:[%s4031_s27] sm:$0xff] }
  0x5f   : > { %3595 = vmatmul.msk.f32.gmra.mxu0 %vm997_vm0, %v981_v4 }
  0x61   : > { %1447 = vperm.xlu0 %3841, %v1439_v60  }
  0x62   : > { %1442 = vperm.xlu1 %3842, %v1438_v58  }
  0x67   : > { %3596 = vmatmul.msk.f32.gmra.mxu0 %vm997_vm0, %v982_v5 }
  0x6f   : > { %3597 = vmatmul.msk.f32.gmra.mxu0 %vm997_vm0, %v983_v6 }
  0x77   : > { %3598 = vmatmul.msk.f32.gmra.mxu0 %vm997_vm0, %v984_v7 }
  0x7f   : > { %3599 = vmatmul.msk.f32.gmra.mxu0 %vm997_vm0, %v985_v8 }
  0x87   : > { %3600 = vmatmul.msk.f32.gmra.mxu0 %vm997_vm0, %v986_v9 }
  0x8f   : > { %3601 = vmatmul.msk.f32.gmra.mxu0 %vm997_vm0, %v987_v10 }
  0x97   : > { %3602 = vmatmul.msk.f32.gmra.mxu0 %vm997_vm0, %v988_v11 }
  0x9f   : > { %3603 = vmatmul.msk.f32.gmra.mxu0 %vm997_vm0, %v989_v12 }
  0xa7   : > { %3604 = vmatmul.msk.f32.gmra.mxu0 %vm997_vm0, %v990_v13 }
  0xaf   : > { %3605 = vmatmul.msk.f32.gmra.mxu0 %vm997_vm0, %v991_v16 }
  0xb7   : > { %3606 = vmatmul.msk.f32.gmra.mxu0 %vm997_vm0, %v992_v17 }
  0xbf   : > { %3607 = vmatmul.msk.f32.gmra.mxu0 %vm997_vm0, %v993_v20 }
  0xc7   : > { %3608 = vmatmul.msk.f32.gmra.mxu0 %vm997_vm0, %v994_v21 }
  0xcb   : > { %v1434_v23 = vpop.permute.xlu0 %1433 }
  0xcc   : > { %v1069_v24 = vpop.f32.mrf.mxu0 }
  0xcd   : > { %3615 = vmatmul.msk.f32.vlgmr.msra.gmra.mxu2 %vm997_vm0, %v1069_v24 }
  0xce   : > { %1277 = vmatpush.msra.mxu2 %v3626_v32 }
  0xcf   : > { %3609 = vmatmul.msk.f32.gmra.mxu0 %vm997_vm0, %v995_v25 }
  0xd0   : > { %1278 = vmatpush.msra.mxu2 %v3625_v33 }
  0xd4   : > { %v1072_v26 = vpop.f32.mrf.mxu0 }
  0xd5   : > { %3616 = vmatmul.msk.f32.gmra.mxu2 %vm997_vm0, %v1072_v26  ;;  %v1429_v26 = vpop.permute.xlu1 %1428 }
  0xd7   : > { %3610 = vmatmul.msk.f32.gmra.mxu0 %vm997_vm0, %v996_v27 }
  0xdc   : > { %v1075_v30 = vpop.f32.mrf.mxu0 }
  0xdd   : > { %3613 = vmatmul.msk.f32.vlgmr.msra.gmra.mxu1 %vm997_vm0, %v1075_v30 }
  0xde   : > { %1345 = vmatpush.msra.mxu1 %v3634_v40  ;;  %v1519_v40 = vld [vmem:[%s3976_s25] sm:$0xff] }
  0xe0   : > { %1346 = vmatpush.msra.mxu1 %v3633_v41 }
  0xe4   : > { %v1078_v31 = vpop.f32.mrf.mxu0 }
  0xe5   : > { %3614 = vmatmul.msk.f32.gmra.mxu1 %vm997_vm0, %v1078_v31  ;;  %v1522_v31 = vld [vmem:[%s3976_s25 + $0x18] sm:$0xff] }
  0xec   : > { %v1081_v34 = vpop.f32.mrf.mxu0 }
  0xed   : > { %3619 = vmatmul.msk.f32.vlgmr.msrb.gmra.mxu2 %vm997_vm0, %v1081_v34  ;;  %v1520_v34 = vld [vmem:[%s3976_s25 + $0x8] sm:$0xff] }
  0xee   : > { %1379 = vmatpush.msrb.mxu2 %v3638_v44 }
  0xf0   : > { %1380 = vmatpush.msrb.mxu2 %v3637_v45 }
  0xf4   : > { %v1084_v35 = vpop.f32.mrf.mxu0 }
  0xf5   : > { %3620 = vmatmul.msk.f32.vlgmr.msra.gmra.mxu3 %vm997_vm0, %v1084_v35 }
  0xf6   : > { %1413 = vmatpush.msra.mxu3 %v3642_v49 }
  0xf8   : > { %1414 = vmatpush.msra.mxu3 %v3641_v50 }
  0xfc   : > { %v1087_v38 = vpop.f32.mrf.mxu0 }
  0xfd   : > { %3623 = vmatmul.msk.f32.vlgmr.msrb.gmra.mxu1 %vm997_vm0, %v1087_v38 }
  0xfe   : > { %1551 = vmatpush.msrb.mxu1 %v1518_v46  ;;  %v3844_v46 = vld [vmem:[%s3956_s9] ss:$0 sm:$0xff] }
 0x104   : > { %v1090_v39 = vpop.f32.mrf.mxu0 }
 0x105   : > { %3624 = vmatmul.msk.f32.gmra.mxu1 %vm997_vm0, %v1090_v39 }
 0x10c   : > { %v1093_v42 = vpop.f32.mrf.mxu0 }
 0x10d   : > { %3627 = vmatmul.msk.f32.vlgmr.msra.gmra.mxu2 %vm997_vm0, %v1093_v42 }
 0x114   : > { %v1096_v43 = vpop.f32.mrf.mxu0 }
 0x115   : > { %3628 = vmatmul.msk.f32.gmra.mxu2 %vm997_vm0, %v1096_v43 }
 0x11c   : > { %v1099_v47 = vpop.f32.mrf.mxu0 }
 0x11d   : > { %3631 = vmatmul.msk.f32.vlgmr.msrb.gmra.mxu3 %vm997_vm0, %v1099_v47  ;;  %v1448_v47 = vpop.permute.xlu0 %1447 }
 0x11e   : > { %v1454_v56 = vmul.f32 %v3844_v46, %v1448_v47  ;;  %v1626_v47 = vld [vmem:[%s4582_s26 + $0x8] sm:$0xff] }
 0x124   : > { %v1102_v48 = vpop.f32.mrf.mxu0 }
 0x125   : > { %3632 = vmatmul.msk.f32.gmra.mxu3 %vm997_vm0, %v1102_v48 }
 0x12c   : > { %v1105_v51 = vpop.f32.mrf.mxu0 }
 0x12d   : > { %3635 = vmatmul.msk.f32.vlgmr.msra.gmra.mxu1 %vm997_vm0, %v1105_v51 }
 0x134   : > { %v1108_v52 = vpop.f32.mrf.mxu0 }
 0x135   : > { %3636 = vmatmul.msk.f32.gmra.mxu1 %vm997_vm0, %v1108_v52  ;;  %v1443_v52 = vpop.permute.xlu1 %1442 }
 0x13c   : > { %v1111_v57 = vpop.f32.mrf.mxu0 }
 0x13d   : > { %3639 = vmatmul.msk.f32.vlgmr.msrb.gmra.mxu2 %vm997_vm0, %v1111_v57  ;;  %3645 = vmatmul.msk.f32.vlgmr.msrb.gmra.mxu1 %vm1523_vm1, %v1514_v55  ;;  %v1453_v57 = vmul.f32 %v3844_v46, %v1443_v52  ;;  %v1656_v52 = vld [vmem:[%s4583_s28] sm:$0xff] }
 0x144   : > { %v1114_v61 = vpop.f32.mrf.mxu0 }
 0x145   : > { %3640 = vmatmul.msk.f32.gmra.mxu2 %vm997_vm0, %v1114_v61  ;;  %3646 = vmatmul.msk.f32.gmra.mxu1 %vm1523_vm1, %v1515_v59  ;;  %v1569_v61 = vld [vmem:[%s3981_s29] sm:$0xff] }
 0x14c   : > { %v1117_v63 = vpop.f32.mrf.mxu0 }
 0x14d   : > { %3643 = vmatmul.msk.f32.vlgmr.msra.gmra.mxu3 %vm997_vm0, %v1117_v63  ;;  %3647 = vmatmul.msk.f32.gmra.mxu1 %vm1523_vm1, %v1516_v62 }
 0x150   : > { %v1180_v5 = vpop.f32.mrf.mxu2 }
 0x154   : > { %v1120_v1 = vpop.f32.mrf.mxu0 }
 0x155   : > { %3644 = vmatmul.msk.f32.gmra.mxu3 %vm997_vm0, %v1120_v1  ;;  %3648 = vmatmul.msk.f32.gmra.mxu1 %vm1523_vm1, %v1517_v0 }
 0x158   : > { %v1183_v7 = vpop.f32.mrf.mxu2 }
 0x15a   : > { %v1151_v2 = vpop.f32.mrf.mxu1 }
 0x15b   : > { %v1181_v18 = vadd.f32 %v1180_v5, %v1151_v2 }
 0x162   : > { %v1154_v3 = vpop.f32.mrf.mxu1 }
 0x163   : > { %v1184_v21 = vadd.f32 %v1183_v7, %v1154_v3  ;;  %v1570_v3 = vld [vmem:[%s3981_s29 + $0x8] sm:$0xff]  ;;  %v1571_v7 = vld [vmem:[%s3981_s29 + $0x10] sm:$0xff] }
 0x170   : > { %v1212_v9 = vpop.f32.mrf.mxu2 }
 0x171   : > { %v1218_v22 = vadd.f32 %v1212_v9, %v1181_v18  ;;  %v3940_v9 = vmov 16.0  }
 0x172   : > { %3846 = vrcp.f32 %v3940_v9 }
 0x178   : > { %v1215_v11 = vpop.f32.mrf.mxu3 }
 0x179   : > { %v1219_v24 = vadd.f32 %v1215_v11, %v1184_v21 }
 0x17a   : > { %v1246_v4 = vpop.f32.mrf.mxu1 }
 0x17b   : > { %v1252_v25 = vadd.f32 %v1246_v4, %v1218_v22 }
 0x182   : > { %v1249_v6 = vpop.f32.mrf.mxu1 }
 0x183   : > { %v1253_v27 = vadd.f32 %v1249_v6, %v1219_v24 }
 0x190   : > { %v1280_v12 = vpop.f32.mrf.mxu2 }
 0x191   : > { %v1286_v28 = vadd.f32 %v1280_v12, %v1252_v25 }
 0x198   : > { %v1283_v15 = vpop.f32.mrf.mxu2 }
 0x199   : > { %v1287_v32 = vadd.f32 %v1283_v15, %v1253_v27 }
 0x1a0   : > { %v1314_v14 = vpop.f32.mrf.mxu3 }
 0x1a1   : > { %v1320_v33 = vadd.f32 %v1314_v14, %v1286_v28  ;;  %v2239_v28 = vld [vmem:[%s4046_s24 + $0x8] sm:$0xff] }
 0x1a8   : > { %v1317_v17 = vpop.f32.mrf.mxu3 }
 0x1a9   : > { %v1321_v36 = vadd.f32 %v1317_v17, %v1287_v32  ;;  %v1574_v32 = vld [vmem:[%s4577_s3 + $0x8] sm:$0xff] }
 0x1aa   : > { %v1348_v8 = vpop.f32.mrf.mxu1 }
 0x1ab   : > { %v1354_v37 = vadd.f32 %v1348_v8, %v1320_v33  ;;  %v1572_v8 = vld [vmem:[%s3981_s29 + $0x18] sm:$0xff] }
 0x1b2   : > { %v1351_v10 = vpop.f32.mrf.mxu1 }
 0x1b3   : > { %v1355_v42 = vadd.f32 %v1351_v10, %v1321_v36  ;;  %v3847_v10 = vpop.eup %3846  ;;  %v1573_v36 = vld [vmem:[%s4577_s3] sm:$0xff] }
 0x1b4   : > { %v1470_v11 = vmul.f32 16.0, %v3847_v10  ;;  %vm1474_vm5 = vweird.f32 %v3847_v10 }
 0x1b6   : > { %v1471_v12 = vsub.f32 1.0, %v1470_v11 }
 0x1ba   : > { %v1553_v13 = vpop.f32.mrf.mxu1 }
 0x1bb   : > { %v1554_v48 = vadd.f32 %v1553_v13, %v1519_v40  ;;  %v1472_v13 = vmul.f32 %v3847_v10, %v1471_v12 }
 0x1bd   : > { %v1565_v58 = vmax.f32 %v1554_v48, 0.0  ;;  %v1473_v14 = vadd.f32 %v3847_v10, %v1472_v13  ;;  %v1625_v48 = vld [vmem:[%s4582_s26] sm:$0xff] }
 0x1bf   : > { %v4248_v15 = vsel %vm1474_vm5, %v3847_v10, %v1473_v14 }
 0x1c0   : > { %v1382_v19 = vpop.f32.mrf.mxu2 }
 0x1c1   : > { %v1388_v43 = vadd.f32 %v1382_v19, %v1354_v37 }
 0x1c2   : > { %v1556_v16 = vpop.f32.mrf.mxu1 }
 0x1c3   : > { %v1557_v44 = vadd.f32 %v1556_v16, %v1520_v34 }
 0x1c5   : > { %v1566_v54 = vmax.f32 %v1557_v44, 0.0  ;;  %v1623_v44 = vld [vmem:[%s4581_s23] sm:$0xff] }
 0x1c8   : > { %v1385_v41 = vpop.f32.mrf.mxu2 }
 0x1c9   : > { %v1389_v49 = vadd.f32 %v1385_v41, %v1355_v42 }
 0x1ca   : > { %v1559_v20 = vpop.f32.mrf.mxu1 }
 0x1cb   : > { %v1560_v38 = vadd.f32 %v1559_v20, %v1521_v29 }
 0x1cd   : > { %v1567_v50 = vmax.f32 %v1560_v38, 0.0 }
 0x1d0   : > { %v1416_v30 = vpop.f32.mrf.mxu3 }
 0x1d1   : > { %v1422_v51 = vadd.f32 %v1416_v30, %v1388_v43  ;;  %v1575_v30 = vld [vmem:[%s4577_s3 + $0x10] sm:$0xff] }
 0x1d2   : > { %v1562_v35 = vpop.f32.mrf.mxu1 }
 0x1d3   : > { %v1563_v39 = vadd.f32 %v1562_v35, %v1522_v31  ;;  %v1436_v59 = vadd.f32 %v1429_v26, %v1422_v51  ;;  %v1576_v31 = vld [vmem:[%s4577_s3 + $0x18] sm:$0xff] }
 0x1d5   : > { %v1568_v45 = vmax.f32 %v1563_v39, 0.0  ;;  %v1455_v63 = vadd.f32 %v1453_v57, %v1436_v59  ;;  %v2253_v39 = vld [vmem:[%s4580_s0 + $0x8] sm:$0xff] }
 0x1d6   : > { %v1669_v59 = vld [vmem:[%s4584_s1 + $0x8] sm:$0xff] }
 0x1d7   : > { %1602 = vmatpush.msra.mxu2 %v1568_v45  ;;  %v1459_v4 = vmul.f32 0.2, %v1455_v63  ;;  %vm1457_vm4 = vcmp.ge.f32.partialorder %v1455_v63, 0.0  ;;  %v1624_v45 = vld [vmem:[%s4581_s23 + $0x8] sm:$0xff] }
 0x1d8   : > { %v1419_v53 = vpop.f32.mrf.mxu3 }
 0x1d9   : > { %v1423_v55 = vadd.f32 %v1419_v53, %v1389_v49  ;;  %1603 = vmatpush.msra.mxu2 %v1567_v50  ;;  %v1461_v5 = vsel %vm1457_vm4, %v1455_v63, %v1459_v4  ;;  %v1657_v53 = vld [vmem:[%s4583_s28 + $0x8] sm:$0xff]  ;;  %v1671_v63 = vld [vmem:[%s4584_s1 + $0x18] sm:$0xff]  ;;  %v2238_v4 = vld [vmem:[%s4046_s24] sm:$0xff] }
 0x1da   : > { %v1463_v6 = vsel %vm997_vm0, %v1461_v5, 0.0 }
 0x1db   : > { %v1437_v60 = vadd.f32 %v1434_v23, %v1423_v55  ;;  %1604 = vmatpush.msra.mxu2 %v1566_v54  ;;  %v1658_v54 = vld [vmem:[%s4583_s28 + $0x10] sm:$0xff]  ;;  %v1659_v55 = vld [vmem:[%s4583_s28 + $0x18] sm:$0xff] }
 0x1dd   : > { %v1456_v62 = vadd.f32 %v1454_v56, %v1437_v60  ;;  %1605 = vmatpush.msra.mxu2 %v1565_v58  ;;  %v1668_v56 = vld [vmem:[%s4584_s1] sm:$0xff] }
 0x1de   : > { %3649 = vmatmul.msk.f32.vlgmr.msra.gmra.mxu2 %vm1577_vm2, %v1569_v61 }
 0x1df   : > { %vm1458_vm3 = vcmp.ge.f32.partialorder %v1456_v62, 0.0  ;;  %v1460_v0 = vmul.f32 0.2, %v1456_v62 }
 0x1e1   : > { %v1462_v1 = vsel %vm1458_vm3, %v1456_v62, %v1460_v0 }
 0x1e2   : > { %v1466_v2 = vsel %vm997_vm0, %v1462_v1, 0.0 }
 0x1e3   : > { %1467 = vadd.xlane.f32.xlu2 %v1466_v2  ;;  %v1670_v2 = vld [vmem:[%s4584_s1 + $0x10] sm:$0xff] }
 0x1e6   : > { %3650 = vmatmul.msk.f32.gmra.mxu2 %vm1577_vm2, %v1570_v3 }
 0x1eb   : > { %1464 = vadd.xlane.f32.xlu2 %v1463_v6 }
 0x1ee   : > { %3651 = vmatmul.msk.f32.gmra.mxu2 %vm1577_vm2, %v1571_v7 }
 0x1f6   : > { %3652 = vmatmul.msk.f32.gmra.mxu2 %vm1577_vm2, %v1572_v8 }
 0x256   : > { %v1468_v16 = vpop.xlane.xlu2 %1467 }
 0x257   : > { %v1477_v17 = vmul.f32 %v4248_v15, %v1468_v16 }
 0x259   : > { %v4251_v18 = vsub.f32 %v1462_v1, %v1477_v17 }
 0x25b   : > { %v1481_v19 = vmul.f32 %v4251_v18, %v4251_v18 }
 0x25d   : > { %v1485_v20 = vsel %vm997_vm0, %v1481_v19, 0.0 }
 0x25e   : > { %1486 = vadd.xlane.f32.xlu0 %v1485_v20  ;;  %v1465_v21 = vpop.xlane.xlu2 %1464 }
 0x25f   : > { %v1476_v22 = vmul.f32 %v4248_v15, %v1465_v21 }
 0x261   : > { %v4257_v23 = vsub.f32 %v1461_v5, %v1476_v22  ;;  %v1607_v24 = vpop.f32.mrf.mxu2  ;;  %v2252_v5 = vld [vmem:[%s4580_s0] sm:$0xff]  ;;  %s4591_s0 = sld [smem:[#allocation5_spill]] }
 0x262   : > { %v1608_v40 = vadd.f32 %v1607_v24, %v1573_v36 }
 0x263   : > { %v1480_v25 = vmul.f32 %v4257_v23, %v4257_v23 }
 0x264   : > { %v1619_v43 = vmax.f32 %v1608_v40, 0.0  ;;  %v1797_v40 = vld [vmem:[%s4585_s2 + $0x18] sm:$0xff] }
 0x265   : > { %v1482_v26 = vsel %vm997_vm0, %v1480_v25, 0.0 }
 0x266   : > { %1483 = vadd.xlane.f32.xlu1 %v1482_v26 }
 0x269   : > { %v1610_v27 = vpop.f32.mrf.mxu2 }
 0x26a   : > { %v1611_v37 = vadd.f32 %v1610_v27, %v1574_v32 }
 0x26c   : > { %v1620_v42 = vmax.f32 %v1611_v37, 0.0  ;;  %v1794_v37 = vld [vmem:[%s4585_s2] sm:$0xff] }
 0x271   : > { %v1613_v29 = vpop.f32.mrf.mxu2 }
 0x272   : > { %2247 = vperm.xlu0 %3841, %v2239_v28   ;;  %v1614_v34 = vadd.f32 %v1613_v29, %v1575_v30 }
 0x274   : > { %v1621_v41 = vmax.f32 %v1614_v34, 0.0 }
 0x279   : > { %v1616_v33 = vpop.f32.mrf.mxu2 }
 0x27a   : > { %v1617_v35 = vadd.f32 %v1616_v33, %v1576_v31 }
 0x27c   : > { %v1622_v38 = vmax.f32 %v1617_v35, 0.0 }
 0x27e   : > { %1645 = vmatpush.msrb.mxu3 %v1622_v38  ;;  %v1795_v38 = vld [vmem:[%s4585_s2 + $0x8] sm:$0xff] }
 0x27f   : > { %2261 = vperm.xlu1 %3842, %v2253_v39   ;;  %v1796_v39 = vld [vmem:[%s4585_s2 + $0x10] sm:$0xff] }
 0x280   : > { %1646 = vmatpush.msrb.mxu3 %v1621_v41  ;;  %v1799_v41 = vld [vmem:[%s4585_s2 + $0x28] sm:$0xff] }
 0x282   : > { %1647 = vmatpush.msrb.mxu3 %v1620_v42  ;;  %v1800_v42 = vld [vmem:[%s4585_s2 + $0x30] sm:$0xff] }
 0x284   : > { %1648 = vmatpush.msrb.mxu3 %v1619_v43  ;;  %v1801_v43 = vld [vmem:[%s4585_s2 + $0x38] sm:$0xff] }
 0x285   : > { %3653 = vmatmul.msk.f32.vlgmr.msrb.gmra.mxu3 %vm1577_vm2, %v1623_v44  ;;  %v1802_v44 = vld [vmem:[%s4585_s2 + $0x40] sm:$0xff] }
 0x28d   : > { %3654 = vmatmul.msk.f32.gmra.mxu3 %vm1577_vm2, %v1624_v45  ;;  %v1803_v45 = vld [vmem:[%s4585_s2 + $0x48] sm:$0xff] }
 0x2d1   : > { %v1487_v6 = vpop.xlane.xlu0 %1486 }
 0x2d2   : > { %v1489_v7 = vmul.f32 %v1487_v6, %v4248_v15  ;;  %v3695_v6 = vld [vmem:[%s4586_s7 + $0x30] sm:$0xff] }
 0x2d4   : > { %v1491_v8 = vadd.f32 1e-05, %v1489_v7 }
 0x2d6   : > { %3848 = vrsqrt.f32 %v1491_v8  ;;  %vm1508_vm7 = vweird.f32 %v1491_v8 }
 0x2d9   : > { %v1484_v9 = vpop.xlane.xlu1 %1483 }
 0x2da   : > { %v1488_v10 = vmul.f32 %v1484_v9, %v4248_v15  ;;  %v3704_v9 = vld [vmem:[%s4586_s7 + $0x58] sm:$0xff] }
 0x2dc   : > { %v1490_v11 = vadd.f32 1e-05, %v1488_v10  ;;  %v3849_v12 = vpop.eup %3848 }
 0x2dd   : > { %v1503_v13 = vmul.f32 %v3849_v12, %v1491_v8  ;;  %vm1509_vm6 = vweird.f32 %v3849_v12  ;;  %v1661_v8 = vld [vmem:[%s4583_s28 + $0x28] sm:$0xff] }
 0x2de   : > { %3850 = vrsqrt.f32 %v1490_v11  ;;  %vm1510_vm8 = vmor %vm1508_vm7, %vm1509_vm6  ;;  %vm1498_vm10 = vweird.f32 %v1490_v11 }
 0x2df   : > { %v1504_v14 = vmul.f32 %v3849_v12, %v1503_v13 }
 0x2e1   : > { %v1505_v17 = vmul.f32 0.5, %v1504_v14  ;;  %v1663_v14 = vld [vmem:[%s4583_s28 + $0x38] sm:$0xff] }
 0x2e3   : > { %v1506_v21 = vsub.f32 1.5, %v1505_v17  ;;  %v3707_v17 = vld [vmem:[%s4586_s7 + $0x60] sm:$0xff] }
 0x2e4   : > { %v3851_v16 = vpop.eup %3850 }
 0x2e5   : > { %v1493_v19 = vmul.f32 %v3851_v16, %v1490_v11  ;;  %v1507_v25 = vmul.f32 %v3849_v12, %v1506_v21  ;;  %vm1499_vm9 = vweird.f32 %v3851_v16  ;;  %v1662_v11 = vld [vmem:[%s4583_s28 + $0x30] sm:$0xff] }
 0x2e6   : > { %vm1500_vm11 = vmor %vm1498_vm10, %vm1499_vm9 }
 0x2e7   : > { %v1494_v22 = vmul.f32 %v3851_v16, %v1493_v19  ;;  %v1511_v15 = vsel %vm1510_vm8, %v3849_v12, %v1507_v25  ;;  %v3703_v12 = vld [vmem:[%s4586_s7 + $0x50] sm:$0xff]  ;;  %v3712_v25 = vld [vmem:[%s4586_s7 + $0x78] sm:$0xff] }
 0x2e8   : > { %v1513_v28 = vmul.f32 %v1511_v15, %v4251_v18  ;;  %v1666_v15 = vld [vmem:[%s4583_s28 + $0x50] sm:$0xff] }
 0x2e9   : > { %v1495_v24 = vmul.f32 0.5, %v1494_v22  ;;  %v3715_v22 = vld [vmem:[%s4586_s7 + $0x80] sm:$0xff] }
 0x2eb   : > { %v1496_v27 = vsub.f32 1.5, %v1495_v24  ;;  %v1665_v24 = vld [vmem:[%s4583_s28 + $0x48] sm:$0xff] }
 0x2ed   : > { %v1497_v29 = vmul.f32 %v3851_v16, %v1496_v27 }
 0x2ef   : > { %v1501_v33 = vsel %vm1500_vm11, %v3851_v16, %v1497_v29  ;;  %v3708_v16 = vld [vmem:[%s4586_s7 + $0x68] sm:$0xff]  ;;  %v1667_v29 = vld [vmem:[%s4583_s28 + $0x58] sm:$0xff] }
 0x2f0   : > { %v1512_v34 = vmul.f32 %v1501_v33, %v4257_v23  ;;  %v1798_v23 = vld [vmem:[%s4585_s2 + $0x20] sm:$0xff] }
 0x308   : > { %v1650_v46 = vpop.f32.mrf.mxu3 }
 0x309   : > { %v1651_v51 = vadd.f32 %v1650_v46, %v1625_v48  ;;  %v1804_v46 = vld [vmem:[%s4585_s2 + $0x50] sm:$0xff]  ;;  %v1805_v48 = vld [vmem:[%s4585_s2 + $0x58] sm:$0xff] }
 0x310   : > { %v1653_v49 = vpop.f32.mrf.mxu3 }
 0x311   : > { %v1654_v50 = vadd.f32 %v1653_v49, %v1626_v47  ;;  %v3700_v47 = vld [vmem:[%s4586_s7 + $0x48] sm:$0xff]  ;;  %v1806_v49 = vld [vmem:[%s4585_s2 + $0x60] sm:$0xff] }
 0x312   : > { %2091 = vmatpush.msrb.mxu0 %v3700_v47 }
 0x313   : > { %1730 = vmatpush.msra.mxu3 %v1654_v50  ;;  %v1807_v50 = vld [vmem:[%s4585_s2 + $0x68] sm:$0xff] }
 0x315   : > { %1731 = vmatpush.msra.mxu3 %v1651_v51  ;;  %v3686_v51 = vld [vmem:[%s4586_s7 + $0x18] sm:$0xff] }
 0x316   : > { %3655 = vmatmul.msk.f32.vlgmr.msra.gmra.mxu3 %vm997_vm0, %v1656_v52  ;;  %1962 = vmatpush.msrb.mxu2 %v3686_v51  ;;  %v3685_v52 = vld [vmem:[%s4586_s7 + $0x10] sm:$0xff] }
 0x318   : > { %1963 = vmatpush.msrb.mxu2 %v3685_v52 }
 0x31e   : > { %3656 = vmatmul.msk.f32.gmra.mxu3 %vm997_vm0, %v1657_v53  ;;  %v1808_v53 = vld [vmem:[%s4585_s2 + $0x70] sm:$0xff] }
 0x326   : > { %3657 = vmatmul.msk.f32.gmra.mxu3 %vm997_vm0, %v1658_v54  ;;  %v1809_v54 = vld [vmem:[%s4585_s2 + $0x78] sm:$0xff] }
 0x32e   : > { %3658 = vmatmul.msk.f32.gmra.mxu3 %vm997_vm0, %v1659_v55  ;;  %v1938_v55 = vld [vmem:[%s4586_s7 + $0x8] sm:$0xff] }
 0x32f   : > { %1991 = vmatpush.msra.mxu2 %v1938_v55 }
 0x399   : > { %v1733_v57 = vpop.f32.mrf.mxu3 }
 0x39a   : > { %v1734_v58 = vadd.f32 %v1733_v57, %v1668_v56  ;;  %v1937_v56 = vld [vmem:[%s4586_s7] sm:$0xff] }
 0x39b   : > { %1992 = vmatpush.msra.mxu2 %v1937_v56 }
 0x39c   : > { %1771 = vperm.xlu2 %3843, %v1734_v58   ;;  %v1810_v58 = vld [vmem:[%s4585_s2 + $0x80] sm:$0xff] }
 0x3a1   : > { %v1736_v60 = vpop.f32.mrf.mxu3 }
 0x3a2   : > { %v1737_v61 = vadd.f32 %v1736_v60, %v1669_v59  ;;  %v1811_v60 = vld [vmem:[%s4585_s2 + $0x88] sm:$0xff]  ;;  %s3590_s2 = sshll.u32 %s4595_s18, 1 }
 0x3a3   : > { %s970_s3 = scalar_lea.vmem %s4591_s0, %s3590_s2  ;;  %s4593_s0 = sshll.u32 %s4595_s18, 3 }
 0x3a4   : > { %1776 = vperm.xlu2 %3843, %v1737_v61   ;;  %v3692_v61 = vld [vmem:[%s4586_s7 + $0x28] sm:$0xff]  ;;  %s975_s2 = scalar_lea.vmem %s4101_s19, %s4593_s0 }
 0x3a9   : > { %v1739_v62 = vpop.f32.mrf.mxu3 }
 0x3aa   : > { %v1740_v3 = vadd.f32 %v1739_v62, %v1670_v2  ;;  %v3696_v2 = vld [vmem:[%s4586_s7 + $0x38] sm:$0xff] }
 0x3b1   : > { %v1742_v0 = vpop.f32.mrf.mxu3 }
 0x3b2   : > { %v1743_v1 = vadd.f32 %v1742_v0, %v1671_v63  ;;  %v3691_v63 = vld [vmem:[%s4586_s7 + $0x20] sm:$0xff] }
 0x3b4   : > { %1788 = vperm.xlu2 %3843, %v1743_v1   ;;  %v3716_v1 = vld [vmem:[%s4586_s7 + $0x88] sm:$0xff] }
 0x3b5   : > { %2227 = vmatpush.msrb.mxu3 %v3716_v1 }
 0x3b7   : > { %2228 = vmatpush.msrb.mxu3 %v3715_v22 }
 0x3bc   : > { %1783 = vperm.xlu2 %3843, %v1740_v3   ;;  %v3699_v3 = vld [vmem:[%s4586_s7 + $0x40] sm:$0xff] }
 0x3bd   : > { %2092 = vmatpush.msrb.mxu0 %v3699_v3 }
 0x3bf   : > { %2159 = vmatpush.msra.mxu0 %v3708_v16 }
 0x3c1   : > { %2160 = vmatpush.msra.mxu0 %v3707_v17 }
 0x3c4   : > { %2242 = vperm.xlu2 %3843, %v2238_v4  }
 0x3cc   : > { %2256 = vperm.xlu2 %3843, %v2252_v5   ;;  %v1660_v5 = vld [vmem:[%s4583_s28 + $0x20] sm:$0xff] }
 0x3cd   : > { %3659 = vmatmul.msk.f32.gmra.mxu3 %vm997_vm0, %v1660_v5  ;;  %v3845_v5 = vld [vmem:[%s966_s22] ss:$0 sm:$0xff]  ;;  %s4589_s22 = sld [smem:[#allocation17_spill]] }
 0x3d5   : > { %3660 = vmatmul.msk.f32.gmra.mxu3 %vm997_vm0, %v1661_v8 }
 0x3dd   : > { %3661 = vmatmul.msk.f32.gmra.mxu3 %vm997_vm0, %v1662_v11 }
 0x3e5   : > { %3662 = vmatmul.msk.f32.gmra.mxu3 %vm997_vm0, %v1663_v14 }
 0x3f6   : > { %v1772_v20 = vpop.permute.xlu2 %1771 }
 0x3f7   : > { %v1779_v35 = vmul.f32 %v1772_v20, %v1512_v34  ;;  %v1664_v20 = vld [vmem:[%s4583_s28 + $0x40] sm:$0xff] }
 0x3f8   : > { %3663 = vmatmul.msk.f32.gmra.mxu3 %vm997_vm0, %v1664_v20 }
 0x3fe   : > { %v1777_v26 = vpop.permute.xlu2 %1776 }
 0x3ff   : > { %v1780_v30 = vmul.f32 %v1777_v26, %v1513_v28  ;;  %v3711_v26 = vld [vmem:[%s4586_s7 + $0x70] sm:$0xff] }
 0x400   : > { %3664 = vmatmul.msk.f32.gmra.mxu3 %vm997_vm0, %v1665_v24  ;;  %v2248_v24 = vpop.permute.xlu0 %2247 }
 0x408   : > { %3665 = vmatmul.msk.f32.gmra.mxu3 %vm997_vm0, %v1666_v15 }
 0x40e   : > { %v1789_v31 = vpop.permute.xlu2 %1788 }
 0x40f   : > { %v1792_v32 = vadd.f32 %v1789_v31, %v1780_v30 }
 0x410   : > { %3666 = vmatmul.msk.f32.gmra.mxu3 %vm997_vm0, %v1667_v29 }
 0x411   : > { %1880 = vmatpush.msra.mxu1 %v1792_v32 }
 0x416   : > { %v1784_v36 = vpop.permute.xlu2 %1783 }
 0x417   : > { %v1791_v18 = vadd.f32 %v1784_v36, %v1779_v35 }
 0x419   : > { %1881 = vmatpush.msra.mxu1 %v1791_v18 }
 0x41a   : > { %3667 = vmatmul.msk.f32.vlgmr.msra.gmra.mxu1 %vm997_vm0, %v1794_v37 }
 0x41e   : > { %v2243_v56 = vpop.permute.xlu2 %2242 }
 0x422   : > { %3668 = vmatmul.msk.f32.gmra.mxu1 %vm997_vm0, %v1795_v38 }
 0x426   : > { %v2257_v3 = vpop.permute.xlu2 %2256 }
 0x42a   : > { %3669 = vmatmul.msk.f32.gmra.mxu1 %vm997_vm0, %v1796_v39 }
 0x432   : > { %3670 = vmatmul.msk.f32.gmra.mxu1 %vm997_vm0, %v1797_v40 }
 0x43a   : > { %3671 = vmatmul.msk.f32.gmra.mxu1 %vm997_vm0, %v1798_v23 }
 0x442   : > { %3672 = vmatmul.msk.f32.gmra.mxu1 %vm997_vm0, %v1799_v41 }
 0x44a   : > { %3673 = vmatmul.msk.f32.gmra.mxu1 %vm997_vm0, %v1800_v42 }
 0x450   : > { %v4382_v38 = vpop.f32.mrf.mxu3 }
 0x452   : > { %3674 = vmatmul.msk.f32.gmra.mxu1 %vm997_vm0, %v1801_v43 }
 0x458   : > { %v1748_v40 = vpop.f32.mrf.mxu3 }
 0x45a   : > { %3675 = vmatmul.msk.f32.gmra.mxu1 %vm997_vm0, %v1802_v44 }
 0x460   : > { %v1751_v41 = vpop.f32.mrf.mxu3 }
 0x462   : > { %3676 = vmatmul.msk.f32.gmra.mxu1 %vm997_vm0, %v1803_v45 }
 0x468   : > { %v4384_v43 = vpop.f32.mrf.mxu3 }
 0x46a   : > { %3677 = vmatmul.msk.f32.gmra.mxu1 %vm997_vm0, %v1804_v46 }
 0x472   : > { %3678 = vmatmul.msk.f32.gmra.mxu1 %vm997_vm0, %v1805_v48 }
 0x47a   : > { %3679 = vmatmul.msk.f32.gmra.mxu1 %vm997_vm0, %v1806_v49 }
 0x47b   : > { %v4386_v45 = vpop.f32.mrf.mxu3 }
 0x482   : > { %3680 = vmatmul.msk.f32.gmra.mxu1 %vm997_vm0, %v1807_v50 }
 0x483   : > { %v4388_v47 = vpop.f32.mrf.mxu3 }
 0x48a   : > { %3681 = vmatmul.msk.f32.gmra.mxu1 %vm997_vm0, %v1808_v53 }
 0x48b   : > { %v4390_v50 = vpop.f32.mrf.mxu3 }
 0x492   : > { %3682 = vmatmul.msk.f32.gmra.mxu1 %vm997_vm0, %v1809_v54 }
 0x497   : > { %v1883_v57 = vpop.f32.mrf.mxu1 }
 0x49a   : > { %3683 = vmatmul.msk.f32.gmra.mxu1 %vm997_vm0, %v1810_v58 }
 0x49f   : > { %v1886_v59 = vpop.f32.mrf.mxu1 }
 0x4a2   : > { %3684 = vmatmul.msk.f32.gmra.mxu1 %vm997_vm0, %v1811_v60 }
 0x4a7   : > { %v1889_v62 = vpop.f32.mrf.mxu1 }
 0x4a8   : > { %3687 = vmatmul.msk.f32.vlgmr.msrb.gmra.mxu2 %vm997_vm0, %v1889_v62 }
 0x4a9   : > { %2023 = vmatpush.msrb.mxu2 %v3692_v61 }
 0x4ab   : > { %2024 = vmatpush.msrb.mxu2 %v3691_v63 }
 0x4af   : > { %v1892_v0 = vpop.f32.mrf.mxu1 }
 0x4b0   : > { %3688 = vmatmul.msk.f32.gmra.mxu2 %vm997_vm0, %v1892_v0 }
 0x4b7   : > { %v1895_v4 = vpop.f32.mrf.mxu1 }
 0x4b8   : > { %3689 = vmatmul.msk.f32.vlgmr.msra.gmra.mxu2 %vm997_vm0, %v1883_v57  ;;  %v4392_v57 = vpop.f32.mrf.mxu3 }
 0x4b9   : > { %2057 = vmatpush.msra.mxu2 %v3696_v2 }
 0x4bb   : > { %2058 = vmatpush.msra.mxu2 %v3695_v6 }
 0x4bf   : > { %v1898_v7 = vpop.f32.mrf.mxu1 }
 0x4c0   : > { %3690 = vmatmul.msk.f32.gmra.mxu2 %vm997_vm0, %v1886_v59 }
 0x4c7   : > { %v1901_v10 = vpop.f32.mrf.mxu1 }
 0x4c8   : > { %3693 = vmatmul.msk.f32.vlgmr.msrb.gmra.mxu2 %vm997_vm0, %v1895_v4 }
 0x4c9   : > { %2125 = vmatpush.msrb.mxu2 %v3704_v9  ;;  %v2267_v9 = vmul.f32 %v3845_v5, %v2257_v3  ;;  %v2366_v3 = vld [vmem:[%s4589_s22 + $0x68] sm:$0xff] }
 0x4cb   : > { %2126 = vmatpush.msrb.mxu2 %v3703_v12 }
 0x4cf   : > { %v1904_v13 = vpop.f32.mrf.mxu1 }
 0x4d0   : > { %3694 = vmatmul.msk.f32.gmra.mxu2 %vm997_vm0, %v1898_v7 }
 0x4d7   : > { %v1907_v19 = vpop.f32.mrf.mxu1 }
 0x4d8   : > { %3697 = vmatmul.msk.f32.vlgmr.msra.gmra.mxu2 %vm997_vm0, %v1901_v10  ;;  %3701 = vmatmul.msk.f32.vlgmr.msrb.gmra.mxu0 %vm997_vm0, %v1907_v19  ;;  %v2262_v19 = vpop.permute.xlu1 %2261 }
 0x4d9   : > { %2193 = vmatpush.msra.mxu2 %v3712_v25 }
 0x4db   : > { %2194 = vmatpush.msra.mxu2 %v3711_v26  ;;  %v2268_v26 = vmul.f32 %v3845_v5, %v2262_v19  ;;  %v2364_v5 = vld [vmem:[%s4589_s22 + $0x58] sm:$0xff]  ;;  %v2354_v19 = vld [vmem:[%s4589_s22 + $0x8] sm:$0xff] }
 0x4df   : > { %v1910_v21 = vpop.f32.mrf.mxu1 }
 0x4e0   : > { %3698 = vmatmul.msk.f32.gmra.mxu2 %vm997_vm0, %v1904_v13  ;;  %3702 = vmatmul.msk.f32.gmra.mxu0 %vm997_vm0, %v1910_v21 }
 0x4e7   : > { %v1913_v27 = vpop.f32.mrf.mxu1 }
 0x4e8   : > { %3705 = vmatmul.msk.f32.vlgmr.msrb.gmra.mxu2 %vm997_vm0, %v1913_v27 }
 0x4ef   : > { %v1916_v28 = vpop.f32.mrf.mxu1 }
 0x4f0   : > { %3706 = vmatmul.msk.f32.gmra.mxu2 %vm997_vm0, %v1916_v28 }
 0x4f7   : > { %v1919_v30 = vpop.f32.mrf.mxu1 }
 0x4f8   : > { %3709 = vmatmul.msk.f32.vlgmr.msra.gmra.mxu0 %vm997_vm0, %v1919_v30 }
 0x4ff   : > { %v1922_v31 = vpop.f32.mrf.mxu1 }
 0x500   : > { %3710 = vmatmul.msk.f32.gmra.mxu0 %vm997_vm0, %v1922_v31  ;;  %v1673_v31 = vld [vmem:[%s4584_s1 + $0x28] sm:$0xff] }
 0x507   : > { %v1925_v32 = vpop.f32.mrf.mxu1 }
 0x508   : > { %3713 = vmatmul.msk.f32.vlgmr.msra.gmra.mxu2 %vm997_vm0, %v1925_v32  ;;  %v1749_v32 = vadd.f32 %v1748_v40, %v1673_v31 }
 0x50f   : > { %v1928_v33 = vpop.f32.mrf.mxu1 }
 0x510   : > { %3714 = vmatmul.msk.f32.gmra.mxu2 %vm997_vm0, %v1928_v33  ;;  %v1674_v33 = vld [vmem:[%s4584_s1 + $0x30] sm:$0xff] }
 0x517   : > { %v1931_v34 = vpop.f32.mrf.mxu1 }
 0x518   : > { %3717 = vmatmul.msk.f32.vlgmr.msrb.gmra.mxu3 %vm997_vm0, %v1931_v34  ;;  %v1752_v34 = vadd.f32 %v1751_v41, %v1674_v33 }
 0x51f   : > { %v1934_v35 = vpop.f32.mrf.mxu1 }
 0x520   : > { %3718 = vmatmul.msk.f32.gmra.mxu3 %vm997_vm0, %v1934_v35  ;;  %v3213_v35 = vld [vmem:[%s4587_s10] sm:$0xff] }
 0x52b   : > { %v1965_v36 = vpop.f32.mrf.mxu2 }
 0x533   : > { %v1968_v18 = vpop.f32.mrf.mxu2 }
 0x53b   : > { %v1994_v37 = vpop.f32.mrf.mxu2 }
 0x53c   : > { %v1995_v52 = vadd.f32 %v1994_v37, %v1965_v36  ;;  %v3941_v36 = vmov 64.0  }
 0x53d   : > { %3852 = vrcp.f32 %v3941_v36 }
 0x543   : > { %v1997_v39 = vpop.f32.mrf.mxu2 }
 0x544   : > { %v1998_v59 = vadd.f32 %v1997_v39, %v1968_v18  ;;  %v3853_v18 = vpop.eup %3852 }
 0x545   : > { %v2285_v37 = vmul.f32 64.0, %v3853_v18  ;;  %vm2289_vm15 = vweird.f32 %v3853_v18 }
 0x547   : > { %v2286_v39 = vsub.f32 1.0, %v2285_v37 }
 0x54b   : > { %v2026_v23 = vpop.f32.mrf.mxu2 }
 0x54c   : > { %v2032_v54 = vadd.f32 %v2026_v23, %v1995_v52  ;;  %v2287_v23 = vmul.f32 %v3853_v18, %v2286_v39 }
 0x553   : > { %v2029_v42 = vpop.f32.mrf.mxu2 }
 0x554   : > { %v2033_v62 = vadd.f32 %v2029_v42, %v1998_v59  ;;  %v2288_v42 = vadd.f32 %v3853_v18, %v2287_v23  ;;  %v3214_v59 = vld [vmem:[%s4587_s10 + $0x8] sm:$0xff] }
 0x555   : > { %v2094_v48 = vpop.f32.mrf.mxu0 }
 0x55b   : > { %v2060_v44 = vpop.f32.mrf.mxu2 }
 0x55c   : > { %v2066_v55 = vadd.f32 %v2060_v44, %v2032_v54  ;;  %v4402_v44 = vsel %vm2289_vm15, %v3853_v18, %v2288_v42 }
 0x55d   : > { %v2097_v51 = vpop.f32.mrf.mxu0 }
 0x55e   : > { %v2100_v60 = vadd.f32 %v2094_v48, %v2066_v55 }
 0x563   : > { %v2063_v46 = vpop.f32.mrf.mxu2 }
 0x564   : > { %v2067_v0 = vadd.f32 %v2063_v46, %v2033_v62  ;;  %v3229_v62 = vld [vmem:[%s4588_s16] sm:$0xff] }
 0x566   : > { %v2101_v6 = vadd.f32 %v2097_v51, %v2067_v0  ;;  %v1676_v0 = vld [vmem:[%s4584_s1 + $0x40] sm:$0xff] }
 0x56b   : > { %v2128_v49 = vpop.f32.mrf.mxu2 }
 0x56c   : > { %v2134_v63 = vadd.f32 %v2128_v49, %v2100_v60  ;;  %v1672_v60 = vld [vmem:[%s4584_s1 + $0x20] sm:$0xff] }
 0x573   : > { %v2131_v53 = vpop.f32.mrf.mxu2 }
 0x574   : > { %v2135_v10 = vadd.f32 %v2131_v53, %v2101_v6  ;;  %v2362_v6 = vld [vmem:[%s4589_s22 + $0x48] sm:$0xff] }
 0x575   : > { %v2162_v58 = vpop.f32.mrf.mxu0 }
 0x576   : > { %v2168_v1 = vadd.f32 %v2162_v58, %v2134_v63  ;;  %v3230_v63 = vld [vmem:[%s4588_s16 + $0x8] sm:$0xff] }
 0x57d   : > { %v2165_v8 = vpop.f32.mrf.mxu0 }
 0x57e   : > { %v2169_v13 = vadd.f32 %v2165_v8, %v2135_v10  ;;  %v2360_v8 = vld [vmem:[%s4589_s22 + $0x38] sm:$0xff]  ;;  %v2358_v10 = vld [vmem:[%s4589_s22 + $0x28] sm:$0xff] }
 0x58b   : > { %v2196_v61 = vpop.f32.mrf.mxu2 }
 0x58c   : > { %v2202_v2 = vadd.f32 %v2196_v61, %v2168_v1  ;;  %v1746_v61 = vadd.f32 %v4382_v38, %v1672_v60  ;;  %v2367_v1 = vld [vmem:[%s4589_s22 + $0x70] sm:$0xff]  ;;  %v2365_v38 = vld [vmem:[%s4589_s22 + $0x60] sm:$0xff]  ;;  %v2716_v60 = vld [vmem:[#allocation2 + $0x168] sm:$0xff] }
 0x58d   : > { %2383 = vmatpush.msrb.mxu0 %v2367_v1  ;;  %v2596_v1 = vld [vmem:[#allocation2 + $0xf0] sm:$0xff] }
 0x58f   : > { %2384 = vmatpush.msrb.mxu0 %v2365_v38  ;;  %v2592_v38 = vld [vmem:[#allocation2 + $0xd0] sm:$0xff] }
 0x593   : > { %v2199_v12 = vpop.f32.mrf.mxu2 }
 0x594   : > { %v2203_v16 = vadd.f32 %v2199_v12, %v2169_v13  ;;  %v2355_v13 = vld [vmem:[%s4589_s22 + $0x10] sm:$0xff] }
 0x59b   : > { %v2230_v4 = vpop.f32.mrf.mxu3 }
 0x59c   : > { %v2236_v7 = vadd.f32 %v2230_v4, %v2202_v2  ;;  %v2368_v2 = vld [vmem:[%s4589_s22 + $0x78] sm:$0xff]  ;;  %v2363_v4 = vld [vmem:[%s4589_s22 + $0x50] sm:$0xff] }
 0x59d   : > { %2406 = vmatpush.msrb.mxu2 %v2368_v2  ;;  %2385 = vmatpush.msrb.mxu0 %v2363_v4  ;;  %v2594_v2 = vld [vmem:[#allocation2 + $0xe0] sm:$0xff] }
 0x59e   : > { %v2250_v11 = vadd.f32 %v2243_v56, %v2236_v7  ;;  %v1675_v56 = vld [vmem:[%s4584_s1 + $0x38] sm:$0xff]  ;;  %v2359_v7 = vld [vmem:[%s4589_s22 + $0x30] sm:$0xff]  ;;  %v2590_v4 = vld [vmem:[#allocation2 + $0xc0] sm:$0xff] }
 0x59f   : > { %v1755_v58 = vadd.f32 %v4384_v43, %v1675_v56  ;;  %v1758_v43 = vadd.f32 %v4386_v45, %v1676_v0  ;;  %2407 = vmatpush.msrb.mxu2 %v2366_v3  ;;  %v2361_v45 = vld [vmem:[%s4589_s22 + $0x40] sm:$0xff]  ;;  %v2718_v56 = vld [vmem:[#allocation2 + $0x178] sm:$0xff]  ;;  %v2432_v0 = vld [vmem:[%s4590_s11 + $0x50] sm:$0xff] }
 0x5a0   : > { %v2269_v14 = vadd.f32 %v2267_v9, %v2250_v11  ;;  %2386 = vmatpush.msrb.mxu0 %v2361_v45  ;;  %v2357_v9 = vld [vmem:[%s4589_s22 + $0x20] sm:$0xff]  ;;  %2756 = vmatpush.msrb.mxu1 %v2718_v56  ;;  %v2588_v45 = vld [vmem:[#allocation2 + $0xb0] sm:$0xff] }
 0x5a1   : > { %2408 = vmatpush.msrb.mxu2 %v2364_v5  ;;  %v2434_v3 = vld [vmem:[%s4590_s11 + $0x60] sm:$0xff]  ;;  %v2712_v5 = vld [vmem:[#allocation2 + $0x148] sm:$0xff]  ;;  %v2713_v56 = vld [vmem:[#allocation2 + $0x150] sm:$0xff] }
 0x5a2   : > { %vm2271_vm12 = vcmp.ge.f32.partialorder %v2269_v14, 0.0  ;;  %v2273_v17 = vmul.f32 0.2, %v2269_v14  ;;  %2387 = vmatpush.msrb.mxu0 %v2359_v7  ;;  %2757 = vmatpush.msrb.mxu1 %v2716_v60  ;;  %v2597_v7 = vld [vmem:[#allocation2 + $0xf8] sm:$0xff]  ;;  %v2711_v60 = vld [vmem:[#allocation2 + $0x140] sm:$0xff] }
 0x5a3   : > { %v2233_v20 = vpop.f32.mrf.mxu3  ;;  %2409 = vmatpush.msrb.mxu2 %v2362_v6  ;;  %v2586_v6 = vld [vmem:[#allocation2 + $0xa0] sm:$0xff] }
 0x5a4   : > { %v2237_v21 = vadd.f32 %v2233_v20, %v2203_v16  ;;  %v2275_v22 = vsel %vm2271_vm12, %v2269_v14, %v2273_v17  ;;  %2388 = vmatpush.msrb.mxu0 %v2357_v9  ;;  %v2356_v14 = vld [vmem:[%s4589_s22 + $0x18] sm:$0xff]  ;;  %v2353_v17 = vld [vmem:[%s4589_s22] sm:$0xff]  ;;  %v2595_v9 = vld [vmem:[#allocation2 + $0xe8] sm:$0xff] }
 0x5a5   : > { %v2278_v25 = vsel %vm2277_vm13, %v2275_v22, 0.0  ;;  %2410 = vmatpush.msrb.mxu2 %v2360_v8  ;;  %v2584_v8 = vld [vmem:[#allocation2 + $0x90] sm:$0xff] }
 0x5a6   : > { %v2251_v27 = vadd.f32 %v2248_v24, %v2237_v21  ;;  %2279 = vadd.xlane.f32.xlu2 %v2278_v25  ;;  %2389 = vmatpush.msrb.mxu0 %v2355_v13  ;;  %v2579_v13 = vld [vmem:[#allocation2 + $0x70] sm:$0xff] }
 0x5a7   : > { %2411 = vmatpush.msrb.mxu2 %v2358_v10  ;;  %v2435_v10 = vld [vmem:[%s4590_s11 + $0x68] sm:$0xff] }
 0x5a8   : > { %v2270_v15 = vadd.f32 %v2268_v26, %v2251_v27  ;;  %2390 = vmatpush.msrb.mxu0 %v2353_v17  ;;  %v2589_v17 = vld [vmem:[#allocation2 + $0xb8] sm:$0xff] }
 0x5a9   : > { %2412 = vmatpush.msrb.mxu2 %v2356_v14  ;;  %v2591_v14 = vld [vmem:[#allocation2 + $0xc8] sm:$0xff] }
 0x5aa   : > { %vm2272_vm14 = vcmp.ge.f32.partialorder %v2270_v15, 0.0  ;;  %v2274_v28 = vmul.f32 0.2, %v2270_v15  ;;  %2612 = vmatpush.msra.mxu0 %v2596_v1  ;;  %v2707_v1 = vld [vmem:[#allocation2 + $0x120] sm:$0xff] }
 0x5ab   : > { %2413 = vmatpush.msrb.mxu2 %v2354_v19  ;;  %v2575_v19 = vld [vmem:[#allocation2 + $0x50] sm:$0xff] }
 0x5ac   : > { %v2276_v29 = vsel %vm2272_vm14, %v2270_v15, %v2274_v28  ;;  %2613 = vmatpush.msra.mxu0 %v2594_v2  ;;  %v2780_v2 = vld [vmem:[#allocation2 + $0x1a0] sm:$0xff] }
 0x5ad   : > { %v2281_v30 = vsel %vm2277_vm13, %v2276_v29, 0.0  ;;  %2635 = vmatpush.msra.mxu2 %v2597_v7  ;;  %v2791_v7 = vld [vmem:[#allocation2 + $0x1f8] sm:$0xff] }
 0x5ae   : > { %2282 = vadd.xlane.f32.xlu0 %v2281_v30  ;;  %2614 = vmatpush.msra.mxu0 %v2592_v38  ;;  %v2855_v38 = vld [vmem:[#allocation2 + $0x230] sm:$0xff] }
 0x5af   : > { %2636 = vmatpush.msra.mxu2 %v2595_v9  ;;  %v2864_v9 = vld [vmem:[#allocation2 + $0x278] sm:$0xff] }
 0x5b0   : > { %2615 = vmatpush.msra.mxu0 %v2590_v4  ;;  %v2778_v4 = vld [vmem:[#allocation2 + $0x190] sm:$0xff] }
 0x5b2   : > { %2616 = vmatpush.msra.mxu0 %v2588_v45  ;;  %v2703_v45 = vld [vmem:[#allocation2 + $0x100] sm:$0xff] }
 0x5b4   : > { %2617 = vmatpush.msra.mxu0 %v2586_v6  ;;  %v2776_v6 = vld [vmem:[#allocation2 + $0x180] sm:$0xff] }
 0x5b6   : > { %2618 = vmatpush.msra.mxu0 %v2584_v8 }
 0x5be   : > { %2336 = vperm.xlu2 %3843, %v1749_v32  }
 0x5c6   : > { %2343 = vperm.xlu2 %3843, %v1752_v34  }
 0x5ce   : > { %3217 = vperm.xlu2 %3843, %v3213_v35  }
 0x619   : > { %v2280_v46 = vpop.xlane.xlu2 %2279 }
 0x61a   : > { %v2291_v40 = vmul.f32 %v4402_v44, %v2280_v46 }
 0x61c   : > { %v4405_v41 = vsub.f32 %v2275_v22, %v2291_v40 }
 0x61e   : > { %v2295_v48 = vmul.f32 %v4405_v41, %v4405_v41 }
 0x620   : > { %v2297_v49 = vsel %vm2277_vm13, %v2295_v48, 0.0 }
 0x621   : > { %v2283_v51 = vpop.xlane.xlu0 %2282  ;;  %2298 = vadd.xlane.f32.xlu0 %v2297_v49  ;;  %v2337_v31 = vpop.permute.xlu2 %2336 }
 0x622   : > { %v2292_v52 = vmul.f32 %v4402_v44, %v2283_v51  ;;  %v2422_v51 = vld [vmem:[%s4590_s11] sm:$0xff] }
 0x624   : > { %v4411_v53 = vsub.f32 %v2276_v29, %v2292_v52  ;;  %v2424_v52 = vld [vmem:[%s4590_s11 + $0x10] sm:$0xff] }
 0x626   : > { %v2296_v54 = vmul.f32 %v4411_v53, %v4411_v53 }
 0x628   : > { %v2300_v55 = vsel %vm2277_vm13, %v2296_v54, 0.0  ;;  %v2426_v54 = vld [vmem:[%s4590_s11 + $0x20] sm:$0xff] }
 0x629   : > { %2301 = vadd.xlane.f32.xlu1 %v2300_v55  ;;  %v2344_v46 = vpop.permute.xlu2 %2343  ;;  %v2427_v55 = vld [vmem:[%s4590_s11 + $0x28] sm:$0xff] }
 0x635   : > { %2348 = vperm.xlu0 %3841, %v1755_v58   ;;  %v2428_v58 = vld [vmem:[%s4590_s11 + $0x30] sm:$0xff] }
 0x63d   : > { %3222 = vperm.xlu0 %3841, %v3214_v59   ;;  %v2429_v59 = vld [vmem:[%s4590_s11 + $0x38] sm:$0xff] }
 0x642   : > { %2331 = vperm.xlu1 %3842, %v1746_v61   ;;  %v2430_v61 = vld [vmem:[%s4590_s11 + $0x40] sm:$0xff] }
 0x645   : > { %3233 = vperm.xlu0 %3841, %v3229_v62   ;;  %v2431_v62 = vld [vmem:[%s4590_s11 + $0x48] sm:$0xff] }
 0x64a   : > { %3238 = vperm.xlu1 %3842, %v3230_v63   ;;  %v2714_v63 = vld [vmem:[#allocation2 + $0x158] sm:$0xff] }
 0x64b   : > { %2758 = vmatpush.msrb.mxu1 %v2714_v63  ;;  %v2782_v63 = vld [vmem:[#allocation2 + $0x1b0] sm:$0xff] }
 0x64d   : > { %3325 = vperm.xlu0 %3841, %v1758_v43   ;;  %v2433_v43 = vld [vmem:[%s4590_s11 + $0x58] sm:$0xff]  ;;  %2759 = vmatpush.msrb.mxu1 %v2712_v5  ;;  %v2853_v5 = vld [vmem:[#allocation2 + $0x220] sm:$0xff] }
 0x694   : > { %v2299_v11 = vpop.xlane.xlu0 %2298 }
 0x695   : > { %v2303_v12 = vmul.f32 %v2299_v11, %v4402_v44  ;;  %v2582_v11 = vld [vmem:[#allocation2 + $0x80] sm:$0xff] }
 0x696   : > { %2619 = vmatpush.msra.mxu0 %v2582_v11  ;;  %v2789_v11 = vld [vmem:[#allocation2 + $0x1e8] sm:$0xff] }
 0x697   : > { %v2305_v16 = vadd.f32 1e-05, %v2303_v12  ;;  %v2593_v12 = vld [vmem:[#allocation2 + $0xd8] sm:$0xff] }
 0x698   : > { %2637 = vmatpush.msra.mxu2 %v2593_v12  ;;  %v2862_v12 = vld [vmem:[#allocation2 + $0x268] sm:$0xff] }
 0x699   : > { %3854 = vrsqrt.f32 %v2305_v16  ;;  %vm2313_vm2 = vweird.f32 %v2305_v16 }
 0x69a   : > { %2638 = vmatpush.msra.mxu2 %v2591_v14  ;;  %v2787_v14 = vld [vmem:[#allocation2 + $0x1d8] sm:$0xff] }
 0x69c   : > { %v2302_v20 = vpop.xlane.xlu1 %2301  ;;  %2639 = vmatpush.msra.mxu2 %v2589_v17  ;;  %v2860_v17 = vld [vmem:[#allocation2 + $0x258] sm:$0xff] }
 0x69d   : > { %v2304_v21 = vmul.f32 %v2302_v20, %v4402_v44  ;;  %v2587_v20 = vld [vmem:[#allocation2 + $0xa8] sm:$0xff] }
 0x69e   : > { %2640 = vmatpush.msra.mxu2 %v2587_v20  ;;  %v2935_v20 = vld [vmem:[#allocation2 + $0x2e8] sm:$0xff] }
 0x69f   : > { %v3855_v22 = vpop.eup %3854  ;;  %v2306_v24 = vadd.f32 1e-05, %v2304_v21  ;;  %v2436_v21 = vld [vmem:[%s4590_s11 + $0x70] sm:$0xff] }
 0x6a0   : > { %v2308_v25 = vmul.f32 %v3855_v22, %v2305_v16  ;;  %vm2314_vm1 = vweird.f32 %v3855_v22  ;;  %v2577_v16 = vld [vmem:[#allocation2 + $0x60] sm:$0xff] }
 0x6a1   : > { %3856 = vrsqrt.f32 %v2306_v24  ;;  %vm2315_vm4 = vmor %vm2313_vm2, %vm2314_vm1  ;;  %vm2323_vm5 = vweird.f32 %v2306_v24 }
 0x6a2   : > { %v2309_v26 = vmul.f32 %v3855_v22, %v2308_v25  ;;  %v2571_v25 = vld [vmem:[#allocation2 + $0x30] sm:$0xff] }
 0x6a4   : > { %v2310_v27 = vmul.f32 0.5, %v2309_v26  ;;  %v2583_v26 = vld [vmem:[#allocation2 + $0x88] sm:$0xff] }
 0x6a6   : > { %v2311_v28 = vsub.f32 1.5, %v2310_v27  ;;  %v2710_v27 = vld [vmem:[#allocation2 + $0x138] sm:$0xff] }
 0x6a7   : > { %v3857_v15 = vpop.eup %3856  ;;  %v2349_v40 = vpop.permute.xlu0 %2348  ;;  %2760 = vmatpush.msrb.mxu1 %v2710_v27  ;;  %v2856_v27 = vld [vmem:[#allocation2 + $0x238] sm:$0xff] }
 0x6a8   : > { %v2318_v29 = vmul.f32 %v3857_v15, %v2306_v24  ;;  %v2312_v33 = vmul.f32 %v3855_v22, %v2311_v28  ;;  %vm2324_vm3 = vweird.f32 %v3857_v15  ;;  %v2585_v24 = vld [vmem:[#allocation2 + $0x98] sm:$0xff] }
 0x6a9   : > { %vm2325_vm6 = vmor %vm2323_vm5, %vm2324_vm3  ;;  %2641 = vmatpush.msra.mxu2 %v2585_v24  ;;  %v2580_v28 = vld [vmem:[#allocation2 + $0x78] sm:$0xff]  ;;  %v2858_v24 = vld [vmem:[#allocation2 + $0x248] sm:$0xff]  ;;  %vm3460_vm3 = vcmask 1043456  }
 0x6aa   : > { %v2319_v30 = vmul.f32 %v3857_v15, %v2318_v29  ;;  %v2316_v36 = vsel %vm2315_vm4, %v3855_v22, %v2312_v33  ;;  %v2573_v22 = vld [vmem:[#allocation2 + $0x40] sm:$0xff]  ;;  %v2567_v29 = vld [vmem:[#allocation2 + $0x10] sm:$0xff]  ;;  %v2576_v33 = vld [vmem:[#allocation2 + $0x58] sm:$0xff] }
 0x6ab   : > { %v2327_v39 = vmul.f32 %v2316_v36, %v4405_v41  ;;  %v2423_v41 = vld [vmem:[%s4590_s11 + $0x8] sm:$0xff]  ;;  %2642 = vmatpush.msra.mxu2 %v2583_v26 }
 0x6ac   : > { %v2320_v32 = vmul.f32 0.5, %v2319_v30  ;;  %v2578_v30 = vld [vmem:[#allocation2 + $0x68] sm:$0xff] }
 0x6ad   : > { %v2570_v36 = vld [vmem:[#allocation2 + $0x28] sm:$0xff] }
 0x6ae   : > { %v2321_v34 = vsub.f32 1.5, %v2320_v32  ;;  %v2565_v32 = vld [vmem:[#allocation2] sm:$0xff]  ;;  %v2781_v26 = vld [vmem:[#allocation2 + $0x1a8] sm:$0xff] }
 0x6b0   : > { %v2322_v35 = vmul.f32 %v3857_v15, %v2321_v34  ;;  %v2574_v34 = vld [vmem:[#allocation2 + $0x48] sm:$0xff] }
 0x6b2   : > { %v2326_v18 = vsel %vm2325_vm6, %v3857_v15, %v2322_v35  ;;  %v2569_v15 = vld [vmem:[#allocation2 + $0x20] sm:$0xff]  ;;  %v2572_v35 = vld [vmem:[#allocation2 + $0x38] sm:$0xff] }
 0x6b3   : > { %v2328_v37 = vmul.f32 %v2326_v18, %v4411_v53  ;;  %v2425_v53 = vld [vmem:[%s4590_s11 + $0x18] sm:$0xff]  ;;  %v2438_v18 = vld [vmem:[%s4590_s11 + $0x80] sm:$0xff] }
 0x6b4   : > { %v2332_v23 = vpop.permute.xlu1 %2331 }
 0x6b5   : > { %v2340_v42 = vmul.f32 %v2337_v31, %v2328_v37  ;;  %v2339_v44 = vmul.f32 %v2332_v23, %v2327_v39  ;;  %v2437_v31 = vld [vmem:[%s4590_s11 + $0x78] sm:$0xff]  ;;  %v2708_v39 = vld [vmem:[#allocation2 + $0x128] sm:$0xff] }
 0x6b6   : > { %v2568_v37 = vld [vmem:[#allocation2 + $0x18] sm:$0xff]  ;;  %2761 = vmatpush.msrb.mxu1 %v2708_v39  ;;  %v3009_v39 = vld [vmem:[#allocation2 + $0x370] sm:$0xff] }
 0x6b7   : > { %v2352_v48 = vadd.f32 %v2349_v40, %v2340_v42  ;;  %v2351_v49 = vadd.f32 %v2344_v46, %v2339_v44  ;;  %v2706_v23 = vld [vmem:[#allocation2 + $0x118] sm:$0xff]  ;;  %v2566_v42 = vld [vmem:[#allocation2 + $0x8] sm:$0xff] }
 0x6b8   : > { %2762 = vmatpush.msrb.mxu1 %v2706_v23  ;;  %v2704_v44 = vld [vmem:[#allocation2 + $0x108] sm:$0xff]  ;;  %v2932_v23 = vld [vmem:[#allocation2 + $0x2d0] sm:$0xff] }
 0x6b9   : > { %3719 = vmatmul.msk.f32.vlgmr.msrb.gmra.mxu0 %vm2277_vm13, %v2351_v49  ;;  %3721 = vmatmul.msk.f32.vlgmr.msrb.gmra.mxu2 %vm2277_vm13, %v2351_v49  ;;  %v2439_v40 = vld [vmem:[%s4590_s11 + $0x88] sm:$0xff] }
 0x6ba   : > { %2508 = vmatpush.msra.mxu3 %v2352_v48  ;;  %2664 = vmatpush.msrb.mxu0 %v2579_v13  ;;  %v2849_v13 = vld [vmem:[#allocation2 + $0x200] sm:$0xff] }
 0x6bb   : > { %2687 = vmatpush.msrb.mxu2 %v2580_v28  ;;  %2763 = vmatpush.msrb.mxu1 %v2704_v44  ;;  %v2779_v28 = vld [vmem:[#allocation2 + $0x198] sm:$0xff]  ;;  %v3007_v44 = vld [vmem:[#allocation2 + $0x360] sm:$0xff] }
 0x6bc   : > { %2509 = vmatpush.msra.mxu3 %v2351_v49  ;;  %2665 = vmatpush.msrb.mxu0 %v2577_v16  ;;  %v2717_v49 = vld [vmem:[#allocation2 + $0x170] sm:$0xff]  ;;  %v2937_v16 = vld [vmem:[#allocation2 + $0x2f8] sm:$0xff] }
 0x6bd   : > { %3723 = vmatmul.msk.f32.vlgmr.msra.gmra.mxu3 %vm997_vm0, %v2422_v51  ;;  %2688 = vmatpush.msrb.mxu2 %v2578_v30  ;;  %v2790_v51 = vld [vmem:[#allocation2 + $0x1f0] sm:$0xff]  ;;  %v2929_v30 = vld [vmem:[#allocation2 + $0x2b8] sm:$0xff] }
 0x6be   : > { %2666 = vmatpush.msrb.mxu0 %v2575_v19  ;;  %v2785_v19 = vld [vmem:[#allocation2 + $0x1c8] sm:$0xff] }
 0x6bf   : > { %2689 = vmatpush.msrb.mxu2 %v2576_v33  ;;  %v2852_v33 = vld [vmem:[#allocation2 + $0x218] sm:$0xff] }
 0x6c0   : > { %2667 = vmatpush.msrb.mxu0 %v2573_v22 }
 0x6c1   : > { %3720 = vmatmul.msk.f32.gmra.mxu0 %vm2277_vm13, %v2352_v48  ;;  %3722 = vmatmul.msk.f32.gmra.mxu2 %vm2277_vm13, %v2352_v48 }
 0x6c2   : > { %2668 = vmatpush.msrb.mxu0 %v2571_v25  ;;  %2690 = vmatpush.msrb.mxu2 %v2574_v34  ;;  %v2933_v25 = vld [vmem:[#allocation2 + $0x2d8] sm:$0xff] }
 0x6c4   : > { %2669 = vmatpush.msrb.mxu0 %v2569_v15  ;;  %2691 = vmatpush.msrb.mxu2 %v2572_v35  ;;  %v2931_v15 = vld [vmem:[#allocation2 + $0x2c8] sm:$0xff] }
 0x6c5   : > { %3724 = vmatmul.msk.f32.gmra.mxu3 %vm997_vm0, %v2423_v41  ;;  %v2927_v35 = vld [vmem:[#allocation2 + $0x2a8] sm:$0xff] }
 0x6c6   : > { %2670 = vmatpush.msrb.mxu0 %v2567_v29  ;;  %2692 = vmatpush.msrb.mxu2 %v2570_v36  ;;  %v2854_v29 = vld [vmem:[#allocation2 + $0x228] sm:$0xff]  ;;  %v2934_v36 = vld [vmem:[#allocation2 + $0x2e0] sm:$0xff] }
 0x6c8   : > { %2671 = vmatpush.msrb.mxu0 %v2565_v32  ;;  %2693 = vmatpush.msrb.mxu2 %v2568_v37  ;;  %v2936_v32 = vld [vmem:[#allocation2 + $0x2f0] sm:$0xff]  ;;  %v2925_v37 = vld [vmem:[#allocation2 + $0x298] sm:$0xff] }
 0x6ca   : > { %2694 = vmatpush.msrb.mxu2 %v2566_v42  ;;  %v2923_v42 = vld [vmem:[#allocation2 + $0x288] sm:$0xff] }
 0x6cd   : > { %3725 = vmatmul.msk.f32.gmra.mxu3 %vm997_vm0, %v2424_v52  ;;  %v2715_v52 = vld [vmem:[#allocation2 + $0x160] sm:$0xff] }
 0x6d5   : > { %3726 = vmatmul.msk.f32.gmra.mxu3 %vm997_vm0, %v2425_v53  ;;  %v2788_v53 = vld [vmem:[#allocation2 + $0x1e0] sm:$0xff] }
 0x6dd   : > { %3727 = vmatmul.msk.f32.gmra.mxu3 %vm997_vm0, %v2426_v54  ;;  %v2863_v54 = vld [vmem:[#allocation2 + $0x270] sm:$0xff] }
 0x6de   : > { %2879 = vmatpush.msra.mxu1 %v2863_v54  ;;  %v2922_v54 = vld [vmem:[#allocation2 + $0x280] sm:$0xff] }
 0x6e5   : > { %3728 = vmatmul.msk.f32.gmra.mxu3 %vm997_vm0, %v2427_v55  ;;  %v2861_v55 = vld [vmem:[#allocation2 + $0x260] sm:$0xff] }
 0x6e6   : > { %2880 = vmatpush.msra.mxu1 %v2861_v55  ;;  %v2999_v55 = vld [vmem:[#allocation2 + $0x320] sm:$0xff] }
 0x6ed   : > { %3729 = vmatmul.msk.f32.gmra.mxu3 %vm997_vm0, %v2428_v58  ;;  %v2786_v58 = vld [vmem:[#allocation2 + $0x1d0] sm:$0xff] }
 0x6f5   : > { %3730 = vmatmul.msk.f32.gmra.mxu3 %vm997_vm0, %v2429_v59  ;;  %v2859_v59 = vld [vmem:[#allocation2 + $0x250] sm:$0xff] }
 0x6f6   : > { %2881 = vmatpush.msra.mxu1 %v2859_v59  ;;  %v3082_v59 = vld [vmem:[#allocation2 + $0x3f0] sm:$0xff] }
 0x6fd   : > { %3731 = vmatmul.msk.f32.gmra.mxu3 %vm997_vm0, %v2430_v61  ;;  %v2784_v61 = vld [vmem:[#allocation2 + $0x1c0] sm:$0xff] }
 0x705   : > { %3732 = vmatmul.msk.f32.gmra.mxu3 %vm997_vm0, %v2431_v62  ;;  %v2709_v62 = vld [vmem:[#allocation2 + $0x130] sm:$0xff] }
 0x70d   : > { %3733 = vmatmul.msk.f32.gmra.mxu3 %vm997_vm0, %v2432_v0 }
 0x715   : > { %3734 = vmatmul.msk.f32.gmra.mxu3 %vm997_vm0, %v2433_v43  ;;  %v2857_v43 = vld [vmem:[#allocation2 + $0x240] sm:$0xff] }
 0x716   : > { %2882 = vmatpush.msra.mxu1 %v2857_v43  ;;  %v3083_v43 = vld [vmem:[#allocation2 + $0x3f8] sm:$0xff] }
 0x718   : > { %2883 = vmatpush.msra.mxu1 %v2855_v38  ;;  %v3081_v38 = vld [vmem:[#allocation2 + $0x3e8] sm:$0xff] }
 0x71a   : > { %2884 = vmatpush.msra.mxu1 %v2853_v5  ;;  %v3076_v5 = vld [vmem:[#allocation2 + $0x3c0] sm:$0xff] }
 0x71d   : > { %3735 = vmatmul.msk.f32.gmra.mxu3 %vm997_vm0, %v2434_v3  ;;  %v2705_v3 = vld [vmem:[#allocation2 + $0x110] sm:$0xff] }
 0x725   : > { %3736 = vmatmul.msk.f32.gmra.mxu3 %vm997_vm0, %v2435_v10  ;;  %v2851_v10 = vld [vmem:[#allocation2 + $0x210] sm:$0xff] }
 0x726   : > { %2885 = vmatpush.msra.mxu1 %v2851_v10  ;;  %v3072_v10 = vld [vmem:[#allocation2 + $0x3a0] sm:$0xff] }
 0x728   : > { %2886 = vmatpush.msra.mxu1 %v2849_v13  ;;  %v3155_v13 = vld [vmem:[#allocation2 + $0x470] sm:$0xff] }
 0x72d   : > { %3737 = vmatmul.msk.f32.gmra.mxu3 %vm997_vm0, %v2436_v21  ;;  %v2783_v21 = vld [vmem:[#allocation2 + $0x1b8] sm:$0xff] }
 0x735   : > { %3738 = vmatmul.msk.f32.gmra.mxu3 %vm997_vm0, %v2437_v31  ;;  %v2777_v31 = vld [vmem:[#allocation2 + $0x188] sm:$0xff] }
 0x73d   : > { %3739 = vmatmul.msk.f32.gmra.mxu3 %vm997_vm0, %v2438_v18  ;;  %v2850_v18 = vld [vmem:[#allocation2 + $0x208] sm:$0xff] }
 0x740   : > { %v2511_v46 = vpop.f32.mrf.mxu3 }
 0x745   : > { %3740 = vmatmul.msk.f32.gmra.mxu3 %vm997_vm0, %v2439_v40  ;;  %v2928_v40 = vld [vmem:[#allocation2 + $0x2b0] sm:$0xff] }
 0x748   : > { %v4485_v48 = vpop.f32.mrf.mxu3 }
 0x750   : > { %v2517_v41 = vpop.f32.mrf.mxu3 }
 0x751   : > { %3741 = vmatmul.msk.f32.vlgmr.msra.gmra.mxu0 %vm2277_vm13, %v2517_v41  ;;  %3743 = vmatmul.msk.f32.vlgmr.msra.gmra.mxu2 %vm2277_vm13, %v2517_v41  ;;  %v3003_v41 = vld [vmem:[#allocation2 + $0x340] sm:$0xff] }
 0x752   : > { %2733 = vmatpush.msra.mxu0 %v2717_v49  ;;  %2806 = vmatpush.msra.mxu2 %v2790_v51  ;;  %v2926_v51 = vld [vmem:[#allocation2 + $0x2a0] sm:$0xff] }
 0x754   : > { %2734 = vmatpush.msra.mxu0 %v2715_v52  ;;  %2807 = vmatpush.msra.mxu2 %v2788_v53  ;;  %v2924_v52 = vld [vmem:[#allocation2 + $0x290] sm:$0xff] }
 0x755   : > { %v3001_v53 = vld [vmem:[#allocation2 + $0x330] sm:$0xff] }
 0x756   : > { %2735 = vmatpush.msra.mxu0 %v2713_v56  ;;  %2808 = vmatpush.msra.mxu2 %v2786_v58  ;;  %v3010_v56 = vld [vmem:[#allocation2 + $0x378] sm:$0xff] }
 0x758   : > { %v2520_v0 = vpop.f32.mrf.mxu3  ;;  %2736 = vmatpush.msra.mxu0 %v2711_v60  ;;  %2809 = vmatpush.msra.mxu2 %v2784_v61  ;;  %v2997_v60 = vld [vmem:[#allocation2 + $0x310] sm:$0xff]  ;;  %v3008_v61 = vld [vmem:[#allocation2 + $0x368] sm:$0xff] }
 0x759   : > { %3742 = vmatmul.msk.f32.gmra.mxu0 %vm2277_vm13, %v2520_v0  ;;  %3744 = vmatmul.msk.f32.gmra.mxu2 %vm2277_vm13, %v2520_v0  ;;  %v3006_v0 = vld [vmem:[#allocation2 + $0x358] sm:$0xff] }
 0x75a   : > { %2737 = vmatpush.msra.mxu0 %v2709_v62  ;;  %2810 = vmatpush.msra.mxu2 %v2782_v63  ;;  %v3080_v62 = vld [vmem:[#allocation2 + $0x3e0] sm:$0xff] }
 0x75b   : > { %v2995_v63 = vld [vmem:[#allocation2 + $0x300] sm:$0xff] }
 0x75c   : > { %2738 = vmatpush.msra.mxu0 %v2707_v1  ;;  %2811 = vmatpush.msra.mxu2 %v2780_v2  ;;  %v3078_v1 = vld [vmem:[#allocation2 + $0x3d0] sm:$0xff]  ;;  %v3004_v2 = vld [vmem:[#allocation2 + $0x348] sm:$0xff] }
 0x75e   : > { %2739 = vmatpush.msra.mxu0 %v2705_v3  ;;  %2812 = vmatpush.msra.mxu2 %v2778_v4  ;;  %v3002_v3 = vld [vmem:[#allocation2 + $0x338] sm:$0xff] }
 0x760   : > { %v2523_v8 = vpop.f32.mrf.mxu3  ;;  %2740 = vmatpush.msra.mxu0 %v2703_v45  ;;  %2813 = vmatpush.msra.mxu2 %v2776_v6  ;;  %v3079_v45 = vld [vmem:[#allocation2 + $0x3d8] sm:$0xff]  ;;  %v3000_v6 = vld [vmem:[#allocation2 + $0x328] sm:$0xff] }
 0x761   : > { %3745 = vmatmul.msk.f32.vlgmr.msrb.gmra.mxu0 %vm2277_vm13, %v2511_v46  ;;  %3747 = vmatmul.msk.f32.vlgmr.msrb.gmra.mxu2 %vm2277_vm13, %v2511_v46  ;;  %v2930_v46 = vld [vmem:[#allocation2 + $0x2c0] sm:$0xff] }
 0x762   : > { %2829 = vmatpush.msrb.mxu0 %v2791_v7  ;;  %3751 = vmatmul.msk.f32.vlgmr.msrb.gmra.mxu1 %vm2277_vm13, %v2523_v8  ;;  %v3074_v7 = vld [vmem:[#allocation2 + $0x3b0] sm:$0xff] }
 0x763   : > { %2902 = vmatpush.msrb.mxu2 %v2864_v9  ;;  %2975 = vmatpush.msrb.mxu1 %v2937_v16  ;;  %v2998_v9 = vld [vmem:[#allocation2 + $0x318] sm:$0xff] }
 0x764   : > { %2830 = vmatpush.msrb.mxu0 %v2789_v11  ;;  %v3075_v11 = vld [vmem:[#allocation2 + $0x3b8] sm:$0xff] }
 0x765   : > { %2903 = vmatpush.msrb.mxu2 %v2862_v12  ;;  %2976 = vmatpush.msrb.mxu1 %v2935_v20  ;;  %v2996_v12 = vld [vmem:[#allocation2 + $0x308] sm:$0xff]  ;;  %v3068_v20 = vld [vmem:[#allocation2 + $0x380] sm:$0xff] }
 0x766   : > { %2831 = vmatpush.msrb.mxu0 %v2787_v14  ;;  %v3070_v14 = vld [vmem:[#allocation2 + $0x390] sm:$0xff] }
 0x767   : > { %2904 = vmatpush.msrb.mxu2 %v2860_v17  ;;  %2977 = vmatpush.msrb.mxu1 %v2933_v25  ;;  %v3073_v17 = vld [vmem:[#allocation2 + $0x3a8] sm:$0xff] }
 0x768   : > { %v2526_v22 = vpop.f32.mrf.mxu3  ;;  %2832 = vmatpush.msrb.mxu0 %v2785_v19  ;;  %v3153_v19 = vld [vmem:[#allocation2 + $0x460] sm:$0xff]  ;;  %v3154_v25 = vld [vmem:[#allocation2 + $0x468] sm:$0xff] }
 0x769   : > { %3746 = vmatmul.msk.f32.gmra.mxu0 %vm2277_vm13, %v4485_v48  ;;  %3748 = vmatmul.msk.f32.gmra.mxu2 %vm2277_vm13, %v4485_v48  ;;  %v3005_v48 = vld [vmem:[#allocation2 + $0x350] sm:$0xff] }
 0x76a   : > { %2833 = vmatpush.msrb.mxu0 %v2783_v21  ;;  %3752 = vmatmul.msk.f32.gmra.mxu1 %vm2277_vm13, %v2526_v22  ;;  %v3156_v21 = vld [vmem:[#allocation2 + $0x478] sm:$0xff] }
 0x76b   : > { %2905 = vmatpush.msrb.mxu2 %v2858_v24  ;;  %2978 = vmatpush.msrb.mxu1 %v2931_v15  ;;  %v3151_v24 = vld [vmem:[#allocation2 + $0x450] sm:$0xff]  ;;  %v2392_v15 = vpop.f32.mrf.mxu0 }
 0x76c   : > { %2834 = vmatpush.msrb.mxu0 %v2781_v26  ;;  %v3069_v26 = vld [vmem:[#allocation2 + $0x388] sm:$0xff] }
 0x76d   : > { %2906 = vmatpush.msrb.mxu2 %v2856_v27  ;;  %2979 = vmatpush.msrb.mxu1 %v2929_v30  ;;  %v3149_v27 = vld [vmem:[#allocation2 + $0x440] sm:$0xff] }
 0x76e   : > { %2835 = vmatpush.msrb.mxu0 %v2779_v28  ;;  %v3147_v28 = vld [vmem:[#allocation2 + $0x430] sm:$0xff] }
 0x76f   : > { %2907 = vmatpush.msrb.mxu2 %v2854_v29  ;;  %2980 = vmatpush.msrb.mxu1 %v2927_v35  ;;  %v3152_v29 = vld [vmem:[#allocation2 + $0x458] sm:$0xff]  ;;  %v3141_v35 = vld [vmem:[#allocation2 + $0x400] sm:$0xff] }
 0x770   : > { %v2529_v34 = vpop.f32.mrf.mxu3  ;;  %2836 = vmatpush.msrb.mxu0 %v2777_v31  ;;  %v3145_v31 = vld [vmem:[#allocation2 + $0x420] sm:$0xff] }
 0x771   : > { %3749 = vmatmul.msk.f32.vlgmr.msra.gmra.mxu0 %vm2277_vm13, %v2523_v8  ;;  %3753 = vmatmul.msk.f32.vlgmr.msra.gmra.mxu2 %vm2277_vm13, %v2529_v34  ;;  %v3077_v8 = vld [vmem:[#allocation2 + $0x3c8] sm:$0xff] }
 0x772   : > { %2952 = vmatpush.msra.mxu0 %v2936_v32  ;;  %2908 = vmatpush.msrb.mxu2 %v2852_v33  ;;  %v3150_v32 = vld [vmem:[#allocation2 + $0x448] sm:$0xff]  ;;  %v3143_v33 = vld [vmem:[#allocation2 + $0x410] sm:$0xff] }
 0x773   : > { %2981 = vmatpush.msrb.mxu1 %v2925_v37 }
 0x774   : > { %2953 = vmatpush.msra.mxu0 %v2934_v36  ;;  %2909 = vmatpush.msrb.mxu2 %v2850_v18  ;;  %v3146_v36 = vld [vmem:[#allocation2 + $0x428] sm:$0xff]  ;;  %v3144_v18 = vld [vmem:[#allocation2 + $0x418] sm:$0xff] }
 0x775   : > { %2982 = vmatpush.msrb.mxu1 %v2923_v42  ;;  %v2415_v42 = vpop.f32.mrf.mxu2 }
 0x776   : > { %3025 = vmatpush.msra.mxu2 %v3009_v39  ;;  %2954 = vmatpush.msra.mxu0 %v2932_v23  ;;  %v2395_v39 = vpop.f32.mrf.mxu0  ;;  %v3142_v23 = vld [vmem:[#allocation2 + $0x408] sm:$0xff] }
 0x778   : > { %3026 = vmatpush.msra.mxu2 %v3007_v44  ;;  %v2532_v49 = vpop.f32.mrf.mxu3  ;;  %2955 = vmatpush.msra.mxu0 %v2930_v46 }
 0x779   : > { %3750 = vmatmul.msk.f32.gmra.mxu0 %vm2277_vm13, %v2526_v22  ;;  %3754 = vmatmul.msk.f32.gmra.mxu2 %vm2277_vm13, %v2532_v49  ;;  %v3071_v22 = vld [vmem:[#allocation2 + $0x398] sm:$0xff] }
 0x77a   : > { %2956 = vmatpush.msra.mxu0 %v2928_v40  ;;  %3027 = vmatpush.msra.mxu2 %v3005_v48 }
 0x77c   : > { %2957 = vmatpush.msra.mxu0 %v2926_v51  ;;  %3028 = vmatpush.msra.mxu2 %v3003_v41 }
 0x77d   : > { %v2418_v40 = vpop.f32.mrf.mxu2 }
 0x77e   : > { %2958 = vmatpush.msra.mxu0 %v2924_v52  ;;  %3029 = vmatpush.msra.mxu2 %v3001_v53 }
 0x780   : > { %v2535_v58 = vpop.f32.mrf.mxu3  ;;  %2959 = vmatpush.msra.mxu0 %v2922_v54  ;;  %3030 = vmatpush.msra.mxu2 %v2999_v55 }
 0x781   : > { %3755 = vmatmul.msk.f32.vlgmr.msrb.gmra.mxu0 %vm2277_vm13, %v2529_v34  ;;  %3757 = vmatmul.msk.f32.vlgmr.msra.gmra.mxu1 %vm2277_vm13, %v2535_v58  ;;  %v3148_v34 = vld [vmem:[#allocation2 + $0x438] sm:$0xff] }
 0x782   : > { %3759 = vmatmul.msk.f32.vlgmr.msrb.gmra.mxu2 %vm2277_vm13, %v2535_v58  ;;  %3048 = vmatpush.msrb.mxu0 %v3010_v56 }
 0x783   : > { %3098 = vmatpush.msra.mxu1 %v3082_v59  ;;  %3031 = vmatpush.msra.mxu2 %v2997_v60 }
 0x784   : > { %3049 = vmatpush.msrb.mxu0 %v3008_v61 }
 0x785   : > { %3099 = vmatpush.msra.mxu1 %v3080_v62  ;;  %3032 = vmatpush.msra.mxu2 %v2995_v63 }
 0x786   : > { %3050 = vmatpush.msrb.mxu0 %v3006_v0 }
 0x787   : > { %3121 = vmatpush.msrb.mxu2 %v3083_v43  ;;  %3100 = vmatpush.msra.mxu1 %v3078_v1 }
 0x788   : > { %v2538_v4 = vpop.f32.mrf.mxu3  ;;  %3051 = vmatpush.msrb.mxu0 %v3004_v2 }
 0x789   : > { %3122 = vmatpush.msrb.mxu2 %v3081_v38  ;;  %3756 = vmatmul.msk.f32.gmra.mxu0 %vm2277_vm13, %v2532_v49 }
 0x78a   : > { %3758 = vmatmul.msk.f32.gmra.mxu1 %vm2277_vm13, %v2538_v4  ;;  %3760 = vmatmul.msk.f32.gmra.mxu2 %vm2277_vm13, %v2538_v4 }
 0x78b   : > { %3052 = vmatpush.msrb.mxu0 %v3002_v3  ;;  %3101 = vmatpush.msra.mxu1 %v3076_v5 }
 0x78c   : > { %3123 = vmatpush.msrb.mxu2 %v3079_v45 }
 0x78d   : > { %3053 = vmatpush.msrb.mxu0 %v3000_v6  ;;  %3102 = vmatpush.msra.mxu1 %v3074_v7 }
 0x78e   : > { %3124 = vmatpush.msrb.mxu2 %v3077_v8 }
 0x78f   : > { %3054 = vmatpush.msrb.mxu0 %v2998_v9  ;;  %3103 = vmatpush.msra.mxu1 %v3072_v10 }
 0x790   : > { %3125 = vmatpush.msrb.mxu2 %v3075_v11  ;;  %v2541_v16 = vpop.f32.mrf.mxu3 }
 0x791   : > { %3055 = vmatpush.msrb.mxu0 %v2996_v12  ;;  %3104 = vmatpush.msra.mxu1 %v3070_v14 }
 0x792   : > { %3761 = vmatmul.msk.f32.vlgmr.msra.gmra.mxu0 %vm2277_vm13, %v2541_v16  ;;  %3763 = vmatmul.msk.f32.vlgmr.msrb.gmra.mxu1 %vm2277_vm13, %v2541_v16 }
 0x793   : > { %3171 = vmatpush.msra.mxu0 %v3155_v13  ;;  %3126 = vmatpush.msrb.mxu2 %v3073_v17  ;;  %v3223_v17 = vpop.permute.xlu0 %3222 }
 0x794   : > { %3105 = vmatpush.msra.mxu1 %v3068_v20 }
 0x795   : > { %3172 = vmatpush.msra.mxu0 %v3153_v19  ;;  %3127 = vmatpush.msrb.mxu2 %v3071_v22 }
 0x796   : > { %3194 = vmatpush.msrb.mxu1 %v3156_v21 }
 0x797   : > { %3173 = vmatpush.msra.mxu0 %v3151_v24  ;;  %3128 = vmatpush.msrb.mxu2 %v3069_v26 }
 0x798   : > { %3195 = vmatpush.msrb.mxu1 %v3154_v25  ;;  %v2544_v30 = vpop.f32.mrf.mxu3 }
 0x799   : > { %3174 = vmatpush.msra.mxu0 %v3149_v27 }
 0x79a   : > { %3762 = vmatmul.msk.f32.gmra.mxu0 %vm2277_vm13, %v2544_v30  ;;  %3764 = vmatmul.msk.f32.gmra.mxu1 %vm2277_vm13, %v2544_v30 }
 0x79b   : > { %3175 = vmatpush.msra.mxu0 %v3147_v28  ;;  %3196 = vmatpush.msrb.mxu1 %v3152_v29 }
 0x79d   : > { %3176 = vmatpush.msra.mxu0 %v3145_v31  ;;  %3197 = vmatpush.msrb.mxu1 %v3150_v32  ;;  %v2421_v31 = vld [vmem:[%s970_s3] sm:$0x3]  ;;  %s4592_s3 = sld [smem:[#allocation18_spill]] }
 0x79f   : > { %3177 = vmatpush.msra.mxu0 %v3143_v33  ;;  %3198 = vmatpush.msrb.mxu1 %v3148_v34 }
 0x7a0   : > { %v2547_v37 = vpop.f32.mrf.mxu3 }
 0x7a1   : > { %3178 = vmatpush.msra.mxu0 %v3141_v35  ;;  %3199 = vmatpush.msrb.mxu1 %v3146_v36 }
 0x7a2   : > { %3765 = vmatmul.msk.f32.vlgmr.msra.gmra.mxu2 %vm2277_vm13, %v2547_v37  ;;  %3767 = vmatmul.msk.f32.vlgmr.msrb.gmra.mxu0 %vm2277_vm13, %v2547_v37  ;;  %v3242_v37 = vperm.slane %v2421_v31, 0 }
 0x7a3   : > { %3425 = vmatpush.msrb.mxu0 %v2395_v39  ;;  %3200 = vmatpush.msrb.mxu1 %v3144_v18  ;;  %v3243_v39 = vperm.slane %v2421_v31, 1 }
 0x7a5   : > { %3426 = vmatpush.msrb.mxu0 %v2392_v15  ;;  %3201 = vmatpush.msrb.mxu1 %v3142_v23  ;;  %v3234_v23 = vpop.permute.xlu0 %3233 }
 0x7a8   : > { %v2550_v44 = vpop.f32.mrf.mxu3 }
 0x7aa   : > { %3766 = vmatmul.msk.f32.gmra.mxu2 %vm2277_vm13, %v2550_v44  ;;  %3768 = vmatmul.msk.f32.gmra.mxu0 %vm2277_vm13, %v2550_v44 }
 0x7b0   : > { %v2553_v46 = vpop.f32.mrf.mxu3 }
 0x7b1   : > { %3769 = vmatmul.msk.f32.vlgmr.msra.gmra.mxu1 %vm2277_vm13, %v2553_v46 }
 0x7b2   : > { %3771 = vmatmul.msk.f32.vlgmr.msrb.gmra.mxu2 %vm2277_vm13, %v2553_v46  ;;  %3445 = vmatpush.msra.mxu1 %v2418_v40 }
 0x7b4   : > { %3446 = vmatpush.msra.mxu1 %v2415_v42 }
 0x7b8   : > { %v2556_v48 = vpop.f32.mrf.mxu3 }
 0x7b9   : > { %3770 = vmatmul.msk.f32.gmra.mxu1 %vm2277_vm13, %v2556_v48 }
 0x7ba   : > { %3772 = vmatmul.msk.f32.gmra.mxu2 %vm2277_vm13, %v2556_v48 }
 0x7c0   : > { %v2559_v49 = vpop.f32.mrf.mxu3 }
 0x7c1   : > { %3773 = vmatmul.msk.f32.vlgmr.msra.gmra.mxu0 %vm2277_vm13, %v2559_v49  ;;  %3775 = vmatmul.msk.f32.vlgmr.msrb.gmra.mxu1 %vm2277_vm13, %v2559_v49 }
 0x7c8   : > { %v2562_v51 = vpop.f32.mrf.mxu3 }
 0x7c9   : > { %3774 = vmatmul.msk.f32.gmra.mxu0 %vm2277_vm13, %v2562_v51  ;;  %3776 = vmatmul.msk.f32.gmra.mxu1 %vm2277_vm13, %v2562_v51 }
 0x7ce   : > { %v2621_v41 = vpop.f32.mrf.mxu0 }
 0x7d4   : > { %v2644_v52 = vpop.f32.mrf.mxu2 }
 0x7d6   : > { %v2624_v53 = vpop.f32.mrf.mxu0 }
 0x7dc   : > { %v2647_v56 = vpop.f32.mrf.mxu2 }
 0x7de   : > { %v2673_v54 = vpop.f32.mrf.mxu0 }
 0x7df   : > { %v2674_v55 = vadd.f32 %v2673_v54, %v2621_v41  ;;  %v2765_v63 = vpop.f32.mrf.mxu1 }
 0x7e4   : > { %v2696_v60 = vpop.f32.mrf.mxu2 }
 0x7e5   : > { %v2697_v16 = vadd.f32 %v2696_v60, %v2644_v52  ;;  %v3218_v52 = vpop.permute.xlu2 %3217 }
 0x7e6   : > { %v2676_v58 = vpop.f32.mrf.mxu0 }
 0x7e7   : > { %v2677_v59 = vadd.f32 %v2676_v58, %v2624_v53  ;;  %v2768_v1 = vpop.f32.mrf.mxu1  ;;  %v2772_v19 = vadd.f32 %v2765_v63, %v2697_v16 }
 0x7ec   : > { %v2699_v62 = vpop.f32.mrf.mxu2 }
 0x7ed   : > { %v2700_v24 = vadd.f32 %v2699_v62, %v2647_v56  ;;  %v3247_v56 = vmul.f32 %v3243_v39, %v3234_v23 }
 0x7ee   : > { %v2742_v61 = vpop.f32.mrf.mxu0 }
 0x7ef   : > { %v2771_v20 = vadd.f32 %v2742_v61, %v2674_v55  ;;  %v2774_v32 = vadd.f32 %v2768_v1, %v2700_v24  ;;  %v3246_v55 = vmul.f32 %v3242_v37, %v3234_v23 }
 0x7f4   : > { %v2815_v43 = vpop.f32.mrf.mxu2 }
 0x7f5   : > { %v2844_v21 = vadd.f32 %v2815_v43, %v2771_v20 }
 0x7f6   : > { %v2745_v0 = vpop.f32.mrf.mxu0 }
 0x7f7   : > { %v2773_v33 = vadd.f32 %v2745_v0, %v2677_v59 }
 0x7fc   : > { %v2818_v38 = vpop.f32.mrf.mxu2 }
 0x7fd   : > { %v2846_v36 = vadd.f32 %v2818_v38, %v2773_v33 }
 0x7fe   : > { %v2838_v2 = vpop.f32.mrf.mxu0  ;;  %v2888_v3 = vpop.f32.mrf.mxu1 }
 0x7ff   : > { %v2845_v22 = vadd.f32 %v2838_v2, %v2772_v19  ;;  %v2917_v27 = vadd.f32 %v2888_v3, %v2844_v21  ;;  %v3239_v2 = vpop.permute.xlu1 %3238 }
 0x805   : > { %v2911_v5 = vpop.f32.mrf.mxu2 }
 0x806   : > { %v2841_v4 = vpop.f32.mrf.mxu0  ;;  %v2918_v15 = vadd.f32 %v2911_v5, %v2845_v22 }
 0x807   : > { %v2891_v45 = vpop.f32.mrf.mxu1  ;;  %v2847_v18 = vadd.f32 %v2841_v4, %v2774_v32 }
 0x808   : > { %v2919_v46 = vadd.f32 %v2891_v45, %v2846_v36 }
 0x80d   : > { %v2914_v7 = vpop.f32.mrf.mxu2 }
 0x80e   : > { %v2920_v40 = vadd.f32 %v2914_v7, %v2847_v18 }
 0x80f   : > { %v2961_v6 = vpop.f32.mrf.mxu0  ;;  %v2984_v8 = vpop.f32.mrf.mxu1 }
 0x810   : > { %v2990_v29 = vadd.f32 %v2961_v6, %v2917_v27  ;;  %v2991_v30 = vadd.f32 %v2984_v8, %v2918_v15  ;;  %v3352_v27 = vld [vmem:[%s4096_s4] sm:$0x7]  ;;  %v3942_v15 = vmov 256.0  }
 0x811   : > { %3858 = vrcp.f32 %v3942_v15 }
 0x817   : > { %v2964_v9 = vpop.f32.mrf.mxu0  ;;  %v2987_v11 = vpop.f32.mrf.mxu1 }
 0x818   : > { %v2992_v53 = vadd.f32 %v2964_v9, %v2919_v46  ;;  %v2993_v54 = vadd.f32 %v2987_v11, %v2920_v40  ;;  %v3249_v11 = vmul.f32 %v3243_v39, %v3239_v2 }
 0x81f   : > { %v3057_v12 = vpop.f32.mrf.mxu0 }
 0x820   : > { %v3064_v34 = vadd.f32 %v3057_v12, %v2991_v30 }
 0x825   : > { %v3034_v10 = vpop.f32.mrf.mxu2 }
 0x826   : > { %v3063_v35 = vadd.f32 %v3034_v10, %v2990_v29  ;;  %v3248_v10 = vmul.f32 %v3242_v37, %v3239_v2  ;;  %v3401_v29 = vld [vmem:[%s4592_s3] sm:$0x7] }
 0x827   : > { %v3060_v25 = vpop.f32.mrf.mxu0  ;;  %3779 = vmatmul.msk.f32.vlgmr.msrb.gmra.mxu0 %vm997_vm0, %v3401_v29  ;;  %3780 = vmatmul.msk.f32.vlgmr.msra.gmra.mxu1 %vm997_vm0, %v3401_v29 }
 0x828   : > { %v3066_v61 = vadd.f32 %v3060_v25, %v2993_v54  ;;  %v1677_v25 = vld [vmem:[%s4584_s1 + $0x48] sm:$0xff]  ;;  %v3402_v54 = vld [vmem:[%s4086_s14] sm:$0x7] }
 0x82d   : > { %v3037_v13 = vpop.f32.mrf.mxu2 }
 0x82e   : > { %v3107_v14 = vpop.f32.mrf.mxu1  ;;  %v3065_v62 = vadd.f32 %v3037_v13, %v2992_v53 }
 0x82f   : > { %v3136_v42 = vadd.f32 %v3107_v14, %v3063_v35 }
 0x835   : > { %v3130_v28 = vpop.f32.mrf.mxu2 }
 0x836   : > { %v3110_v26 = vpop.f32.mrf.mxu1  ;;  %v3137_v44 = vadd.f32 %v3130_v28, %v3064_v34 }
 0x837   : > { %v3138_v43 = vadd.f32 %v3110_v26, %v3065_v62  ;;  %v1761_v26 = vadd.f32 %v4388_v47, %v1677_v25  ;;  %v3351_v25 = vld [vmem:[%s4091_s8] sm:$0x7] }
 0x83d   : > { %v3133_v58 = vpop.f32.mrf.mxu2 }
 0x83e   : > { %v3180_v48 = vpop.f32.mrf.mxu0  ;;  %v3203_v49 = vpop.f32.mrf.mxu1  ;;  %v3139_v1 = vadd.f32 %v3133_v58, %v3066_v61 }
 0x83f   : > { %v3209_v51 = vadd.f32 %v3180_v48, %v3136_v42  ;;  %v3210_v41 = vadd.f32 %v3203_v49, %v3137_v44 }
 0x841   : > { %v3225_v59 = vadd.f32 %v3218_v52, %v3209_v51  ;;  %v3226_v60 = vadd.f32 %v3218_v52, %v3210_v41  ;;  %v1679_v51 = vld [vmem:[%s4584_s1 + $0x58] sm:$0xff]  ;;  %v1678_v41 = vld [vmem:[%s4584_s1 + $0x50] sm:$0xff] }
 0x842   : > { %v1767_v52 = vadd.f32 %v4392_v57, %v1679_v51  ;;  %v1764_v53 = vadd.f32 %v4390_v50, %v1678_v41 }
 0x843   : > { %v3250_v63 = vadd.f32 %v3246_v55, %v3225_v59  ;;  %v3251_v0 = vadd.f32 %v3247_v56, %v3226_v60  ;;  %v3326_v55 = vpop.permute.xlu0 %3325 }
 0x845   : > { %vm3254_vm7 = vcmp.ge.f32.partialorder %v3250_v63, 0.0  ;;  %vm3255_vm8 = vcmp.ge.f32.partialorder %v3251_v0, 0.0  ;;  %v3258_v38 = vmul.f32 0.2, %v3250_v63  ;;  %v3259_v3 = vmul.f32 0.2, %v3251_v0 }
 0x846   : > { %v3183_v4 = vpop.f32.mrf.mxu0  ;;  %v3206_v5 = vpop.f32.mrf.mxu1 }
 0x847   : > { %v3211_v45 = vadd.f32 %v3183_v4, %v3138_v43  ;;  %v3212_v6 = vadd.f32 %v3206_v5, %v3139_v1  ;;  %v3262_v7 = vsel %vm3254_vm7, %v3250_v63, %v3258_v38  ;;  %v3263_v8 = vsel %vm3255_vm8, %v3251_v0, %v3259_v3 }
 0x848   : > { %v3266_v9 = vadd.f32 %v3263_v8, %v3262_v7 }
 0x849   : > { %v3227_v12 = vadd.f32 %v3223_v17, %v3211_v45  ;;  %v3228_v13 = vadd.f32 %v3223_v17, %v3212_v6  ;;  %v3859_v17 = vpop.eup %3858 }
 0x84a   : > { %3267 = vadd.xlane.f32.xlu2 %v3266_v9  ;;  %v3273_v28 = vmul.f32 256.0, %v3859_v17  ;;  %vm3277_vm11 = vweird.f32 %v3859_v17 }
 0x84b   : > { %v3252_v14 = vadd.f32 %v3248_v10, %v3227_v12  ;;  %v3253_v16 = vadd.f32 %v3249_v11, %v3228_v13 }
 0x84c   : > { %v3274_v30 = vsub.f32 1.0, %v3273_v28 }
 0x84d   : > { %vm3256_vm9 = vcmp.ge.f32.partialorder %v3252_v14, 0.0  ;;  %vm3257_vm10 = vcmp.ge.f32.partialorder %v3253_v16, 0.0  ;;  %v3260_v19 = vmul.f32 0.2, %v3252_v14  ;;  %v3261_v20 = vmul.f32 0.2, %v3253_v16 }
 0x84e   : > { %v3275_v31 = vmul.f32 %v3859_v17, %v3274_v30 }
 0x84f   : > { %v3264_v21 = vsel %vm3256_vm9, %v3252_v14, %v3260_v19  ;;  %v3265_v22 = vsel %vm3257_vm10, %v3253_v16, %v3261_v20 }
 0x850   : > { %v3269_v24 = vadd.f32 %v3265_v22, %v3264_v21  ;;  %v3276_v32 = vadd.f32 %v3859_v17, %v3275_v31 }
 0x852   : > { %3270 = vadd.xlane.f32.xlu1 %v3269_v24  ;;  %v3278_v33 = vsel %vm3277_vm11, %v3859_v17, %v3276_v32 }
 0x862   : > { %3330 = vperm.xlu2 %3843, %v1761_v26  }
 0x86a   : > { %3355 = vperm.xlu2 %3843, %v3352_v27  }
 0x8a4   : > { %v3428_v28 = vpop.f32.mrf.mxu0  ;;  %v3448_v31 = vpop.f32.mrf.mxu1 }
 0x8bd   : > { %v3268_v34 = vpop.xlane.xlu2 %3267 }
 0x8be   : > { %v3279_v47 = vmul.f32 %v3278_v33, %v3268_v34 }
 0x8c0   : > { %v3281_v35 = vsub.f32 %v3262_v7, %v3279_v47  ;;  %v3282_v36 = vsub.f32 %v3263_v8, %v3279_v47 }
 0x8c2   : > { %v3285_v18 = vmul.f32 %v3281_v35, %v3281_v35  ;;  %v3286_v37 = vmul.f32 %v3282_v36, %v3282_v36 }
 0x8c4   : > { %v3289_v39 = vadd.f32 %v3286_v37, %v3285_v18 }
 0x8c5   : > { %v3271_v23 = vpop.xlane.xlu1 %3270  ;;  %v3331_v11 = vpop.permute.xlu2 %3330 }
 0x8c6   : > { %v3280_v42 = vmul.f32 %v3278_v33, %v3271_v23  ;;  %3290 = vadd.xlane.f32.xlu1 %v3289_v39 }
 0x8c8   : > { %v3283_v44 = vsub.f32 %v3264_v21, %v3280_v42  ;;  %v3284_v46 = vsub.f32 %v3265_v22, %v3280_v42 }
 0x8ca   : > { %v3287_v40 = vmul.f32 %v3283_v44, %v3283_v44  ;;  %v3288_v48 = vmul.f32 %v3284_v46, %v3284_v46 }
 0x8cc   : > { %v3292_v49 = vadd.f32 %v3288_v48, %v3287_v40 }
 0x8cd   : > { %v3356_v17 = vpop.permute.xlu2 %3355 }
 0x8ce   : > { %3293 = vadd.xlane.f32.xlu0 %v3292_v49 }
 0x8df   : > { %3344 = vperm.xlu1 %3842, %v1767_v52  }
 0x8e2   : > { %3339 = vperm.xlu0 %3841, %v1764_v53  }
 0x8e7   : > { %3405 = vperm.xlu1 %3842, %v3402_v54  }
 0x939   : > { %v3291_v56 = vpop.xlane.xlu1 %3290 }
 0x93a   : > { %v3295_v58 = vmul.f32 %v3291_v56, %v3278_v33 }
 0x93c   : > { %v3297_v59 = vadd.f32 1e-05, %v3295_v58 }
 0x93e   : > { %3860 = vrsqrt.f32 %v3297_v59  ;;  %vm3305_vm13 = vweird.f32 %v3297_v59 }
 0x941   : > { %v3294_v60 = vpop.xlane.xlu0 %3293 }
 0x942   : > { %v3296_v61 = vmul.f32 %v3294_v60, %v3278_v33 }
 0x944   : > { %v3861_v62 = vpop.eup %3860  ;;  %v3298_v63 = vadd.f32 1e-05, %v3296_v61 }
 0x945   : > { %v3300_v0 = vmul.f32 %v3861_v62, %v3297_v59  ;;  %vm3306_vm12 = vweird.f32 %v3861_v62 }
 0x946   : > { %3862 = vrsqrt.f32 %v3298_v63  ;;  %vm3307_vm14 = vmor %vm3305_vm13, %vm3306_vm12  ;;  %vm3315_vm1 = vweird.f32 %v3298_v63 }
 0x947   : > { %v3301_v43 = vmul.f32 %v3861_v62, %v3300_v0 }
 0x949   : > { %v3302_v1 = vmul.f32 0.5, %v3301_v43 }
 0x94b   : > { %v3303_v57 = vsub.f32 1.5, %v3302_v1 }
 0x94c   : > { %v3863_v2 = vpop.eup %3862 }
 0x94d   : > { %v3310_v38 = vmul.f32 %v3863_v2, %v3298_v63  ;;  %v3304_v3 = vmul.f32 %v3861_v62, %v3303_v57  ;;  %vm3316_vm15 = vweird.f32 %v3863_v2 }
 0x94e   : > { %vm3317_vm2 = vmor %vm3315_vm1, %vm3316_vm15 }
 0x94f   : > { %v3311_v50 = vmul.f32 %v3863_v2, %v3310_v38  ;;  %v3308_v45 = vsel %vm3307_vm14, %v3861_v62, %v3304_v3 }
 0x950   : > { %v3319_v7 = vmul.f32 %v3308_v45, %v3281_v35  ;;  %v3320_v13 = vmul.f32 %v3308_v45, %v3282_v36 }
 0x951   : > { %v3312_v4 = vmul.f32 0.5, %v3311_v50  ;;  %v3345_v16 = vpop.permute.xlu1 %3344 }
 0x952   : > { %v3333_v14 = vmul.f32 %v3326_v55, %v3319_v7  ;;  %v3334_v22 = vmul.f32 %v3326_v55, %v3320_v13 }
 0x953   : > { %v3313_v5 = vsub.f32 1.5, %v3312_v4 }
 0x954   : > { %v3340_v19 = vpop.permute.xlu0 %3339 }
 0x955   : > { %v3314_v6 = vmul.f32 %v3863_v2, %v3313_v5  ;;  %v3347_v24 = vadd.f32 %v3340_v19, %v3333_v14  ;;  %v3348_v27 = vadd.f32 %v3340_v19, %v3334_v22 }
 0x957   : > { %v3318_v8 = vsel %vm3317_vm2, %v3863_v2, %v3314_v6 }
 0x958   : > { %v3321_v9 = vmul.f32 %v3318_v8, %v3283_v44  ;;  %v3322_v10 = vmul.f32 %v3318_v8, %v3284_v46 }
 0x959   : > { %v3406_v29 = vpop.permute.xlu1 %3405 }
 0x95a   : > { %v3335_v12 = vmul.f32 %v3331_v11, %v3321_v9  ;;  %v3336_v20 = vmul.f32 %v3331_v11, %v3322_v10  ;;  %v3429_v32 = vadd.f32 %v3428_v28, %v3406_v29  ;;  %v3449_v34 = vadd.f32 %v3448_v31, %v3406_v29 }
 0x95c   : > { %v3349_v21 = vadd.f32 %v3345_v16, %v3335_v12  ;;  %v3350_v26 = vadd.f32 %v3345_v16, %v3336_v20 }
 0x95e   : > { %3375 = vmatpush.msra.mxu2 %v3349_v21 }
 0x960   : > { %3376 = vmatpush.msra.mxu2 %v3347_v24 }
 0x961   : > { %3777 = vmatmul.msk.f32.vlgmr.msra.gmra.mxu2 %vm997_vm0, %v3351_v25 }
 0x962   : > { %3395 = vmatpush.msrb.mxu2 %v3350_v26 }
 0x964   : > { %3396 = vmatpush.msrb.mxu2 %v3348_v27 }
 0x969   : > { %3778 = vmatmul.msk.f32.vlgmr.msrb.gmra.mxu2 %vm997_vm0, %v3351_v25 }
 0x9e4   : > { %v3378_v15 = vpop.f32.mrf.mxu2 }
 0x9e5   : > { %v3379_v30 = vadd.f32 %v3378_v15, %v3356_v17 }
 0x9e7   : > { %v3451_v47 = vsub.f32 %v3379_v30, %v3429_v32 }
 0x9e9   : > { %v3453_v18 = vmul.f32 0.2, %v3451_v47 }
 0x9eb   : > { %v3455_v23 = vadd.f32 %v3453_v18, %v3429_v32 }
 0x9ec   : > { %v3398_v33 = vpop.f32.mrf.mxu2 }
 0x9ed   : > { %v3399_v35 = vadd.f32 %v3398_v33, %v3356_v17 }
 0x9ef   : > { %v3452_v36 = vsub.f32 %v3399_v35, %v3449_v34 }
 0x9f1   : > { %v3454_v37 = vmul.f32 0.2, %v3452_v36 }
 0x9f3   : > { %v3456_v39 = vadd.f32 %v3454_v37, %v3449_v34 }
 0x9f5   : > { %v3459_v42 = vrot.slane %v3456_v39, 4 }
 0x9f7   : > { %v3461_v44 = vsel %vm3460_vm3, %v3455_v23, %v3459_v42 }
 0x9f8   : > { %3463 = vst [vmem:[%s975_s2] sm:$0x77] %v3461_v44 }
 0x9f9 PF: > { %s72_s15 = sadd.s32 1, %s3904_s15  }
 0x9fa   : > { %p69_p1 = scmp.ge.s32.totalorder %s72_s15, 4  }
 0x9fc   :  { %71 = sbr.rel (!%p69_p1) target bundleno = 48 (0x30), region = 235 }
 0xa01   :  { %3485 = vsyncpa [#allocation3], 1 }
 0xa02   :  { %3487 = vsyncpa [#allocation3 + $0x1], 1 }

</bundles_post_ra>
